<compile_context>
chip_gen: v7x
topology: tpu7x:2x2x1
jax: 0.10.0
libtpu: 0.0.40
codegen_flags: <defaults>
</compile_context>

<pallas_src>
import numpy as np
import jax
import jax.numpy as jnp
from jax import lax
from jax.experimental import pallas as pl
from jax.experimental.pallas import tpu as pltpu

# ---- problem sizes ----------------------------------------------------------
N = 2          # batch
C_IN = 4       # num_input_channels
B = 8          # num_bayesian_channels
H = W = 16     # spatial
EPS = 1e-5     # BatchNorm eps (PyTorch default)
F32 = jnp.float32


# =============================================================================
# Host-side structured-weight builders (run once, outside jit)
# =============================================================================
def _interp_matrix_np(out_size, in_size):
    """Bilinear-resize row matrix, align_corners=True."""
    A = np.zeros((out_size, in_size), np.float32)
    if out_size == 1:
        A[0, 0] = 1.0
        return A
    scale = (in_size - 1) / (out_size - 1)
    for i in range(out_size):
        src = i * scale
        lo = int(np.floor(src))
        f = src - lo
        hi = min(lo + 1, in_size - 1)
        A[i, lo] += 1.0 - f
        A[i, hi] += f
    return A


def _conv3_toeplitz(w_hwio, wd):
    """(3,3,Cin,Cout) -> (3, wd*Cin, wd*Cout) per-dy block-Toeplitz matrices.
    Zero blocks implement SAME zero-padding along W; H padding handled in-kernel
    with exact 0/1 shift matmuls."""
    w = np.asarray(w_hwio, np.float32)
    _, _, cin, cout = w.shape
    T = np.zeros((3, wd * cin, wd * cout), np.float32)
    for dy in range(3):
        for wo in range(wd):
            for dx in range(3):
                wi = wo + dx - 1
                if 0 <= wi < wd:
                    T[dy, wi * cin:(wi + 1) * cin, wo * cout:(wo + 1) * cout] = w[dy, dx]
    return T


def _bn_scale_shift(bn):
    g, b, m, v = [np.asarray(a, np.float32) for a in bn]
    s = g / np.sqrt(v + EPS)
    return s, b - m * s


def _tiled(vec, wd):
    return np.tile(np.asarray(vec, np.float32), wd)[None, :]


def _shift_mats(hc):
    dn = np.zeros((hc, hc), np.float32)      # (dn @ v)[h] = v[h-1], 0 at h=0
    up = np.zeros((hc, hc), np.float32)      # (up @ v)[h] = v[h+1], 0 at h=hc-1
    dn[np.arange(1, hc), np.arange(0, hc - 1)] = 1.0
    up[np.arange(0, hc - 1), np.arange(1, hc)] = 1.0
    return dn, up


def prepare_params(p):
    """Convert per-layer params into the structured, lane-dense matrices the
    fused Pallas kernel consumes (returned as a flat tuple in kernel-arg order)."""
    # projector: BN folded exactly into the block-diagonal 1x1-conv matmul
    s, t = _bn_scale_shift(p['bn_proj'])
    wp = np.asarray(p['proj_w'], np.float32)           # (C_IN, B)
    bp = np.asarray(p['proj_b'], np.float32)
    wps = wp * s[:, None]
    wproj = np.zeros((W * C_IN, W * B), np.float32)
    for w in range(W):
        wproj[w * C_IN:(w + 1) * C_IN, w * B:(w + 1) * B] = wps
    bproj = _tiled(bp + t @ wp, W)

    def bn_t(name, wd, ch=slice(None)):
        sc, sh = _bn_scale_shift(p[name])
        return _tiled(sc[ch], wd), _tiled(sh[ch], wd)

    se1, te1 = bn_t('bn_enc1', W)
    se2, te2 = bn_t('bn_enc2', W)
    sb1, tb1 = bn_t('bn_bot1', W // 2)
    sb2, tb2 = bn_t('bn_bot2', W // 2)
    sd1e, td1e = bn_t('bn_dec1', W, slice(0, B))        # BN slice for enc half
    sd1u, td1u = bn_t('bn_dec1', W, slice(B, 2 * B))    # BN slice for upsample half
    sd2, td2 = bn_t('bn_dec2', W)

    Te1 = _conv3_toeplitz(p['enc_w1'], W)
    Te2 = _conv3_toeplitz(p['enc_w2'], W)
    Tb1 = _conv3_toeplitz(p['bot_w1'], W // 2)
    Tb2 = _conv3_toeplitz(p['bot_w2'], W // 2)
    dw1 = np.asarray(p['dec_w1'], np.float32)
    Td1e = _conv3_toeplitz(dw1[:, :, :B, :], W)          # skip-concat split: enc part
    Td1u = _conv3_toeplitz(dw1[:, :, B:, :], W)          # skip-concat split: upsampled part
    Td2 = _conv3_toeplitz(p['dec_w2'], W)

    be1 = _tiled(p['enc_b1'], W)
    be2 = _tiled(p['enc_b2'], W)
    bb1 = _tiled(p['bot_b1'], W // 2)
    bb2 = _tiled(p['bot_b2'], W // 2)
    bd1 = _tiled(p['dec_b1'], W)
    bd2 = _tiled(p['dec_b2'], W)

    # 2x2 / stride-2 max-pool as selection matmuls (rows, then lane groups)
    eev = np.zeros((H // 2, H), np.float32)
    eod = np.zeros((H // 2, H), np.float32)
    eev[np.arange(H // 2), 2 * np.arange(H // 2)] = 1.0
    eod[np.arange(H // 2), 2 * np.arange(H // 2) + 1] = 1.0
    swe = np.zeros((W * B, (W // 2) * B), np.float32)
    swo = np.zeros((W * B, (W // 2) * B), np.float32)
    for k in range(W // 2):
        for c in range(B):
            swe[(2 * k) * B + c, k * B + c] = 1.0
            swo[(2 * k + 1) * B + c, k * B + c] = 1.0

    # bilinear x2 upsample (align_corners=True) as two matmuls
    ah = _interp_matrix_np(H, H // 2)                    # (16, 8), rows: A_h @ x
    aw = _interp_matrix_np(W, W // 2)                    # (16, 8)
    awx = np.zeros(((W // 2) * B, W * B), np.float32)    # per-channel expanded A_w
    for wo in range(W):
        for wi in range(W // 2):
            for c in range(B):
                awx[wi * B + c, wo * B + c] = aw[wo, wi]

    # cfm channel-split selectors on the (H, W*2B) decoder output
    sel_lo = np.zeros((W * 2 * B, W * B), np.float32)
    sel_hi = np.zeros((W * 2 * B, W * B), np.float32)
    for w in range(W):
        for c in range(B):
            sel_lo[w * 2 * B + c, w * B + c] = 1.0
            sel_hi[w * 2 * B + B + c, w * B + c] = 1.0

    dn16, up16 = _shift_mats(H)
    dn8, up8 = _shift_mats(H // 2)

    prep = (wproj, bproj,
            se1, te1, Te1, be1,
            se2, te2, Te2, be2,
            eev, eod, swe, swo,
            sb1, tb1, Tb1, bb1,
            sb2, tb2, Tb2, bb2,
            ah, awx,
            sd1e, td1e, sd1u, td1u, Td1e, Td1u, bd1,
            sd2, td2, Td2, bd2,
            sel_lo, sel_hi,
            dn16, up16, dn8, up8)
    return tuple(jnp.asarray(a, F32) for a in prep)


# =============================================================================
# The single fused Pallas kernel (one grid step per batch element)
# =============================================================================
def _fused_kernel(x_ref,
                  wproj, bproj,
                  se1, te1, Te1, be1,
                  se2, te2, Te2, be2,
                  eev, eod, swe, swo,
                  sb1, tb1, Tb1, bb1,
                  sb2, tb2, Tb2, bb2,
                  ah, awx,
                  sd1e, td1e, sd1u, td1u, Td1e, Td1u, bd1,
                  sd2, td2, Td2, bd2,
                  sel_lo, sel_hi,
                  dn16, up16, dn8, up8,
                  o_ref):

    def mm(a, b):
        return jnp.dot(a, b, preferred_element_type=jnp.float32)

    def conv3(v, T, dn, up):
        # 3x3 SAME conv: W-padding is inside the block-Toeplitz T[dy]; H-padding
        # via exact 0/1 shift matmuls (no reshape/pad/concat relayouts).
        return (mm(mm(dn[...], v), T[0])
                + mm(v, T[1])
                + mm(mm(up[...], v), T[2]))

    x = x_ref[0]                                                 # (H, W*C_IN) = (16, 64)

    # projector (BN folded into the block-diagonal 1x1 matmul)
    proj = mm(x, wproj[...]) + bproj[...]                        # (16, 128)

    # encoder + skip
    h1 = jnp.maximum(conv3(proj * se1[...] + te1[...], Te1, dn16, up16) + be1[...], 0.0)
    enc = conv3(h1 * se2[...] + te2[...], Te2, dn16, up16) + be2[...] + proj   # (16, 128)

    # 2x2 / stride-2 max-pool via selection matmuls
    rmax = jnp.maximum(mm(eev[...], enc), mm(eod[...], enc))     # (8, 128)
    pooled = jnp.maximum(mm(rmax, swe[...]), mm(rmax, swo[...]))  # (8, 64)

    # bottleneck + residual + relu
    g1 = jnp.maximum(conv3(pooled * sb1[...] + tb1[...], Tb1, dn8, up8) + bb1[...], 0.0)  # (8, 128)
    g2 = conv3(g1 * sb2[...] + tb2[...], Tb2, dn8, up8) + bb2[...]                        # (8, 64)
    processed = jnp.maximum(g2 + pooled, 0.0)

    # bilinear x2 upsample (align_corners=True): rows then columns, both matmuls
    up2 = mm(mm(ah[...], processed), awx[...])                   # (16, 128)

    # decoder on concat(enc, up): the concat is realized by splitting the conv
    # weights along the input channels (two Toeplitz matmul stacks).
    d1 = (conv3(enc * sd1e[...] + td1e[...], Td1e, dn16, up16)
          + conv3(up2 * sd1u[...] + td1u[...], Td1u, dn16, up16)
          + bd1[...])                                            # (16, 256)
    d1 = jnp.maximum(d1, 0.0)
    dec = conv3(d1 * sd2[...] + td2[...], Td2, dn16, up16) + bd2[...]   # (16, 256)

    # cfm = dec[:, :B] * dec[:, B:]  (channel split via selection matmuls)
    o_ref[0] = mm(dec, sel_lo[...]) * mm(dec, sel_hi[...])       # (16, 128)


def pallas_forward(x_nchw, prep):
    # NCHW -> lane-dense (N, H, W*C_IN)
    x = jnp.transpose(x_nchw, (0, 2, 3, 1)).reshape(N, H, W * C_IN)

    in_specs = [pl.BlockSpec((1, H, W * C_IN), lambda n: (n, 0, 0))]
    for a in prep:
        nd = a.ndim
        in_specs.append(pl.BlockSpec(a.shape, (lambda n, _z=(0,) * nd: _z)))

    out = pl.pallas_call(
        _fused_kernel,
        out_shape=jax.ShapeDtypeStruct((N, H, W * B), F32),
        grid=(N,),
        in_specs=in_specs,
        out_specs=pl.BlockSpec((1, H, W * B), lambda n: (n, 0, 0)),
        compiler_params=pltpu.CompilerParams(dimension_semantics=("parallel",)),
    )(x, *prep)

    # (N, H, W*B) -> (N, B, H, W)
    return jnp.transpose(out.reshape(N, H, W, B), (0, 3, 1, 2))


# =============================================================================
# Parameter init (matches the PyTorch module's layer sizes)
# =============================================================================
def init_params(key):
    keys = iter(jax.random.split(key, 64))

    def conv_w(shape):
        fan_in = int(np.prod(shape[:-1]))
        bound = 1.0 / np.sqrt(fan_in)
        return jax.random.uniform(next(keys), shape, F32, -bound, bound)

    def conv_b(cout, fan_in):
        bound = 1.0 / np.sqrt(fan_in)
        return jax.random.uniform(next(keys), (cout,), F32, -bound, bound)

    def bn_p(c):
        gamma = 1.0 + 0.1 * jax.random.normal(next(keys), (c,), F32)
        beta = 0.1 * jax.random.normal(next(keys), (c,), F32)
        mean = 0.2 * jax.random.normal(next(keys), (c,), F32)
        var = jax.random.uniform(next(keys), (c,), F32, 0.5, 1.5)
        return (gamma, beta, mean, var)

    p = {}
    p['bn_proj'] = bn_p(C_IN)
    p['proj_w'] = conv_w((C_IN, B));            p['proj_b'] = conv_b(B, C_IN)
    p['bn_enc1'] = bn_p(B)
    p['enc_w1'] = conv_w((3, 3, B, B));         p['enc_b1'] = conv_b(B, 9 * B)
    p['bn_enc2'] = bn_p(B)
    p['enc_w2'] = conv_w((3, 3, B, B));         p['enc_b2'] = conv_b(B, 9 * B)
    p['bn_bot1'] = bn_p(B)
    p['bot_w1'] = conv_w((3, 3, B, 2 * B));     p['bot_b1'] = conv_b(2 * B, 9 * B)
    p['bn_bot2'] = bn_p(2 * B)                  # TODO(synk): source says BN(B); see header note
    p['bot_w2'] = conv_w((3, 3, 2 * B, B));     p['bot_b2'] = conv_b(B, 9 * 2 * B)
    p['bn_dec1'] = bn_p(2 * B)
    p['dec_w1'] = conv_w((3, 3, 2 * B, 2 * B)); p['dec_b1'] = conv_b(2 * B, 9 * 2 * B)
    p['bn_dec2'] = bn_p(2 * B)                  # TODO(synk): source says BN(B); see header note
    p['dec_w2'] = conv_w((3, 3, 2 * B, 2 * B)); p['dec_b2'] = conv_b(2 * B, 9 * 2 * B)
    return p


# ---- pure-JAX reference (sanity check only) ---------------------------------
def ref_forward(x_nchw, p, A_h, A_w):
    hp = jax.lax.Precision.HIGHEST
    x = jnp.transpose(x_nchw, (0, 2, 3, 1))

    def bn(v, prm):
        g, b, m, s = prm
        return (v - m) / jnp.sqrt(s + EPS) * g + b

    def conv3(v, w, b):
        return lax.conv_general_dilated(v, w, (1, 1), 'SAME',
                                        dimension_numbers=('NHWC', 'HWIO', 'NHWC'),
                                        precision=hp) + b

    proj = jnp.einsum('nhwc,cd->nhwd', bn(x, p['bn_proj']), p['proj_w'],
                      precision=hp) + p['proj_b']
    t = jax.nn.relu(conv3(bn(proj, p['bn_enc1']), p['enc_w1'], p['enc_b1']))
    enc = conv3(bn(t, p['bn_enc2']), p['enc_w2'], p['enc_b2']) + proj
    n_, h_, w_, b_ = enc.shape
    pooled = jnp.max(enc.reshape(n_, h_ // 2, 2, w_ // 2, 2, b_), axis=(2, 4))
    t = jax.nn.relu(conv3(bn(pooled, p['bn_bot1']), p['bot_w1'], p['bot_b1']))
    processed = jax.nn.relu(conv3(bn(t, p['bn_bot2']), p['bot_w2'], p['bot_b2']) + pooled)
    up = jnp.einsum('Hh,nhwc->nHwc', A_h, processed, precision=hp)
    up = jnp.einsum('Ww,nHwc->nHWc', A_w, up, precision=hp)
    skipped = jnp.concatenate([enc, up], axis=-1)
    t = jax.nn.relu(conv3(bn(skipped, p['bn_dec1']), p['dec_w1'], p['dec_b1']))
    dec = conv3(bn(t, p['bn_dec2']), p['dec_w2'], p['dec_b2'])
    cfm = dec[..., :b_] * dec[..., b_:]
    return jnp.transpose(cfm, (0, 3, 1, 2))


if __name__ == "__main__":
    key = jax.random.PRNGKey(0)
    kx, kp = jax.random.split(key)
    x = jax.random.normal(kx, (N, C_IN, H, W), F32)     # NCHW, like PyTorch
    params = init_params(kp)
    prep = prepare_params(params)

    fwd = jax.jit(lambda v: pallas_forward(v, prep))
    out = jax.block_until_ready(fwd(x))
    assert out.shape == (N, B, H, W), out.shape

    A_h = jnp.asarray(_interp_matrix_np(H, H // 2))
    A_w = jnp.asarray(_interp_matrix_np(W, W // 2))
    ref = ref_forward(x, params, A_h, A_w)
    err = float(jnp.max(jnp.abs(out - ref)))
    if not np.isfinite(err) or err > 2e-3:
        raise AssertionError(f"Pallas output mismatch vs reference: max|err|={err}")
    print("KERNEL_OK")
</pallas_src>

<mosaic_0001>
module attributes {stable_mosaic.version = 11 : i64} {
  func.func @_fused_kernel(%arg0: i32, %arg1: memref<1x16x64xf32, #tpu.memory_space<vmem>>, %arg2: memref<64x128xf32, #tpu.memory_space<vmem>>, %arg3: memref<1x128xf32, #tpu.memory_space<vmem>>, %arg4: memref<1x128xf32, #tpu.memory_space<vmem>>, %arg5: memref<1x128xf32, #tpu.memory_space<vmem>>, %arg6: memref<3x128x128xf32, #tpu.memory_space<vmem>>, %arg7: memref<1x128xf32, #tpu.memory_space<vmem>>, %arg8: memref<1x128xf32, #tpu.memory_space<vmem>>, %arg9: memref<1x128xf32, #tpu.memory_space<vmem>>, %arg10: memref<3x128x128xf32, #tpu.memory_space<vmem>>, %arg11: memref<1x128xf32, #tpu.memory_space<vmem>>, %arg12: memref<8x16xf32, #tpu.memory_space<vmem>>, %arg13: memref<8x16xf32, #tpu.memory_space<vmem>>, %arg14: memref<128x64xf32, #tpu.memory_space<vmem>>, %arg15: memref<128x64xf32, #tpu.memory_space<vmem>>, %arg16: memref<1x64xf32, #tpu.memory_space<vmem>>, %arg17: memref<1x64xf32, #tpu.memory_space<vmem>>, %arg18: memref<3x64x128xf32, #tpu.memory_space<vmem>>, %arg19: memref<1x128xf32, #tpu.memory_space<vmem>>, %arg20: memref<1x128xf32, #tpu.memory_space<vmem>>, %arg21: memref<1x128xf32, #tpu.memory_space<vmem>>, %arg22: memref<3x128x64xf32, #tpu.memory_space<vmem>>, %arg23: memref<1x64xf32, #tpu.memory_space<vmem>>, %arg24: memref<16x8xf32, #tpu.memory_space<vmem>>, %arg25: memref<64x128xf32, #tpu.memory_space<vmem>>, %arg26: memref<1x128xf32, #tpu.memory_space<vmem>>, %arg27: memref<1x128xf32, #tpu.memory_space<vmem>>, %arg28: memref<1x128xf32, #tpu.memory_space<vmem>>, %arg29: memref<1x128xf32, #tpu.memory_space<vmem>>, %arg30: memref<3x128x256xf32, #tpu.memory_space<vmem>>, %arg31: memref<3x128x256xf32, #tpu.memory_space<vmem>>, %arg32: memref<1x256xf32, #tpu.memory_space<vmem>>, %arg33: memref<1x256xf32, #tpu.memory_space<vmem>>, %arg34: memref<1x256xf32, #tpu.memory_space<vmem>>, %arg35: memref<3x256x256xf32, #tpu.memory_space<vmem>>, %arg36: memref<1x256xf32, #tpu.memory_space<vmem>>, %arg37: memref<256x128xf32, #tpu.memory_space<vmem>>, %arg38: memref<256x128xf32, #tpu.memory_space<vmem>>, %arg39: memref<16x16xf32, #tpu.memory_space<vmem>>, %arg40: memref<16x16xf32, #tpu.memory_space<vmem>>, %arg41: memref<8x8xf32, #tpu.memory_space<vmem>>, %arg42: memref<8x8xf32, #tpu.memory_space<vmem>>, %arg43: memref<1x16x128xf32, #tpu.memory_space<vmem>>) attributes {dimension_semantics = [#tpu.dimension_semantics<parallel>], iteration_bounds = array<i64: 2>, scalar_prefetch = 0 : i64, scratch_operands = 0 : i64, tpu.core_type = #tpu.core_type<tc>, window_params = [{transform_indices = @transform_0, window_bounds = array<i64: 1, 16, 64>}, {pipeline_mode = #tpu.pipeline_mode<synchronous>, transform_indices = @transform_1, window_bounds = array<i64: 64, 128>}, {pipeline_mode = #tpu.pipeline_mode<synchronous>, transform_indices = @transform_2, window_bounds = array<i64: 1, 128>}, {pipeline_mode = #tpu.pipeline_mode<synchronous>, transform_indices = @transform_3, window_bounds = array<i64: 1, 128>}, {pipeline_mode = #tpu.pipeline_mode<synchronous>, transform_indices = @transform_4, window_bounds = array<i64: 1, 128>}, {pipeline_mode = #tpu.pipeline_mode<synchronous>, transform_indices = @transform_5, window_bounds = array<i64: 3, 128, 128>}, {pipeline_mode = #tpu.pipeline_mode<synchronous>, transform_indices = @transform_6, window_bounds = array<i64: 1, 128>}, {pipeline_mode = #tpu.pipeline_mode<synchronous>, transform_indices = @transform_7, window_bounds = array<i64: 1, 128>}, {pipeline_mode = #tpu.pipeline_mode<synchronous>, transform_indices = @transform_8, window_bounds = array<i64: 1, 128>}, {pipeline_mode = #tpu.pipeline_mode<synchronous>, transform_indices = @transform_9, window_bounds = array<i64: 3, 128, 128>}, {pipeline_mode = #tpu.pipeline_mode<synchronous>, transform_indices = @transform_10, window_bounds = array<i64: 1, 128>}, {pipeline_mode = #tpu.pipeline_mode<synchronous>, transform_indices = @transform_11, window_bounds = array<i64: 8, 16>}, {pipeline_mode = #tpu.pipeline_mode<synchronous>, transform_indices = @transform_12, window_bounds = array<i64: 8, 16>}, {pipeline_mode = #tpu.pipeline_mode<synchronous>, transform_indices = @transform_13, window_bounds = array<i64: 128, 64>}, {pipeline_mode = #tpu.pipeline_mode<synchronous>, transform_indices = @transform_14, window_bounds = array<i64: 128, 64>}, {pipeline_mode = #tpu.pipeline_mode<synchronous>, transform_indices = @transform_15, window_bounds = array<i64: 1, 64>}, {pipeline_mode = #tpu.pipeline_mode<synchronous>, transform_indices = @transform_16, window_bounds = array<i64: 1, 64>}, {pipeline_mode = #tpu.pipeline_mode<synchronous>, transform_indices = @transform_17, window_bounds = array<i64: 3, 64, 128>}, {pipeline_mode = #tpu.pipeline_mode<synchronous>, transform_indices = @transform_18, window_bounds = array<i64: 1, 128>}, {pipeline_mode = #tpu.pipeline_mode<synchronous>, transform_indices = @transform_19, window_bounds = array<i64: 1, 128>}, {pipeline_mode = #tpu.pipeline_mode<synchronous>, transform_indices = @transform_20, window_bounds = array<i64: 1, 128>}, {pipeline_mode = #tpu.pipeline_mode<synchronous>, transform_indices = @transform_21, window_bounds = array<i64: 3, 128, 64>}, {pipeline_mode = #tpu.pipeline_mode<synchronous>, transform_indices = @transform_22, window_bounds = array<i64: 1, 64>}, {pipeline_mode = #tpu.pipeline_mode<synchronous>, transform_indices = @transform_23, window_bounds = array<i64: 16, 8>}, {pipeline_mode = #tpu.pipeline_mode<synchronous>, transform_indices = @transform_24, window_bounds = array<i64: 64, 128>}, {pipeline_mode = #tpu.pipeline_mode<synchronous>, transform_indices = @transform_25, window_bounds = array<i64: 1, 128>}, {pipeline_mode = #tpu.pipeline_mode<synchronous>, transform_indices = @transform_26, window_bounds = array<i64: 1, 128>}, {pipeline_mode = #tpu.pipeline_mode<synchronous>, transform_indices = @transform_27, window_bounds = array<i64: 1, 128>}, {pipeline_mode = #tpu.pipeline_mode<synchronous>, transform_indices = @transform_28, window_bounds = array<i64: 1, 128>}, {pipeline_mode = #tpu.pipeline_mode<synchronous>, transform_indices = @transform_29, window_bounds = array<i64: 3, 128, 256>}, {pipeline_mode = #tpu.pipeline_mode<synchronous>, transform_indices = @transform_30, window_bounds = array<i64: 3, 128, 256>}, {pipeline_mode = #tpu.pipeline_mode<synchronous>, transform_indices = @transform_31, window_bounds = array<i64: 1, 256>}, {pipeline_mode = #tpu.pipeline_mode<synchronous>, transform_indices = @transform_32, window_bounds = array<i64: 1, 256>}, {pipeline_mode = #tpu.pipeline_mode<synchronous>, transform_indices = @transform_33, window_bounds = array<i64: 1, 256>}, {pipeline_mode = #tpu.pipeline_mode<synchronous>, transform_indices = @transform_34, window_bounds = array<i64: 3, 256, 256>}, {pipeline_mode = #tpu.pipeline_mode<synchronous>, transform_indices = @transform_35, window_bounds = array<i64: 1, 256>}, {pipeline_mode = #tpu.pipeline_mode<synchronous>, transform_indices = @transform_36, window_bounds = array<i64: 256, 128>}, {pipeline_mode = #tpu.pipeline_mode<synchronous>, transform_indices = @transform_37, window_bounds = array<i64: 256, 128>}, {pipeline_mode = #tpu.pipeline_mode<synchronous>, transform_indices = @transform_38, window_bounds = array<i64: 16, 16>}, {pipeline_mode = #tpu.pipeline_mode<synchronous>, transform_indices = @transform_39, window_bounds = array<i64: 16, 16>}, {pipeline_mode = #tpu.pipeline_mode<synchronous>, transform_indices = @transform_40, window_bounds = array<i64: 8, 8>}, {pipeline_mode = #tpu.pipeline_mode<synchronous>, transform_indices = @transform_41, window_bounds = array<i64: 8, 8>}, {transform_indices = @transform_42, window_bounds = array<i64: 1, 16, 128>}]} {
    %c0 = arith.constant 0 : index
    %c0_0 = arith.constant 0 : index
    %c0_1 = arith.constant 0 : index
    %0 = vector.load %arg1[%c0, %c0_0, %c0_1] : memref<1x16x64xf32, #tpu.memory_space<vmem>>, vector<1x16x64xf32>
    %1 = vector.shape_cast %0 : vector<1x16x64xf32> to vector<16x64xf32>
    %c0_2 = arith.constant 0 : index
    %c0_3 = arith.constant 0 : index
    %2 = vector.load %arg2[%c0_2, %c0_3] : memref<64x128xf32, #tpu.memory_space<vmem>>, vector<64x128xf32>
    %cst = arith.constant dense<0.000000e+00> : vector<16x128xf32>
    %3 = tpu.matmul %1, %2, %cst {dimension_numbers = #tpu.dot_dimension_numbers<[1], [0], [0], [1], [0, 0, 1, 1], [], []>} : vector<16x64xf32>, vector<64x128xf32>, vector<16x128xf32> -> vector<16x128xf32>
    %c0_4 = arith.constant 0 : index
    %c0_5 = arith.constant 0 : index
    %4 = vector.load %arg3[%c0_4, %c0_5] : memref<1x128xf32, #tpu.memory_space<vmem>>, vector<1x128xf32>
    %5 = vector.broadcast %4 : vector<1x128xf32> to vector<16x128xf32>
    %6 = arith.addf %3, %5 : vector<16x128xf32>
    %c0_6 = arith.constant 0 : index
    %c0_7 = arith.constant 0 : index
    %7 = vector.load %arg4[%c0_6, %c0_7] : memref<1x128xf32, #tpu.memory_space<vmem>>, vector<1x128xf32>
    %8 = vector.broadcast %7 : vector<1x128xf32> to vector<16x128xf32>
    %9 = arith.mulf %6, %8 : vector<16x128xf32>
    %c0_8 = arith.constant 0 : index
    %c0_9 = arith.constant 0 : index
    %10 = vector.load %arg5[%c0_8, %c0_9] : memref<1x128xf32, #tpu.memory_space<vmem>>, vector<1x128xf32>
    %11 = vector.broadcast %10 : vector<1x128xf32> to vector<16x128xf32>
    %12 = arith.addf %9, %11 : vector<16x128xf32>
    %c0_10 = arith.constant 0 : index
    %c0_11 = arith.constant 0 : index
    %13 = vector.load %arg39[%c0_10, %c0_11] : memref<16x16xf32, #tpu.memory_space<vmem>>, vector<16x16xf32>
    %cst_12 = arith.constant dense<0.000000e+00> : vector<16x128xf32>
    %14 = tpu.matmul %13, %12, %cst_12 {dimension_numbers = #tpu.dot_dimension_numbers<[1], [0], [0], [1], [0, 0, 1, 1], [], []>} : vector<16x16xf32>, vector<16x128xf32>, vector<16x128xf32> -> vector<16x128xf32>
    %c0_13 = arith.constant 0 : index
    %c0_14 = arith.constant 0 : index
    %c0_15 = arith.constant 0 : index
    %15 = vector.load %arg6[%c0_13, %c0_14, %c0_15] : memref<3x128x128xf32, #tpu.memory_space<vmem>>, vector<1x128x128xf32>
    %16 = vector.shape_cast %15 : vector<1x128x128xf32> to vector<128x128xf32>
    %cst_16 = arith.constant dense<0.000000e+00> : vector<16x128xf32>
    %17 = tpu.matmul %14, %16, %cst_16 {dimension_numbers = #tpu.dot_dimension_numbers<[1], [0], [0], [1], [0, 0, 1, 1], [], []>} : vector<16x128xf32>, vector<128x128xf32>, vector<16x128xf32> -> vector<16x128xf32>
    %c1 = arith.constant 1 : index
    %c0_17 = arith.constant 0 : index
    %c0_18 = arith.constant 0 : index
    %18 = vector.load %arg6[%c1, %c0_17, %c0_18] : memref<3x128x128xf32, #tpu.memory_space<vmem>>, vector<1x128x128xf32>
    %19 = vector.shape_cast %18 : vector<1x128x128xf32> to vector<128x128xf32>
    %cst_19 = arith.constant dense<0.000000e+00> : vector<16x128xf32>
    %20 = tpu.matmul %12, %19, %cst_19 {dimension_numbers = #tpu.dot_dimension_numbers<[1], [0], [0], [1], [0, 0, 1, 1], [], []>} : vector<16x128xf32>, vector<128x128xf32>, vector<16x128xf32> -> vector<16x128xf32>
    %21 = arith.addf %17, %20 : vector<16x128xf32>
    %c0_20 = arith.constant 0 : index
    %c0_21 = arith.constant 0 : index
    %22 = vector.load %arg40[%c0_20, %c0_21] : memref<16x16xf32, #tpu.memory_space<vmem>>, vector<16x16xf32>
    %cst_22 = arith.constant dense<0.000000e+00> : vector<16x128xf32>
    %23 = tpu.matmul %22, %12, %cst_22 {dimension_numbers = #tpu.dot_dimension_numbers<[1], [0], [0], [1], [0, 0, 1, 1], [], []>} : vector<16x16xf32>, vector<16x128xf32>, vector<16x128xf32> -> vector<16x128xf32>
    %c2 = arith.constant 2 : index
    %c0_23 = arith.constant 0 : index
    %c0_24 = arith.constant 0 : index
    %24 = vector.load %arg6[%c2, %c0_23, %c0_24] : memref<3x128x128xf32, #tpu.memory_space<vmem>>, vector<1x128x128xf32>
    %25 = vector.shape_cast %24 : vector<1x128x128xf32> to vector<128x128xf32>
    %cst_25 = arith.constant dense<0.000000e+00> : vector<16x128xf32>
    %26 = tpu.matmul %23, %25, %cst_25 {dimension_numbers = #tpu.dot_dimension_numbers<[1], [0], [0], [1], [0, 0, 1, 1], [], []>} : vector<16x128xf32>, vector<128x128xf32>, vector<16x128xf32> -> vector<16x128xf32>
    %27 = arith.addf %21, %26 : vector<16x128xf32>
    %c0_26 = arith.constant 0 : index
    %c0_27 = arith.constant 0 : index
    %28 = vector.load %arg7[%c0_26, %c0_27] : memref<1x128xf32, #tpu.memory_space<vmem>>, vector<1x128xf32>
    %29 = vector.broadcast %28 : vector<1x128xf32> to vector<16x128xf32>
    %30 = arith.addf %27, %29 : vector<16x128xf32>
    %cst_28 = arith.constant 0.000000e+00 : f32
    %31 = vector.broadcast %cst_28 : f32 to vector<16x128xf32>
    %32 = arith.maximumf %30, %31 : vector<16x128xf32>
    %c0_29 = arith.constant 0 : index
    %c0_30 = arith.constant 0 : index
    %33 = vector.load %arg8[%c0_29, %c0_30] : memref<1x128xf32, #tpu.memory_space<vmem>>, vector<1x128xf32>
    %34 = vector.broadcast %33 : vector<1x128xf32> to vector<16x128xf32>
    %35 = arith.mulf %32, %34 : vector<16x128xf32>
    %c0_31 = arith.constant 0 : index
    %c0_32 = arith.constant 0 : index
    %36 = vector.load %arg9[%c0_31, %c0_32] : memref<1x128xf32, #tpu.memory_space<vmem>>, vector<1x128xf32>
    %37 = vector.broadcast %36 : vector<1x128xf32> to vector<16x128xf32>
    %38 = arith.addf %35, %37 : vector<16x128xf32>
    %c0_33 = arith.constant 0 : index
    %c0_34 = arith.constant 0 : index
    %39 = vector.load %arg39[%c0_33, %c0_34] : memref<16x16xf32, #tpu.memory_space<vmem>>, vector<16x16xf32>
    %cst_35 = arith.constant dense<0.000000e+00> : vector<16x128xf32>
    %40 = tpu.matmul %39, %38, %cst_35 {dimension_numbers = #tpu.dot_dimension_numbers<[1], [0], [0], [1], [0, 0, 1, 1], [], []>} : vector<16x16xf32>, vector<16x128xf32>, vector<16x128xf32> -> vector<16x128xf32>
    %c0_36 = arith.constant 0 : index
    %c0_37 = arith.constant 0 : index
    %c0_38 = arith.constant 0 : index
    %41 = vector.load %arg10[%c0_36, %c0_37, %c0_38] : memref<3x128x128xf32, #tpu.memory_space<vmem>>, vector<1x128x128xf32>
    %42 = vector.shape_cast %41 : vector<1x128x128xf32> to vector<128x128xf32>
    %cst_39 = arith.constant dense<0.000000e+00> : vector<16x128xf32>
    %43 = tpu.matmul %40, %42, %cst_39 {dimension_numbers = #tpu.dot_dimension_numbers<[1], [0], [0], [1], [0, 0, 1, 1], [], []>} : vector<16x128xf32>, vector<128x128xf32>, vector<16x128xf32> -> vector<16x128xf32>
    %c1_40 = arith.constant 1 : index
    %c0_41 = arith.constant 0 : index
    %c0_42 = arith.constant 0 : index
    %44 = vector.load %arg10[%c1_40, %c0_41, %c0_42] : memref<3x128x128xf32, #tpu.memory_space<vmem>>, vector<1x128x128xf32>
    %45 = vector.shape_cast %44 : vector<1x128x128xf32> to vector<128x128xf32>
    %cst_43 = arith.constant dense<0.000000e+00> : vector<16x128xf32>
    %46 = tpu.matmul %38, %45, %cst_43 {dimension_numbers = #tpu.dot_dimension_numbers<[1], [0], [0], [1], [0, 0, 1, 1], [], []>} : vector<16x128xf32>, vector<128x128xf32>, vector<16x128xf32> -> vector<16x128xf32>
    %47 = arith.addf %43, %46 : vector<16x128xf32>
    %c0_44 = arith.constant 0 : index
    %c0_45 = arith.constant 0 : index
    %48 = vector.load %arg40[%c0_44, %c0_45] : memref<16x16xf32, #tpu.memory_space<vmem>>, vector<16x16xf32>
    %cst_46 = arith.constant dense<0.000000e+00> : vector<16x128xf32>
    %49 = tpu.matmul %48, %38, %cst_46 {dimension_numbers = #tpu.dot_dimension_numbers<[1], [0], [0], [1], [0, 0, 1, 1], [], []>} : vector<16x16xf32>, vector<16x128xf32>, vector<16x128xf32> -> vector<16x128xf32>
    %c2_47 = arith.constant 2 : index
    %c0_48 = arith.constant 0 : index
    %c0_49 = arith.constant 0 : index
    %50 = vector.load %arg10[%c2_47, %c0_48, %c0_49] : memref<3x128x128xf32, #tpu.memory_space<vmem>>, vector<1x128x128xf32>
    %51 = vector.shape_cast %50 : vector<1x128x128xf32> to vector<128x128xf32>
    %cst_50 = arith.constant dense<0.000000e+00> : vector<16x128xf32>
    %52 = tpu.matmul %49, %51, %cst_50 {dimension_numbers = #tpu.dot_dimension_numbers<[1], [0], [0], [1], [0, 0, 1, 1], [], []>} : vector<16x128xf32>, vector<128x128xf32>, vector<16x128xf32> -> vector<16x128xf32>
    %53 = arith.addf %47, %52 : vector<16x128xf32>
    %c0_51 = arith.constant 0 : index
    %c0_52 = arith.constant 0 : index
    %54 = vector.load %arg11[%c0_51, %c0_52] : memref<1x128xf32, #tpu.memory_space<vmem>>, vector<1x128xf32>
    %55 = vector.broadcast %54 : vector<1x128xf32> to vector<16x128xf32>
    %56 = arith.addf %53, %55 : vector<16x128xf32>
    %57 = arith.addf %56, %6 : vector<16x128xf32>
    %c0_53 = arith.constant 0 : index
    %c0_54 = arith.constant 0 : index
    %58 = vector.load %arg12[%c0_53, %c0_54] : memref<8x16xf32, #tpu.memory_space<vmem>>, vector<8x16xf32>
    %cst_55 = arith.constant dense<0.000000e+00> : vector<8x128xf32>
    %59 = tpu.matmul %58, %57, %cst_55 {dimension_numbers = #tpu.dot_dimension_numbers<[1], [0], [0], [1], [0, 0, 1, 1], [], []>} : vector<8x16xf32>, vector<16x128xf32>, vector<8x128xf32> -> vector<8x128xf32>
    %c0_56 = arith.constant 0 : index
    %c0_57 = arith.constant 0 : index
    %60 = vector.load %arg13[%c0_56, %c0_57] : memref<8x16xf32, #tpu.memory_space<vmem>>, vector<8x16xf32>
    %cst_58 = arith.constant dense<0.000000e+00> : vector<8x128xf32>
    %61 = tpu.matmul %60, %57, %cst_58 {dimension_numbers = #tpu.dot_dimension_numbers<[1], [0], [0], [1], [0, 0, 1, 1], [], []>} : vector<8x16xf32>, vector<16x128xf32>, vector<8x128xf32> -> vector<8x128xf32>
    %62 = arith.maximumf %59, %61 : vector<8x128xf32>
    %c0_59 = arith.constant 0 : index
    %c0_60 = arith.constant 0 : index
    %63 = vector.load %arg14[%c0_59, %c0_60] : memref<128x64xf32, #tpu.memory_space<vmem>>, vector<128x64xf32>
    %cst_61 = arith.constant dense<0.000000e+00> : vector<8x64xf32>
    %64 = tpu.matmul %62, %63, %cst_61 {dimension_numbers = #tpu.dot_dimension_numbers<[1], [0], [0], [1], [0, 0, 1, 1], [], []>} : vector<8x128xf32>, vector<128x64xf32>, vector<8x64xf32> -> vector<8x64xf32>
    %c0_62 = arith.constant 0 : index
    %c0_63 = arith.constant 0 : index
    %65 = vector.load %arg15[%c0_62, %c0_63] : memref<128x64xf32, #tpu.memory_space<vmem>>, vector<128x64xf32>
    %cst_64 = arith.constant dense<0.000000e+00> : vector<8x64xf32>
    %66 = tpu.matmul %62, %65, %cst_64 {dimension_numbers = #tpu.dot_dimension_numbers<[1], [0], [0], [1], [0, 0, 1, 1], [], []>} : vector<8x128xf32>, vector<128x64xf32>, vector<8x64xf32> -> vector<8x64xf32>
    %67 = arith.maximumf %64, %66 : vector<8x64xf32>
    %c0_65 = arith.constant 0 : index
    %c0_66 = arith.constant 0 : index
    %68 = vector.load %arg16[%c0_65, %c0_66] : memref<1x64xf32, #tpu.memory_space<vmem>>, vector<1x64xf32>
    %69 = vector.broadcast %68 : vector<1x64xf32> to vector<8x64xf32>
    %70 = arith.mulf %67, %69 : vector<8x64xf32>
    %c0_67 = arith.constant 0 : index
    %c0_68 = arith.constant 0 : index
    %71 = vector.load %arg17[%c0_67, %c0_68] : memref<1x64xf32, #tpu.memory_space<vmem>>, vector<1x64xf32>
    %72 = vector.broadcast %71 : vector<1x64xf32> to vector<8x64xf32>
    %73 = arith.addf %70, %72 : vector<8x64xf32>
    %c0_69 = arith.constant 0 : index
    %c0_70 = arith.constant 0 : index
    %74 = vector.load %arg41[%c0_69, %c0_70] : memref<8x8xf32, #tpu.memory_space<vmem>>, vector<8x8xf32>
    %cst_71 = arith.constant dense<0.000000e+00> : vector<8x64xf32>
    %75 = tpu.matmul %74, %73, %cst_71 {dimension_numbers = #tpu.dot_dimension_numbers<[1], [0], [0], [1], [0, 0, 1, 1], [], []>} : vector<8x8xf32>, vector<8x64xf32>, vector<8x64xf32> -> vector<8x64xf32>
    %c0_72 = arith.constant 0 : index
    %c0_73 = arith.constant 0 : index
    %c0_74 = arith.constant 0 : index
    %76 = vector.load %arg18[%c0_72, %c0_73, %c0_74] : memref<3x64x128xf32, #tpu.memory_space<vmem>>, vector<1x64x128xf32>
    %77 = vector.shape_cast %76 : vector<1x64x128xf32> to vector<64x128xf32>
    %cst_75 = arith.constant dense<0.000000e+00> : vector<8x128xf32>
    %78 = tpu.matmul %75, %77, %cst_75 {dimension_numbers = #tpu.dot_dimension_numbers<[1], [0], [0], [1], [0, 0, 1, 1], [], []>} : vector<8x64xf32>, vector<64x128xf32>, vector<8x128xf32> -> vector<8x128xf32>
    %c1_76 = arith.constant 1 : index
    %c0_77 = arith.constant 0 : index
    %c0_78 = arith.constant 0 : index
    %79 = vector.load %arg18[%c1_76, %c0_77, %c0_78] : memref<3x64x128xf32, #tpu.memory_space<vmem>>, vector<1x64x128xf32>
    %80 = vector.shape_cast %79 : vector<1x64x128xf32> to vector<64x128xf32>
    %cst_79 = arith.constant dense<0.000000e+00> : vector<8x128xf32>
    %81 = tpu.matmul %73, %80, %cst_79 {dimension_numbers = #tpu.dot_dimension_numbers<[1], [0], [0], [1], [0, 0, 1, 1], [], []>} : vector<8x64xf32>, vector<64x128xf32>, vector<8x128xf32> -> vector<8x128xf32>
    %82 = arith.addf %78, %81 : vector<8x128xf32>
    %c0_80 = arith.constant 0 : index
    %c0_81 = arith.constant 0 : index
    %83 = vector.load %arg42[%c0_80, %c0_81] : memref<8x8xf32, #tpu.memory_space<vmem>>, vector<8x8xf32>
    %cst_82 = arith.constant dense<0.000000e+00> : vector<8x64xf32>
    %84 = tpu.matmul %83, %73, %cst_82 {dimension_numbers = #tpu.dot_dimension_numbers<[1], [0], [0], [1], [0, 0, 1, 1], [], []>} : vector<8x8xf32>, vector<8x64xf32>, vector<8x64xf32> -> vector<8x64xf32>
    %c2_83 = arith.constant 2 : index
    %c0_84 = arith.constant 0 : index
    %c0_85 = arith.constant 0 : index
    %85 = vector.load %arg18[%c2_83, %c0_84, %c0_85] : memref<3x64x128xf32, #tpu.memory_space<vmem>>, vector<1x64x128xf32>
    %86 = vector.shape_cast %85 : vector<1x64x128xf32> to vector<64x128xf32>
    %cst_86 = arith.constant dense<0.000000e+00> : vector<8x128xf32>
    %87 = tpu.matmul %84, %86, %cst_86 {dimension_numbers = #tpu.dot_dimension_numbers<[1], [0], [0], [1], [0, 0, 1, 1], [], []>} : vector<8x64xf32>, vector<64x128xf32>, vector<8x128xf32> -> vector<8x128xf32>
    %88 = arith.addf %82, %87 : vector<8x128xf32>
    %c0_87 = arith.constant 0 : index
    %c0_88 = arith.constant 0 : index
    %89 = vector.load %arg19[%c0_87, %c0_88] : memref<1x128xf32, #tpu.memory_space<vmem>>, vector<1x128xf32>
    %90 = vector.broadcast %89 : vector<1x128xf32> to vector<8x128xf32>
    %91 = arith.addf %88, %90 : vector<8x128xf32>
    %cst_89 = arith.constant 0.000000e+00 : f32
    %92 = vector.broadcast %cst_89 : f32 to vector<8x128xf32>
    %93 = arith.maximumf %91, %92 : vector<8x128xf32>
    %c0_90 = arith.constant 0 : index
    %c0_91 = arith.constant 0 : index
    %94 = vector.load %arg20[%c0_90, %c0_91] : memref<1x128xf32, #tpu.memory_space<vmem>>, vector<1x128xf32>
    %95 = vector.broadcast %94 : vector<1x128xf32> to vector<8x128xf32>
    %96 = arith.mulf %93, %95 : vector<8x128xf32>
    %c0_92 = arith.constant 0 : index
    %c0_93 = arith.constant 0 : index
    %97 = vector.load %arg21[%c0_92, %c0_93] : memref<1x128xf32, #tpu.memory_space<vmem>>, vector<1x128xf32>
    %98 = vector.broadcast %97 : vector<1x128xf32> to vector<8x128xf32>
    %99 = arith.addf %96, %98 : vector<8x128xf32>
    %c0_94 = arith.constant 0 : index
    %c0_95 = arith.constant 0 : index
    %100 = vector.load %arg41[%c0_94, %c0_95] : memref<8x8xf32, #tpu.memory_space<vmem>>, vector<8x8xf32>
    %cst_96 = arith.constant dense<0.000000e+00> : vector<8x128xf32>
    %101 = tpu.matmul %100, %99, %cst_96 {dimension_numbers = #tpu.dot_dimension_numbers<[1], [0], [0], [1], [0, 0, 1, 1], [], []>} : vector<8x8xf32>, vector<8x128xf32>, vector<8x128xf32> -> vector<8x128xf32>
    %c0_97 = arith.constant 0 : index
    %c0_98 = arith.constant 0 : index
    %c0_99 = arith.constant 0 : index
    %102 = vector.load %arg22[%c0_97, %c0_98, %c0_99] : memref<3x128x64xf32, #tpu.memory_space<vmem>>, vector<1x128x64xf32>
    %103 = vector.shape_cast %102 : vector<1x128x64xf32> to vector<128x64xf32>
    %cst_100 = arith.constant dense<0.000000e+00> : vector<8x64xf32>
    %104 = tpu.matmul %101, %103, %cst_100 {dimension_numbers = #tpu.dot_dimension_numbers<[1], [0], [0], [1], [0, 0, 1, 1], [], []>} : vector<8x128xf32>, vector<128x64xf32>, vector<8x64xf32> -> vector<8x64xf32>
    %c1_101 = arith.constant 1 : index
    %c0_102 = arith.constant 0 : index
    %c0_103 = arith.constant 0 : index
    %105 = vector.load %arg22[%c1_101, %c0_102, %c0_103] : memref<3x128x64xf32, #tpu.memory_space<vmem>>, vector<1x128x64xf32>
    %106 = vector.shape_cast %105 : vector<1x128x64xf32> to vector<128x64xf32>
    %cst_104 = arith.constant dense<0.000000e+00> : vector<8x64xf32>
    %107 = tpu.matmul %99, %106, %cst_104 {dimension_numbers = #tpu.dot_dimension_numbers<[1], [0], [0], [1], [0, 0, 1, 1], [], []>} : vector<8x128xf32>, vector<128x64xf32>, vector<8x64xf32> -> vector<8x64xf32>
    %108 = arith.addf %104, %107 : vector<8x64xf32>
    %c0_105 = arith.constant 0 : index
    %c0_106 = arith.constant 0 : index
    %109 = vector.load %arg42[%c0_105, %c0_106] : memref<8x8xf32, #tpu.memory_space<vmem>>, vector<8x8xf32>
    %cst_107 = arith.constant dense<0.000000e+00> : vector<8x128xf32>
    %110 = tpu.matmul %109, %99, %cst_107 {dimension_numbers = #tpu.dot_dimension_numbers<[1], [0], [0], [1], [0, 0, 1, 1], [], []>} : vector<8x8xf32>, vector<8x128xf32>, vector<8x128xf32> -> vector<8x128xf32>
    %c2_108 = arith.constant 2 : index
    %c0_109 = arith.constant 0 : index
    %c0_110 = arith.constant 0 : index
    %111 = vector.load %arg22[%c2_108, %c0_109, %c0_110] : memref<3x128x64xf32, #tpu.memory_space<vmem>>, vector<1x128x64xf32>
    %112 = vector.shape_cast %111 : vector<1x128x64xf32> to vector<128x64xf32>
    %cst_111 = arith.constant dense<0.000000e+00> : vector<8x64xf32>
    %113 = tpu.matmul %110, %112, %cst_111 {dimension_numbers = #tpu.dot_dimension_numbers<[1], [0], [0], [1], [0, 0, 1, 1], [], []>} : vector<8x128xf32>, vector<128x64xf32>, vector<8x64xf32> -> vector<8x64xf32>
    %114 = arith.addf %108, %113 : vector<8x64xf32>
    %c0_112 = arith.constant 0 : index
    %c0_113 = arith.constant 0 : index
    %115 = vector.load %arg23[%c0_112, %c0_113] : memref<1x64xf32, #tpu.memory_space<vmem>>, vector<1x64xf32>
    %116 = vector.broadcast %115 : vector<1x64xf32> to vector<8x64xf32>
    %117 = arith.addf %114, %116 : vector<8x64xf32>
    %118 = arith.addf %117, %67 : vector<8x64xf32>
    %cst_114 = arith.constant 0.000000e+00 : f32
    %119 = vector.broadcast %cst_114 : f32 to vector<8x64xf32>
    %120 = arith.maximumf %118, %119 : vector<8x64xf32>
    %c0_115 = arith.constant 0 : index
    %c0_116 = arith.constant 0 : index
    %121 = vector.load %arg24[%c0_115, %c0_116] : memref<16x8xf32, #tpu.memory_space<vmem>>, vector<16x8xf32>
    %cst_117 = arith.constant dense<0.000000e+00> : vector<16x64xf32>
    %122 = tpu.matmul %121, %120, %cst_117 {dimension_numbers = #tpu.dot_dimension_numbers<[1], [0], [0], [1], [0, 0, 1, 1], [], []>} : vector<16x8xf32>, vector<8x64xf32>, vector<16x64xf32> -> vector<16x64xf32>
    %c0_118 = arith.constant 0 : index
    %c0_119 = arith.constant 0 : index
    %123 = vector.load %arg25[%c0_118, %c0_119] : memref<64x128xf32, #tpu.memory_space<vmem>>, vector<64x128xf32>
    %cst_120 = arith.constant dense<0.000000e+00> : vector<16x128xf32>
    %124 = tpu.matmul %122, %123, %cst_120 {dimension_numbers = #tpu.dot_dimension_numbers<[1], [0], [0], [1], [0, 0, 1, 1], [], []>} : vector<16x64xf32>, vector<64x128xf32>, vector<16x128xf32> -> vector<16x128xf32>
    %c0_121 = arith.constant 0 : index
    %c0_122 = arith.constant 0 : index
    %125 = vector.load %arg26[%c0_121, %c0_122] : memref<1x128xf32, #tpu.memory_space<vmem>>, vector<1x128xf32>
    %126 = vector.broadcast %125 : vector<1x128xf32> to vector<16x128xf32>
    %127 = arith.mulf %57, %126 : vector<16x128xf32>
    %c0_123 = arith.constant 0 : index
    %c0_124 = arith.constant 0 : index
    %128 = vector.load %arg27[%c0_123, %c0_124] : memref<1x128xf32, #tpu.memory_space<vmem>>, vector<1x128xf32>
    %129 = vector.broadcast %128 : vector<1x128xf32> to vector<16x128xf32>
    %130 = arith.addf %127, %129 : vector<16x128xf32>
    %c0_125 = arith.constant 0 : index
    %c0_126 = arith.constant 0 : index
    %131 = vector.load %arg39[%c0_125, %c0_126] : memref<16x16xf32, #tpu.memory_space<vmem>>, vector<16x16xf32>
    %cst_127 = arith.constant dense<0.000000e+00> : vector<16x128xf32>
    %132 = tpu.matmul %131, %130, %cst_127 {dimension_numbers = #tpu.dot_dimension_numbers<[1], [0], [0], [1], [0, 0, 1, 1], [], []>} : vector<16x16xf32>, vector<16x128xf32>, vector<16x128xf32> -> vector<16x128xf32>
    %c0_128 = arith.constant 0 : index
    %c0_129 = arith.constant 0 : index
    %c0_130 = arith.constant 0 : index
    %133 = vector.load %arg30[%c0_128, %c0_129, %c0_130] : memref<3x128x256xf32, #tpu.memory_space<vmem>>, vector<1x128x256xf32>
    %134 = vector.shape_cast %133 : vector<1x128x256xf32> to vector<128x256xf32>
    %cst_131 = arith.constant dense<0.000000e+00> : vector<16x256xf32>
    %135 = tpu.matmul %132, %134, %cst_131 {dimension_numbers = #tpu.dot_dimension_numbers<[1], [0], [0], [1], [0, 0, 1, 1], [], []>} : vector<16x128xf32>, vector<128x256xf32>, vector<16x256xf32> -> vector<16x256xf32>
    %c1_132 = arith.constant 1 : index
    %c0_133 = arith.constant 0 : index
    %c0_134 = arith.constant 0 : index
    %136 = vector.load %arg30[%c1_132, %c0_133, %c0_134] : memref<3x128x256xf32, #tpu.memory_space<vmem>>, vector<1x128x256xf32>
    %137 = vector.shape_cast %136 : vector<1x128x256xf32> to vector<128x256xf32>
    %cst_135 = arith.constant dense<0.000000e+00> : vector<16x256xf32>
    %138 = tpu.matmul %130, %137, %cst_135 {dimension_numbers = #tpu.dot_dimension_numbers<[1], [0], [0], [1], [0, 0, 1, 1], [], []>} : vector<16x128xf32>, vector<128x256xf32>, vector<16x256xf32> -> vector<16x256xf32>
    %139 = arith.addf %135, %138 : vector<16x256xf32>
    %c0_136 = arith.constant 0 : index
    %c0_137 = arith.constant 0 : index
    %140 = vector.load %arg40[%c0_136, %c0_137] : memref<16x16xf32, #tpu.memory_space<vmem>>, vector<16x16xf32>
    %cst_138 = arith.constant dense<0.000000e+00> : vector<16x128xf32>
    %141 = tpu.matmul %140, %130, %cst_138 {dimension_numbers = #tpu.dot_dimension_numbers<[1], [0], [0], [1], [0, 0, 1, 1], [], []>} : vector<16x16xf32>, vector<16x128xf32>, vector<16x128xf32> -> vector<16x128xf32>
    %c2_139 = arith.constant 2 : index
    %c0_140 = arith.constant 0 : index
    %c0_141 = arith.constant 0 : index
    %142 = vector.load %arg30[%c2_139, %c0_140, %c0_141] : memref<3x128x256xf32, #tpu.memory_space<vmem>>, vector<1x128x256xf32>
    %143 = vector.shape_cast %142 : vector<1x128x256xf32> to vector<128x256xf32>
    %cst_142 = arith.constant dense<0.000000e+00> : vector<16x256xf32>
    %144 = tpu.matmul %141, %143, %cst_142 {dimension_numbers = #tpu.dot_dimension_numbers<[1], [0], [0], [1], [0, 0, 1, 1], [], []>} : vector<16x128xf32>, vector<128x256xf32>, vector<16x256xf32> -> vector<16x256xf32>
    %145 = arith.addf %139, %144 : vector<16x256xf32>
    %c0_143 = arith.constant 0 : index
    %c0_144 = arith.constant 0 : index
    %146 = vector.load %arg28[%c0_143, %c0_144] : memref<1x128xf32, #tpu.memory_space<vmem>>, vector<1x128xf32>
    %147 = vector.broadcast %146 : vector<1x128xf32> to vector<16x128xf32>
    %148 = arith.mulf %124, %147 : vector<16x128xf32>
    %c0_145 = arith.constant 0 : index
    %c0_146 = arith.constant 0 : index
    %149 = vector.load %arg29[%c0_145, %c0_146] : memref<1x128xf32, #tpu.memory_space<vmem>>, vector<1x128xf32>
    %150 = vector.broadcast %149 : vector<1x128xf32> to vector<16x128xf32>
    %151 = arith.addf %148, %150 : vector<16x128xf32>
    %c0_147 = arith.constant 0 : index
    %c0_148 = arith.constant 0 : index
    %152 = vector.load %arg39[%c0_147, %c0_148] : memref<16x16xf32, #tpu.memory_space<vmem>>, vector<16x16xf32>
    %cst_149 = arith.constant dense<0.000000e+00> : vector<16x128xf32>
    %153 = tpu.matmul %152, %151, %cst_149 {dimension_numbers = #tpu.dot_dimension_numbers<[1], [0], [0], [1], [0, 0, 1, 1], [], []>} : vector<16x16xf32>, vector<16x128xf32>, vector<16x128xf32> -> vector<16x128xf32>
    %c0_150 = arith.constant 0 : index
    %c0_151 = arith.constant 0 : index
    %c0_152 = arith.constant 0 : index
    %154 = vector.load %arg31[%c0_150, %c0_151, %c0_152] : memref<3x128x256xf32, #tpu.memory_space<vmem>>, vector<1x128x256xf32>
    %155 = vector.shape_cast %154 : vector<1x128x256xf32> to vector<128x256xf32>
    %cst_153 = arith.constant dense<0.000000e+00> : vector<16x256xf32>
    %156 = tpu.matmul %153, %155, %cst_153 {dimension_numbers = #tpu.dot_dimension_numbers<[1], [0], [0], [1], [0, 0, 1, 1], [], []>} : vector<16x128xf32>, vector<128x256xf32>, vector<16x256xf32> -> vector<16x256xf32>
    %c1_154 = arith.constant 1 : index
    %c0_155 = arith.constant 0 : index
    %c0_156 = arith.constant 0 : index
    %157 = vector.load %arg31[%c1_154, %c0_155, %c0_156] : memref<3x128x256xf32, #tpu.memory_space<vmem>>, vector<1x128x256xf32>
    %158 = vector.shape_cast %157 : vector<1x128x256xf32> to vector<128x256xf32>
    %cst_157 = arith.constant dense<0.000000e+00> : vector<16x256xf32>
    %159 = tpu.matmul %151, %158, %cst_157 {dimension_numbers = #tpu.dot_dimension_numbers<[1], [0], [0], [1], [0, 0, 1, 1], [], []>} : vector<16x128xf32>, vector<128x256xf32>, vector<16x256xf32> -> vector<16x256xf32>
    %160 = arith.addf %156, %159 : vector<16x256xf32>
    %c0_158 = arith.constant 0 : index
    %c0_159 = arith.constant 0 : index
    %161 = vector.load %arg40[%c0_158, %c0_159] : memref<16x16xf32, #tpu.memory_space<vmem>>, vector<16x16xf32>
    %cst_160 = arith.constant dense<0.000000e+00> : vector<16x128xf32>
    %162 = tpu.matmul %161, %151, %cst_160 {dimension_numbers = #tpu.dot_dimension_numbers<[1], [0], [0], [1], [0, 0, 1, 1], [], []>} : vector<16x16xf32>, vector<16x128xf32>, vector<16x128xf32> -> vector<16x128xf32>
    %c2_161 = arith.constant 2 : index
    %c0_162 = arith.constant 0 : index
    %c0_163 = arith.constant 0 : index
    %163 = vector.load %arg31[%c2_161, %c0_162, %c0_163] : memref<3x128x256xf32, #tpu.memory_space<vmem>>, vector<1x128x256xf32>
    %164 = vector.shape_cast %163 : vector<1x128x256xf32> to vector<128x256xf32>
    %cst_164 = arith.constant dense<0.000000e+00> : vector<16x256xf32>
    %165 = tpu.matmul %162, %164, %cst_164 {dimension_numbers = #tpu.dot_dimension_numbers<[1], [0], [0], [1], [0, 0, 1, 1], [], []>} : vector<16x128xf32>, vector<128x256xf32>, vector<16x256xf32> -> vector<16x256xf32>
    %166 = arith.addf %160, %165 : vector<16x256xf32>
    %167 = arith.addf %145, %166 : vector<16x256xf32>
    %c0_165 = arith.constant 0 : index
    %c0_166 = arith.constant 0 : index
    %168 = vector.load %arg32[%c0_165, %c0_166] : memref<1x256xf32, #tpu.memory_space<vmem>>, vector<1x256xf32>
    %169 = vector.broadcast %168 : vector<1x256xf32> to vector<16x256xf32>
    %170 = arith.addf %167, %169 : vector<16x256xf32>
    %cst_167 = arith.constant 0.000000e+00 : f32
    %171 = vector.broadcast %cst_167 : f32 to vector<16x256xf32>
    %172 = arith.maximumf %170, %171 : vector<16x256xf32>
    %c0_168 = arith.constant 0 : index
    %c0_169 = arith.constant 0 : index
    %173 = vector.load %arg33[%c0_168, %c0_169] : memref<1x256xf32, #tpu.memory_space<vmem>>, vector<1x256xf32>
    %174 = vector.broadcast %173 : vector<1x256xf32> to vector<16x256xf32>
    %175 = arith.mulf %172, %174 : vector<16x256xf32>
    %c0_170 = arith.constant 0 : index
    %c0_171 = arith.constant 0 : index
    %176 = vector.load %arg34[%c0_170, %c0_171] : memref<1x256xf32, #tpu.memory_space<vmem>>, vector<1x256xf32>
    %177 = vector.broadcast %176 : vector<1x256xf32> to vector<16x256xf32>
    %178 = arith.addf %175, %177 : vector<16x256xf32>
    %c0_172 = arith.constant 0 : index
    %c0_173 = arith.constant 0 : index
    %179 = vector.load %arg39[%c0_172, %c0_173] : memref<16x16xf32, #tpu.memory_space<vmem>>, vector<16x16xf32>
    %cst_174 = arith.constant dense<0.000000e+00> : vector<16x256xf32>
    %180 = tpu.matmul %179, %178, %cst_174 {dimension_numbers = #tpu.dot_dimension_numbers<[1], [0], [0], [1], [0, 0, 1, 1], [], []>} : vector<16x16xf32>, vector<16x256xf32>, vector<16x256xf32> -> vector<16x256xf32>
    %c0_175 = arith.constant 0 : index
    %c0_176 = arith.constant 0 : index
    %c0_177 = arith.constant 0 : index
    %181 = vector.load %arg35[%c0_175, %c0_176, %c0_177] : memref<3x256x256xf32, #tpu.memory_space<vmem>>, vector<1x256x256xf32>
    %182 = vector.shape_cast %181 : vector<1x256x256xf32> to vector<256x256xf32>
    %cst_178 = arith.constant dense<0.000000e+00> : vector<16x256xf32>
    %183 = tpu.matmul %180, %182, %cst_178 {dimension_numbers = #tpu.dot_dimension_numbers<[1], [0], [0], [1], [0, 0, 1, 1], [], []>} : vector<16x256xf32>, vector<256x256xf32>, vector<16x256xf32> -> vector<16x256xf32>
    %c1_179 = arith.constant 1 : index
    %c0_180 = arith.constant 0 : index
    %c0_181 = arith.constant 0 : index
    %184 = vector.load %arg35[%c1_179, %c0_180, %c0_181] : memref<3x256x256xf32, #tpu.memory_space<vmem>>, vector<1x256x256xf32>
    %185 = vector.shape_cast %184 : vector<1x256x256xf32> to vector<256x256xf32>
    %cst_182 = arith.constant dense<0.000000e+00> : vector<16x256xf32>
    %186 = tpu.matmul %178, %185, %cst_182 {dimension_numbers = #tpu.dot_dimension_numbers<[1], [0], [0], [1], [0, 0, 1, 1], [], []>} : vector<16x256xf32>, vector<256x256xf32>, vector<16x256xf32> -> vector<16x256xf32>
    %187 = arith.addf %183, %186 : vector<16x256xf32>
    %c0_183 = arith.constant 0 : index
    %c0_184 = arith.constant 0 : index
    %188 = vector.load %arg40[%c0_183, %c0_184] : memref<16x16xf32, #tpu.memory_space<vmem>>, vector<16x16xf32>
    %cst_185 = arith.constant dense<0.000000e+00> : vector<16x256xf32>
    %189 = tpu.matmul %188, %178, %cst_185 {dimension_numbers = #tpu.dot_dimension_numbers<[1], [0], [0], [1], [0, 0, 1, 1], [], []>} : vector<16x16xf32>, vector<16x256xf32>, vector<16x256xf32> -> vector<16x256xf32>
    %c2_186 = arith.constant 2 : index
    %c0_187 = arith.constant 0 : index
    %c0_188 = arith.constant 0 : index
    %190 = vector.load %arg35[%c2_186, %c0_187, %c0_188] : memref<3x256x256xf32, #tpu.memory_space<vmem>>, vector<1x256x256xf32>
    %191 = vector.shape_cast %190 : vector<1x256x256xf32> to vector<256x256xf32>
    %cst_189 = arith.constant dense<0.000000e+00> : vector<16x256xf32>
    %192 = tpu.matmul %189, %191, %cst_189 {dimension_numbers = #tpu.dot_dimension_numbers<[1], [0], [0], [1], [0, 0, 1, 1], [], []>} : vector<16x256xf32>, vector<256x256xf32>, vector<16x256xf32> -> vector<16x256xf32>
    %193 = arith.addf %187, %192 : vector<16x256xf32>
    %c0_190 = arith.constant 0 : index
    %c0_191 = arith.constant 0 : index
    %194 = vector.load %arg36[%c0_190, %c0_191] : memref<1x256xf32, #tpu.memory_space<vmem>>, vector<1x256xf32>
    %195 = vector.broadcast %194 : vector<1x256xf32> to vector<16x256xf32>
    %196 = arith.addf %193, %195 : vector<16x256xf32>
    %c0_192 = arith.constant 0 : index
    %c0_193 = arith.constant 0 : index
    %197 = vector.load %arg37[%c0_192, %c0_193] : memref<256x128xf32, #tpu.memory_space<vmem>>, vector<256x128xf32>
    %cst_194 = arith.constant dense<0.000000e+00> : vector<16x128xf32>
    %198 = tpu.matmul %196, %197, %cst_194 {dimension_numbers = #tpu.dot_dimension_numbers<[1], [0], [0], [1], [0, 0, 1, 1], [], []>} : vector<16x256xf32>, vector<256x128xf32>, vector<16x128xf32> -> vector<16x128xf32>
    %c0_195 = arith.constant 0 : index
    %c0_196 = arith.constant 0 : index
    %199 = vector.load %arg38[%c0_195, %c0_196] : memref<256x128xf32, #tpu.memory_space<vmem>>, vector<256x128xf32>
    %cst_197 = arith.constant dense<0.000000e+00> : vector<16x128xf32>
    %200 = tpu.matmul %196, %199, %cst_197 {dimension_numbers = #tpu.dot_dimension_numbers<[1], [0], [0], [1], [0, 0, 1, 1], [], []>} : vector<16x256xf32>, vector<256x128xf32>, vector<16x128xf32> -> vector<16x128xf32>
    %201 = arith.mulf %198, %200 : vector<16x128xf32>
    %c0_198 = arith.constant 0 : index
    %c0_199 = arith.constant 0 : index
    %c0_200 = arith.constant 0 : index
    %202 = vector.load %arg43[%c0_198, %c0_199, %c0_200] : memref<1x16x128xf32, #tpu.memory_space<vmem>>, vector<1x16x128xf32>
    %203 = vector.shape_cast %202 : vector<1x16x128xf32> to vector<16x128xf32>
    %204 = vector.shape_cast %201 : vector<16x128xf32> to vector<1x16x128xf32>
    tpu.vector_store %arg43[%c0_198, %c0_199, %c0_200], %204 {strides = array<i32>} : memref<1x16x128xf32, #tpu.memory_space<vmem>>, vector<1x16x128xf32>,
    return
  }
  func.func @transform_0(%arg0: i32) -> (i32, i32, i32) {
    %c0_i32 = arith.constant 0 : i32
    %c0_i32_0 = arith.constant 0 : i32
    %c0_i32_1 = arith.constant 0 : i32
    return %arg0, %c0_i32, %c0_i32_0 : i32, i32, i32
  }
  func.func @transform_1(%arg0: i32) -> (i32, i32) {
    %c0_i32 = arith.constant 0 : i32
    %c0_i32_0 = arith.constant 0 : i32
    %c0_i32_1 = arith.constant 0 : i32
    return %c0_i32, %c0_i32_0 : i32, i32
  }
  func.func @transform_2(%arg0: i32) -> (i32, i32) {
    %c0_i32 = arith.constant 0 : i32
    %c0_i32_0 = arith.constant 0 : i32
    %c0_i32_1 = arith.constant 0 : i32
    return %c0_i32, %c0_i32_0 : i32, i32
  }
  func.func @transform_3(%arg0: i32) -> (i32, i32) {
    %c0_i32 = arith.constant 0 : i32
    %c0_i32_0 = arith.constant 0 : i32
    %c0_i32_1 = arith.constant 0 : i32
    return %c0_i32, %c0_i32_0 : i32, i32
  }
  func.func @transform_4(%arg0: i32) -> (i32, i32) {
    %c0_i32 = arith.constant 0 : i32
    %c0_i32_0 = arith.constant 0 : i32
    %c0_i32_1 = arith.constant 0 : i32
    return %c0_i32, %c0_i32_0 : i32, i32
  }
  func.func @transform_5(%arg0: i32) -> (i32, i32, i32) {
    %c0_i32 = arith.constant 0 : i32
    %c0_i32_0 = arith.constant 0 : i32
    %c0_i32_1 = arith.constant 0 : i32
    %c0_i32_2 = arith.constant 0 : i32
    return %c0_i32, %c0_i32_0, %c0_i32_1 : i32, i32, i32
  }
  func.func @transform_6(%arg0: i32) -> (i32, i32) {
    %c0_i32 = arith.constant 0 : i32
    %c0_i32_0 = arith.constant 0 : i32
    %c0_i32_1 = arith.constant 0 : i32
    return %c0_i32, %c0_i32_0 : i32, i32
  }
  func.func @transform_7(%arg0: i32) -> (i32, i32) {
    %c0_i32 = arith.constant 0 : i32
    %c0_i32_0 = arith.constant 0 : i32
    %c0_i32_1 = arith.constant 0 : i32
    return %c0_i32, %c0_i32_0 : i32, i32
  }
  func.func @transform_8(%arg0: i32) -> (i32, i32) {
    %c0_i32 = arith.constant 0 : i32
    %c0_i32_0 = arith.constant 0 : i32
    %c0_i32_1 = arith.constant 0 : i32
    return %c0_i32, %c0_i32_0 : i32, i32
  }
  func.func @transform_9(%arg0: i32) -> (i32, i32, i32) {
    %c0_i32 = arith.constant 0 : i32
    %c0_i32_0 = arith.constant 0 : i32
    %c0_i32_1 = arith.constant 0 : i32
    %c0_i32_2 = arith.constant 0 : i32
    return %c0_i32, %c0_i32_0, %c0_i32_1 : i32, i32, i32
  }
  func.func @transform_10(%arg0: i32) -> (i32, i32) {
    %c0_i32 = arith.constant 0 : i32
    %c0_i32_0 = arith.constant 0 : i32
    %c0_i32_1 = arith.constant 0 : i32
    return %c0_i32, %c0_i32_0 : i32, i32
  }
  func.func @transform_11(%arg0: i32) -> (i32, i32) {
    %c0_i32 = arith.constant 0 : i32
    %c0_i32_0 = arith.constant 0 : i32
    %c0_i32_1 = arith.constant 0 : i32
    return %c0_i32, %c0_i32_0 : i32, i32
  }
  func.func @transform_12(%arg0: i32) -> (i32, i32) {
    %c0_i32 = arith.constant 0 : i32
    %c0_i32_0 = arith.constant 0 : i32
    %c0_i32_1 = arith.constant 0 : i32
    return %c0_i32, %c0_i32_0 : i32, i32
  }
  func.func @transform_13(%arg0: i32) -> (i32, i32) {
    %c0_i32 = arith.constant 0 : i32
    %c0_i32_0 = arith.constant 0 : i32
    %c0_i32_1 = arith.constant 0 : i32
    return %c0_i32, %c0_i32_0 : i32, i32
  }
  func.func @transform_14(%arg0: i32) -> (i32, i32) {
    %c0_i32 = arith.constant 0 : i32
    %c0_i32_0 = arith.constant 0 : i32
    %c0_i32_1 = arith.constant 0 : i32
    return %c0_i32, %c0_i32_0 : i32, i32
  }
  func.func @transform_15(%arg0: i32) -> (i32, i32) {
    %c0_i32 = arith.constant 0 : i32
    %c0_i32_0 = arith.constant 0 : i32
    %c0_i32_1 = arith.constant 0 : i32
    return %c0_i32, %c0_i32_0 : i32, i32
  }
  func.func @transform_16(%arg0: i32) -> (i32, i32) {
    %c0_i32 = arith.constant 0 : i32
    %c0_i32_0 = arith.constant 0 : i32
    %c0_i32_1 = arith.constant 0 : i32
    return %c0_i32, %c0_i32_0 : i32, i32
  }
  func.func @transform_17(%arg0: i32) -> (i32, i32, i32) {
    %c0_i32 = arith.constant 0 : i32
    %c0_i32_0 = arith.constant 0 : i32
    %c0_i32_1 = arith.constant 0 : i32
    %c0_i32_2 = arith.constant 0 : i32
    return %c0_i32, %c0_i32_0, %c0_i32_1 : i32, i32, i32
  }
  func.func @transform_18(%arg0: i32) -> (i32, i32) {
    %c0_i32 = arith.constant 0 : i32
    %c0_i32_0 = arith.constant 0 : i32
    %c0_i32_1 = arith.constant 0 : i32
    return %c0_i32, %c0_i32_0 : i32, i32
  }
  func.func @transform_19(%arg0: i32) -> (i32, i32) {
    %c0_i32 = arith.constant 0 : i32
    %c0_i32_0 = arith.constant 0 : i32
    %c0_i32_1 = arith.constant 0 : i32
    return %c0_i32, %c0_i32_0 : i32, i32
  }
  func.func @transform_20(%arg0: i32) -> (i32, i32) {
    %c0_i32 = arith.constant 0 : i32
    %c0_i32_0 = arith.constant 0 : i32
    %c0_i32_1 = arith.constant 0 : i32
    return %c0_i32, %c0_i32_0 : i32, i32
  }
  func.func @transform_21(%arg0: i32) -> (i32, i32, i32) {
    %c0_i32 = arith.constant 0 : i32
    %c0_i32_0 = arith.constant 0 : i32
    %c0_i32_1 = arith.constant 0 : i32
    %c0_i32_2 = arith.constant 0 : i32
    return %c0_i32, %c0_i32_0, %c0_i32_1 : i32, i32, i32
  }
  func.func @transform_22(%arg0: i32) -> (i32, i32) {
    %c0_i32 = arith.constant 0 : i32
    %c0_i32_0 = arith.constant 0 : i32
    %c0_i32_1 = arith.constant 0 : i32
    return %c0_i32, %c0_i32_0 : i32, i32
  }
  func.func @transform_23(%arg0: i32) -> (i32, i32) {
    %c0_i32 = arith.constant 0 : i32
    %c0_i32_0 = arith.constant 0 : i32
    %c0_i32_1 = arith.constant 0 : i32
    return %c0_i32, %c0_i32_0 : i32, i32
  }
  func.func @transform_24(%arg0: i32) -> (i32, i32) {
    %c0_i32 = arith.constant 0 : i32
    %c0_i32_0 = arith.constant 0 : i32
    %c0_i32_1 = arith.constant 0 : i32
    return %c0_i32, %c0_i32_0 : i32, i32
  }
  func.func @transform_25(%arg0: i32) -> (i32, i32) {
    %c0_i32 = arith.constant 0 : i32
    %c0_i32_0 = arith.constant 0 : i32
    %c0_i32_1 = arith.constant 0 : i32
    return %c0_i32, %c0_i32_0 : i32, i32
  }
  func.func @transform_26(%arg0: i32) -> (i32, i32) {
    %c0_i32 = arith.constant 0 : i32
    %c0_i32_0 = arith.constant 0 : i32
    %c0_i32_1 = arith.constant 0 : i32
    return %c0_i32, %c0_i32_0 : i32, i32
  }
  func.func @transform_27(%arg0: i32) -> (i32, i32) {
    %c0_i32 = arith.constant 0 : i32
    %c0_i32_0 = arith.constant 0 : i32
    %c0_i32_1 = arith.constant 0 : i32
    return %c0_i32, %c0_i32_0 : i32, i32
  }
  func.func @transform_28(%arg0: i32) -> (i32, i32) {
    %c0_i32 = arith.constant 0 : i32
    %c0_i32_0 = arith.constant 0 : i32
    %c0_i32_1 = arith.constant 0 : i32
    return %c0_i32, %c0_i32_0 : i32, i32
  }
  func.func @transform_29(%arg0: i32) -> (i32, i32, i32) {
    %c0_i32 = arith.constant 0 : i32
    %c0_i32_0 = arith.constant 0 : i32
    %c0_i32_1 = arith.constant 0 : i32
    %c0_i32_2 = arith.constant 0 : i32
    return %c0_i32, %c0_i32_0, %c0_i32_1 : i32, i32, i32
  }
  func.func @transform_30(%arg0: i32) -> (i32, i32, i32) {
    %c0_i32 = arith.constant 0 : i32
    %c0_i32_0 = arith.constant 0 : i32
    %c0_i32_1 = arith.constant 0 : i32
    %c0_i32_2 = arith.constant 0 : i32
    return %c0_i32, %c0_i32_0, %c0_i32_1 : i32, i32, i32
  }
  func.func @transform_31(%arg0: i32) -> (i32, i32) {
    %c0_i32 = arith.constant 0 : i32
    %c0_i32_0 = arith.constant 0 : i32
    %c0_i32_1 = arith.constant 0 : i32
    return %c0_i32, %c0_i32_0 : i32, i32
  }
  func.func @transform_32(%arg0: i32) -> (i32, i32) {
    %c0_i32 = arith.constant 0 : i32
    %c0_i32_0 = arith.constant 0 : i32
    %c0_i32_1 = arith.constant 0 : i32
    return %c0_i32, %c0_i32_0 : i32, i32
  }
  func.func @transform_33(%arg0: i32) -> (i32, i32) {
    %c0_i32 = arith.constant 0 : i32
    %c0_i32_0 = arith.constant 0 : i32
    %c0_i32_1 = arith.constant 0 : i32
    return %c0_i32, %c0_i32_0 : i32, i32
  }
  func.func @transform_34(%arg0: i32) -> (i32, i32, i32) {
    %c0_i32 = arith.constant 0 : i32
    %c0_i32_0 = arith.constant 0 : i32
    %c0_i32_1 = arith.constant 0 : i32
    %c0_i32_2 = arith.constant 0 : i32
    return %c0_i32, %c0_i32_0, %c0_i32_1 : i32, i32, i32
  }
  func.func @transform_35(%arg0: i32) -> (i32, i32) {
    %c0_i32 = arith.constant 0 : i32
    %c0_i32_0 = arith.constant 0 : i32
    %c0_i32_1 = arith.constant 0 : i32
    return %c0_i32, %c0_i32_0 : i32, i32
  }
  func.func @transform_36(%arg0: i32) -> (i32, i32) {
    %c0_i32 = arith.constant 0 : i32
    %c0_i32_0 = arith.constant 0 : i32
    %c0_i32_1 = arith.constant 0 : i32
    return %c0_i32, %c0_i32_0 : i32, i32
  }
  func.func @transform_37(%arg0: i32) -> (i32, i32) {
    %c0_i32 = arith.constant 0 : i32
    %c0_i32_0 = arith.constant 0 : i32
    %c0_i32_1 = arith.constant 0 : i32
    return %c0_i32, %c0_i32_0 : i32, i32
  }
  func.func @transform_38(%arg0: i32) -> (i32, i32) {
    %c0_i32 = arith.constant 0 : i32
    %c0_i32_0 = arith.constant 0 : i32
    %c0_i32_1 = arith.constant 0 : i32
    return %c0_i32, %c0_i32_0 : i32, i32
  }
  func.func @transform_39(%arg0: i32) -> (i32, i32) {
    %c0_i32 = arith.constant 0 : i32
    %c0_i32_0 = arith.constant 0 : i32
    %c0_i32_1 = arith.constant 0 : i32
    return %c0_i32, %c0_i32_0 : i32, i32
  }
  func.func @transform_40(%arg0: i32) -> (i32, i32) {
    %c0_i32 = arith.constant 0 : i32
    %c0_i32_0 = arith.constant 0 : i32
    %c0_i32_1 = arith.constant 0 : i32
    return %c0_i32, %c0_i32_0 : i32, i32
  }
  func.func @transform_41(%arg0: i32) -> (i32, i32) {
    %c0_i32 = arith.constant 0 : i32
    %c0_i32_0 = arith.constant 0 : i32
    %c0_i32_1 = arith.constant 0 : i32
    return %c0_i32, %c0_i32_0 : i32, i32
  }
  func.func @transform_42(%arg0: i32) -> (i32, i32, i32) {
    %c0_i32 = arith.constant 0 : i32
    %c0_i32_0 = arith.constant 0 : i32
    %c0_i32_1 = arith.constant 0 : i32
    return %arg0, %c0_i32, %c0_i32_0 : i32, i32, i32
  }
}

</mosaic_0001>

<bundles_post_ra>
// kernel: _lambda_.1
= control target key start
LH: loop header
LB: loop body
LE: loop exit
PB: predicated region body
PF: predicated region fallthrough
CT: control target
= control target key end

     0   :  { %s9450_s6 = smov 1   ;;  %s9451_s10 = smov 2   ;;  %s10530_s0 = inlined_call_operand.smem [shape: u32[43], index: -1, kind: input, shape index: {}] }
   0x1   :  { %s9535_s5 = sld [smem:[%s10530_s0]]   ;;  %s9452_s14 = smov 3  }
   0x2   :  { %s9540_s9 = sld [smem:[%s10530_s0 + %s9450_s6]]   ;;  %s9453_s18 = smov 4  }
   0x3   :  { %s9545_s13 = sld [smem:[%s10530_s0 + %s9451_s10]]   ;;  %s9454_s22 = smov 5  }
   0x4   :  { %s9550_s17 = sld [smem:[%s10530_s0 + %s9452_s14]]   ;;  %s9455_s26 = smov 6  }
   0x5   :  { %s9555_s21 = sld [smem:[%s10530_s0 + %s9453_s18]]   ;;  %s9456_s30 = smov 7  }
   0x6   :  { %s9560_s25 = sld [smem:[%s10530_s0 + %s9454_s22]]   ;;  %s9457_s4 = smov 8  }
   0x7   :  { %10573 = sst [smem:[#allocation60_spill]] %s9535_s5  ;;  %s9458_s10 = smov 9  }
   0x8   :  { %10574 = sst [smem:[#allocation61_spill]] %s9540_s9  ;;  %s9459_s15 = smov 10  }
   0x9   :  { %10575 = sst [smem:[#allocation62_spill]] %s9545_s13  ;;  %s9460_s20 = smov 11  }
   0xa   :  { %10576 = sst [smem:[#allocation63_spill]] %s9550_s17  ;;  %s9462_s1 = smov 13  }
   0xb   :  { %s9565_s29 = sld [smem:[%s10530_s0 + %s9455_s26]]   ;;  %s9461_s26 = smov 12  }
   0xc   :  { %10577 = sst [smem:[#allocation64_spill]] %s9560_s25  ;;  %s9463_s7 = smov 14  }
   0xd   :  { %s9570_s3 = sld [smem:[%s10530_s0 + %s9456_s30]]   ;;  %s9465_s22 = smov 16  }
   0xe   :  { %s9575_s8 = sld [smem:[%s10530_s0 + %s9457_s4]]   ;;  %s9466_s28 = smov 17  }
   0xf   :  { %s9580_s14 = sld [smem:[%s10530_s0 + %s9458_s10]]  }
  0x10   :  { %s9585_s19 = sld [smem:[%s10530_s0 + %s9459_s15]]   ;;  %s9464_s15 = smov 15  }
  0x11   :  { %s9590_s24 = sld [smem:[%s10530_s0 + %s9460_s20]]  }
  0x12   :  { %s9595_s30 = sld [smem:[%s10530_s0 + %s9461_s26]]  }
  0x13   :  { %10578 = sst [smem:[#allocation65_spill]] %s9570_s3 }
  0x14   :  { %10579 = sst [smem:[#allocation66_spill]] %s9575_s8 }
  0x15   :  { %10580 = sst [smem:[#allocation67_spill]] %s9580_s14 }
  0x16   :  { %s9600_s6 = sld [smem:[%s10530_s0 + %s9462_s1]]  }
  0x17   :  { %10581 = sst [smem:[#allocation68_spill]] %s9590_s24 }
  0x18   :  { %s9605_s12 = sld [smem:[%s10530_s0 + %s9463_s7]]   ;;  %s9467_s7 = smov 18  }
  0x19   :  { %s9610_s20 = sld [smem:[%s10530_s0 + %s9464_s15]]   ;;  %s9468_s15 = smov 19  }
  0x1a   :  { %s9615_s27 = sld [smem:[%s10530_s0 + %s9465_s22]]   ;;  %s9469_s22 = smov 20  }
  0x1b   :  { %s9620_s4 = sld [smem:[%s10530_s0 + %s9466_s28]]   ;;  %s9470_s28 = smov 21  }
  0x1c   :  { %10582 = sst [smem:[#allocation69_spill]] %s9600_s6 }
  0x1d   :  { %s9625_s5 = sld [smem:[%s10530_s0 + %s9467_s7]]   ;;  %s9471_s7 = smov 22  }
  0x1e   :  { %10583 = sst [smem:[#allocation70_spill]] %s9605_s12 }
  0x1f   :  { %10584 = sst [smem:[#allocation71_spill]] %s9610_s20 }
  0x20   :  { %s9630_s20 = sld [smem:[%s10530_s0 + %s9468_s15]]   ;;  %s9472_s15 = smov 23  }
  0x21   :  { %10585 = sst [smem:[#allocation72_spill]] %s9620_s4 }
  0x22   :  { %s9635_s6 = sld [smem:[%s10530_s0 + %s9469_s22]]   ;;  %s9473_s22 = smov 24  }
  0x23   :  { %10586 = sst [smem:[#allocation73_spill]] %s9625_s5 }
  0x24   :  { %s9640_s4 = sld [smem:[%s10530_s0 + %s9470_s28]]   ;;  %s9474_s28 = smov 25  }
  0x25   :  { %s9645_s24 = sld [smem:[%s10530_s0 + %s9471_s7]]   ;;  %s9475_s7 = smov 26  }
  0x26   :  { %10587 = sst [smem:[#allocation74_spill]] %s9630_s20 }
  0x27   :  { %s9650_s20 = sld [smem:[%s10530_s0 + %s9472_s15]]   ;;  %s9476_s15 = smov 27  }
  0x28   :  { %10588 = sst [smem:[#allocation75_spill]] %s9635_s6 }
  0x29   :  { %s9655_s14 = sld [smem:[%s10530_s0 + %s9473_s22]]   ;;  %s9477_s22 = smov 28  }
  0x2a   :  { %10589 = sst [smem:[#allocation76_spill]] %s9640_s4 }
  0x2b   :  { %10590 = sst [smem:[#allocation77_spill]] %s9645_s24 }
  0x2c   :  { %s9660_s4 = sld [smem:[%s10530_s0 + %s9474_s28]]   ;;  %s9478_s28 = smov 29  }
  0x2d   :  { %10591 = sst [smem:[#allocation78_spill]] %s9650_s20 }
  0x2e   :  { %s9665_s24 = sld [smem:[%s10530_s0 + %s9475_s7]]   ;;  %s9479_s7 = smov 30  }
  0x2f   :  { %10592 = sst [smem:[#allocation79_spill]] %s9655_s14 }
  0x30   :  { %s9670_s20 = sld [smem:[%s10530_s0 + %s9476_s15]]   ;;  %s9480_s15 = smov 31  }
  0x31   :  { %s9675_s14 = sld [smem:[%s10530_s0 + %s9477_s22]]   ;;  %s9481_s22 = smov 32  }
  0x32   :  { %10593 = sst [smem:[#allocation80_spill]] %s9660_s4 }
  0x33   :  { %s9680_s3 = sld [smem:[%s10530_s0 + %s9478_s28]]   ;;  %s9482_s28 = smov 33  }
  0x34   :  { %10594 = sst [smem:[#allocation81_spill]] %s9665_s24 }
  0x35   :  { %s9685_s24 = sld [smem:[%s10530_s0 + %s9479_s7]]   ;;  %s9483_s7 = smov 34  }
  0x36   :  { %10595 = sst [smem:[#allocation82_spill]] %s9670_s20 }
  0x37   :  { %10596 = sst [smem:[#allocation83_spill]] %s9675_s14 }
  0x38   :  { %s9690_s20 = sld [smem:[%s10530_s0 + %s9480_s15]]   ;;  %s9484_s15 = smov 35  }
  0x39   :  { %10597 = sst [smem:[#allocation84_spill]] %s9680_s3 }
  0x3a   :  { %s9695_s14 = sld [smem:[%s10530_s0 + %s9481_s22]]   ;;  %s9485_s22 = smov 36  }
  0x3b   :  { %10598 = sst [smem:[#allocation85_spill]] %s9685_s24 }
  0x3c   :  { %s9700_s25 = sld [smem:[%s10530_s0 + %s9482_s28]]   ;;  %s9486_s28 = smov 37  }
  0x3d   :  { %s9705_s24 = sld [smem:[%s10530_s0 + %s9483_s7]]   ;;  %s9487_s7 = smov 38  }
  0x3e   :  { %10599 = sst [smem:[#allocation86_spill]] %s9690_s20 }
  0x3f   :  { %s9710_s20 = sld [smem:[%s10530_s0 + %s9484_s15]]   ;;  %s9488_s15 = smov 39  }
  0x40   :  { %10600 = sst [smem:[#allocation87_spill]] %s9695_s14 }
  0x41   :  { %s9715_s14 = sld [smem:[%s10530_s0 + %s9485_s22]]   ;;  %s9489_s22 = smov 40  }
  0x42   :  { %10601 = sst [smem:[#allocation88_spill]] %s9700_s25 }
  0x43   :  { %s9720_s25 = sld [smem:[%s10530_s0 + %s9486_s28]]   ;;  %s9490_s28 = smov 41  }
  0x44   :  { %s9725_s17 = sld [smem:[%s10530_s0 + %s9487_s7]]   ;;  %s9491_s7 = smov 42  }
  0x45   :  { %10602 = sst [smem:[#allocation89_spill]] %s9710_s20 }
  0x46   :  { %s9730_s20 = sld [smem:[%s10530_s0 + %s9488_s15]]  }
  0x47   :  { %10603 = sst [smem:[#allocation90_spill]] %s9715_s14 }
  0x48   :  { %s9735_s14 = sld [smem:[%s10530_s0 + %s9489_s22]]  }
  0x49   :  { %10604 = sst [smem:[#allocation91_spill]] %s9720_s25 }
  0x4a   :  { %10605 = sst [smem:[#allocation92_spill]] %s9725_s17 }
  0x4b   :  { %s9740_s25 = sld [smem:[%s10530_s0 + %s9490_s28]]  }
  0x4c   :  { %s9745_s17 = sld [smem:[%s10530_s0 + %s9491_s7]]  }
  0x4d   :  { %90 = vsyncpa [#allocation3], 0 }
  0x4e   :  { %91 = vsyncpa [#allocation5], 0 }
  0x4f   :  { %92 = vsyncpa [#allocation8], 0 }
  0x50   :  { %93 = vsyncpa [#allocation11], 0 }
  0x51   :  { %94 = vsyncpa [#allocation14], 0 }
  0x52   :  { %95 = vsyncpa [#allocation17], 0 }
  0x53   :  { %96 = vsyncpa [#allocation20], 0 }
  0x54   :  { %97 = vsyncpa [#allocation23], 0 }
  0x55   :  { %98 = vsyncpa [#allocation26], 0 }
  0x56   :  { %99 = vsyncpa [#allocation29], 0 }
  0x57   :  { %100 = vsyncpa [#allocation32], 0 }
  0x58   :  { %101 = vsyncpa [#allocation35], 0 }
  0x59   :  { %102 = vsyncpa [#allocation38], 0 }
  0x5a   :  { %103 = vsyncpa [#allocation41], 0 }
  0x5b   :  { %104 = vsyncpa [#allocation44], 0  ;;  %s9747_s15 = smov 0  }
  0x5c LB: > { %s10606_s13 = sld [smem:[#allocation62_spill]]  ;;  %s10608_s9 = sld [smem:[#allocation61_spill]]  ;;  %s9448_s15 = sphi %s9747_s15, %s110_s15  }
  0x5d   : > { %s10607_s12 = sld [smem:[#allocation70_spill]]  ;;  %s10609_s8 = sld [smem:[#allocation66_spill]] }
  0x5e   : > { %s10610_s6 = sld [smem:[#allocation75_spill]]  ;;  %s10611_s5 = sld [smem:[#allocation73_spill]] }
  0x5f   : > { %s10612_s3 = sld [smem:[#allocation84_spill]]  ;;  %s10613_s4 = sld [smem:[#allocation80_spill]] }
  0x60   : > { %s9492_s0 = smov [#allocation4]   ;;  %s9753_s18 = sadd.s32 4294967295, %s9448_s15  }
  0x61   : > { %s1054_s16 = sshll.u32 %s9492_s0, 4  ;;  %p6252_p0 = scmp.ge.s32.totalorder %s9448_s15, 1  ;;  %s9758_s16 = int_to_ptr.vmem [resolvable:$true] %s1054_s16 }
  0x62   : > { %p1028_p1 = scmp.lt.s32.totalorder %s9448_s15, 3  ;;  %p10549_p2 = scmp.eq.s32.totalorder %s9753_s18, 0 }
  0x63   : > { %s9493_s23 = smov [#allocation7]   ;;  %s9494_s28 = smov [#allocation10]  }
  0x64   : > { %p9760_p3 = pnand %p6252_p0, %p1028_p1  ;;  %s1076_s26 = sshll.u32 %s9493_s23, 4  ;;  %s9766_s26 = int_to_ptr.vmem [resolvable:$true] %s1076_s26 }
  0x65   : > { %s1100_s1 = sshll.u32 %s9494_s28, 4  ;;  %s9495_s7 = smov [#allocation13]   ;;  %s9774_s1 = int_to_ptr.vmem [resolvable:$true] %s1100_s1 }
  0x66   : > { %s10614_s22 = scalar_select %p9760_p3, 1, 0 }
  0x67   : > { %p8365_p4 = pneg %p9760_p3  ;;  %s1122_s10 = sshll.u32 %s9495_s7, 4  ;;  %s9776_s10 = int_to_ptr.vmem [resolvable:$true] %s1122_s10 }
  0x68   : > { %s8598_s11 = scalar_lea.hbm %s10606_s13, 16 }
  0x69   : > { %p9770_p5 = pnand %p10549_p2, %p8365_p4  ;;  %p8599_p6 = scmp.ne.s32.totalorder %s10606_s13, %s8598_s11 }
  0x6a   : > { %p8605_p10 = scmp.lt.u32.totalorder %s8598_s11, %s10606_s13 }
  0x6b   : > { %p9782_p7 = pneg %p9770_p5 }
  0x6d   : > { %p8601_p8 = pnand %p9782_p7, %p8599_p6 }
  0x6f   : > { %p8602_p9 = pneg %p8601_p8 }
  0x71   : > { %p8607_p11 = pnand %p8605_p10, %p8602_p9 }
  0x73   : > { %8610 = shalt.err (!%p8607_p11)
}
  0x74   : > { %s8611_s23 = scalar_lea.vmem %s9758_s16, 16  ;;  %s8618_s28 = scalar_lea.vmem %s9758_s16, 32 }
  0x75   : > { %p8612_p12 = scmp.ne.s32.totalorder %s9758_s16, %s8611_s23  ;;  %p8619_p1 = scmp.lt.s32.totalorder %s9758_s16, %s9758_s16 }
  0x76   : > { %p8620_p4 = scmp.lt.s32.totalorder %s8618_s28, %s8611_s23 }
  0x77   : > { %p8614_p13 = pnand %p8612_p12, %p9782_p7 }
  0x78   : > { %p8621_p2 = por %p8620_p4, %p8619_p1 }
  0x79   : > { %p8615_p0 = pneg %p8614_p13 }
  0x7b   : > { %p8622_p6 = pnand %p8621_p2, %p8615_p0 }
  0x7d   : > { %8625 = shalt.err (!%p8622_p6)
}
  0x7e   : > { %8371 = dma.hbm_to_vmem [thread:$0]  (!%p9770_p5), %s10606_s13, 16, %s9758_s16, [#allocation5]  }
  0x7f   : > { %s8626_s7 = scalar_lea.hbm %s9555_s21, 16 }
  0x80   : > { %p8627_p8 = scmp.ne.s32.totalorder %s9555_s21, %s8626_s7  ;;  %p8633_p11 = scmp.lt.u32.totalorder %s8626_s7, %s9555_s21 }
  0x82   : > { %p8629_p9 = pnand %p8627_p8, %p9782_p7 }
  0x84   : > { %p8630_p10 = pneg %p8629_p9 }
  0x86   : > { %p8635_p12 = pnand %p8633_p11, %p8630_p10 }
  0x88   : > { %8638 = shalt.err (!%p8635_p12)
}
  0x89   : > { %s8639_s11 = scalar_lea.vmem %s9766_s26, 16  ;;  %s8646_s23 = scalar_lea.vmem %s9766_s26, 32 }
  0x8a   : > { %p8640_p2 = scmp.ne.s32.totalorder %s9766_s26, %s8639_s11  ;;  %p8647_p1 = scmp.lt.s32.totalorder %s9766_s26, %s9766_s26 }
  0x8b   : > { %p8648_p4 = scmp.lt.s32.totalorder %s8646_s23, %s8639_s11 }
  0x8c   : > { %p8642_p13 = pnand %p8640_p2, %p9782_p7 }
  0x8d   : > { %p8649_p6 = por %p8648_p4, %p8647_p1 }
  0x8e   : > { %p8643_p0 = pneg %p8642_p13 }
  0x90   : > { %p8650_p8 = pnand %p8649_p6, %p8643_p0 }
  0x92   : > { %8653 = shalt.err (!%p8650_p8)
}
  0x93   : > { %8377 = dma.hbm_to_vmem [thread:$0]  (!%p9770_p5), %s9555_s21, 16, %s9766_s26, [#allocation8]  }
  0x94   : > { %s8654_s16 = scalar_lea.hbm %s9565_s29, 16 }
  0x95   : > { %p8655_p9 = scmp.ne.s32.totalorder %s9565_s29, %s8654_s16  ;;  %p8661_p12 = scmp.lt.u32.totalorder %s8654_s16, %s9565_s29 }
  0x97   : > { %p8657_p10 = pnand %p8655_p9, %p9782_p7 }
  0x99   : > { %p8658_p11 = pneg %p8657_p10 }
  0x9b   : > { %p8663_p2 = pnand %p8661_p12, %p8658_p11 }
  0x9d   : > { %8666 = shalt.err (!%p8663_p2)
}
  0x9e   : > { %s8667_s28 = scalar_lea.vmem %s9774_s1, 16  ;;  %s8674_s7 = scalar_lea.vmem %s9774_s1, 32 }
  0x9f   : > { %p8668_p13 = scmp.ne.s32.totalorder %s9774_s1, %s8667_s28  ;;  %p8675_p4 = scmp.lt.s32.totalorder %s9774_s1, %s9774_s1 }
  0xa0   : > { %p8676_p6 = scmp.lt.s32.totalorder %s8674_s7, %s8667_s28 }
  0xa1   : > { %p8670_p0 = pnand %p8668_p13, %p9782_p7 }
  0xa2   : > { %p8677_p8 = por %p8676_p6, %p8675_p4 }
  0xa3   : > { %p8671_p1 = pneg %p8670_p0 }
  0xa5   : > { %p8678_p9 = pnand %p8677_p8, %p8671_p1 }
  0xa7   : > { %8681 = shalt.err (!%p8678_p9)
}
  0xa8   : > { %8383 = dma.hbm_to_vmem [thread:$0]  (!%p9770_p5), %s9565_s29, 16, %s9774_s1, [#allocation11]  }
  0xa9   : > { %s8682_s26 = scalar_lea.hbm %s10609_s8, 16 }
  0xaa   : > { %p8683_p10 = scmp.ne.s32.totalorder %s10609_s8, %s8682_s26  ;;  %p8689_p2 = scmp.lt.u32.totalorder %s8682_s26, %s10609_s8 }
  0xac   : > { %p8685_p11 = pnand %p8683_p10, %p9782_p7 }
  0xae   : > { %p8686_p12 = pneg %p8685_p11 }
  0xb0   : > { %p8691_p13 = pnand %p8689_p2, %p8686_p12 }
  0xb2   : > { %8694 = shalt.err (!%p8691_p13)
}
  0xb3   : > { %s8695_s11 = scalar_lea.vmem %s9776_s10, 16  ;;  %s8702_s23 = scalar_lea.vmem %s9776_s10, 32 }
  0xb4   : > { %p8696_p0 = scmp.ne.s32.totalorder %s9776_s10, %s8695_s11  ;;  %p8703_p6 = scmp.lt.s32.totalorder %s9776_s10, %s9776_s10 }
  0xb5   : > { %p8704_p8 = scmp.lt.s32.totalorder %s8702_s23, %s8695_s11 }
  0xb6   : > { %p8698_p1 = pnand %p8696_p0, %p9782_p7 }
  0xb7   : > { %p8705_p9 = por %p8704_p8, %p8703_p6 }
  0xb8   : > { %p8699_p4 = pneg %p8698_p1 }
  0xba   : > { %p8706_p10 = pnand %p8705_p9, %p8699_p4 }
  0xbc   : > { %8709 = shalt.err (!%p8706_p10)
}
  0xbd   : > { %8389 = dma.hbm_to_vmem [thread:$0]  (!%p9770_p5), %s10609_s8, 16, %s9776_s10, [#allocation14]  }
  0xbe   : > { %s9496_s1 = smov [#allocation16]   ;;  %s9497_s28 = smov [#allocation19]  }
  0xbf   : > { %s1146_s16 = sshll.u32 %s9496_s1, 4  ;;  %s1168_s7 = sshll.u32 %s9497_s28, 4  ;;  %s1147_s16 = int_to_ptr.vmem [resolvable:$true] %s1146_s16  ;;  %s1169_s7 = int_to_ptr.vmem [resolvable:$true] %s1168_s7 }
  0xc0   : > { %s8710_s26 = scalar_lea.hbm %s9585_s19, 16 }
  0xc1   : > { %p8711_p11 = scmp.ne.s32.totalorder %s9585_s19, %s8710_s26  ;;  %p8717_p13 = scmp.lt.u32.totalorder %s8710_s26, %s9585_s19 }
  0xc3   : > { %p8713_p12 = pnand %p8711_p11, %p9782_p7 }
  0xc5   : > { %p8714_p2 = pneg %p8713_p12 }
  0xc7   : > { %p8719_p0 = pnand %p8717_p13, %p8714_p2 }
  0xc9   : > { %8722 = shalt.err (!%p8719_p0)
}
  0xca   : > { %s8723_s11 = scalar_lea.vmem %s1147_s16, 16  ;;  %s8730_s10 = scalar_lea.vmem %s1147_s16, 32 }
  0xcb   : > { %p8724_p1 = scmp.ne.s32.totalorder %s1147_s16, %s8723_s11  ;;  %p8731_p8 = scmp.lt.s32.totalorder %s1147_s16, %s1147_s16 }
  0xcc   : > { %p8732_p9 = scmp.lt.s32.totalorder %s8730_s10, %s8723_s11 }
  0xcd   : > { %p8726_p4 = pnand %p8724_p1, %p9782_p7 }
  0xce   : > { %p8733_p10 = por %p8732_p9, %p8731_p8 }
  0xcf   : > { %p8727_p6 = pneg %p8726_p4 }
  0xd1   : > { %p8734_p3 = pnand %p8733_p10, %p8727_p6 }
  0xd3   : > { %8737 = shalt.err (!%p8734_p3)
}
  0xd4   : > { %8395 = dma.hbm_to_vmem [thread:$0]  (!%p9770_p5), %s9585_s19, 16, %s1147_s16, [#allocation17]  }
  0xd5   : > { %s8738_s23 = scalar_lea.hbm %s9595_s30, 128 }
  0xd6   : > { %p8739_p11 = scmp.ne.s32.totalorder %s9595_s30, %s8738_s23  ;;  %p8745_p13 = scmp.lt.u32.totalorder %s8738_s23, %s9595_s30 }
  0xd8   : > { %p8741_p12 = pnand %p8739_p11, %p9782_p7 }
  0xda   : > { %p8742_p2 = pneg %p8741_p12 }
  0xdc   : > { %p8747_p0 = pnand %p8745_p13, %p8742_p2 }
  0xde   : > { %8750 = shalt.err (!%p8747_p0)
}
  0xdf   : > { %s8751_s1 = scalar_lea.vmem %s1169_s7, 128  ;;  %p8759_p6 = scmp.lt.s32.totalorder %s1169_s7, %s1169_s7 }
  0xe0   : > { %p8752_p3 = scmp.ne.s32.totalorder %s1169_s7, %s8751_s1  ;;  %p8760_p8 = scmp.lt.s32.totalorder %s8751_s1, %s8751_s1 }
  0xe2   : > { %p8754_p1 = pnand %p8752_p3, %p9782_p7  ;;  %p8761_p9 = por %p8760_p8, %p8759_p6 }
  0xe4   : > { %p8755_p4 = pneg %p8754_p1 }
  0xe6   : > { %p8762_p10 = pnand %p8761_p9, %p8755_p4 }
  0xe8   : > { %8765 = shalt.err (!%p8762_p10)
}
  0xe9   : > { %8401 = dma.hbm_to_vmem [thread:$0]  (!%p9770_p5), %s9595_s30, 128, %s1169_s7, [#allocation20]  }
  0xea   : > { %s9498_s16 = smov [#allocation22]   ;;  %s9499_s26 = smov [#allocation25]  }
  0xeb   : > { %s1191_s28 = sshll.u32 %s9498_s16, 4  ;;  %s1216_s11 = sshll.u32 %s9499_s26, 4  ;;  %s1192_s28 = int_to_ptr.vmem [resolvable:$true] %s1191_s28  ;;  %s1217_s11 = int_to_ptr.vmem [resolvable:$true] %s1216_s11 }
  0xec   : > { %s8766_s10 = scalar_lea.hbm %s10607_s12, 2048 }
  0xed   : > { %p8767_p11 = scmp.ne.s32.totalorder %s10607_s12, %s8766_s10  ;;  %p8773_p13 = scmp.lt.u32.totalorder %s8766_s10, %s10607_s12 }
  0xef   : > { %p8769_p12 = pnand %p8767_p11, %p9782_p7 }
  0xf1   : > { %p8770_p2 = pneg %p8769_p12 }
  0xf3   : > { %p8775_p0 = pnand %p8773_p13, %p8770_p2 }
  0xf5   : > { %8778 = shalt.err (!%p8775_p0)
}
  0xf6   : > { %s8779_s23 = scalar_lea.vmem %s1192_s28, 2048  ;;  %p8787_p6 = scmp.lt.s32.totalorder %s1192_s28, %s1192_s28 }
  0xf7   : > { %p8780_p3 = scmp.ne.s32.totalorder %s1192_s28, %s8779_s23  ;;  %p8788_p8 = scmp.lt.s32.totalorder %s8779_s23, %s8779_s23 }
  0xf9   : > { %p8782_p1 = pnand %p8780_p3, %p9782_p7  ;;  %p8789_p9 = por %p8788_p8, %p8787_p6 }
  0xfb   : > { %p8783_p4 = pneg %p8782_p1 }
  0xfd   : > { %p8790_p10 = pnand %p8789_p9, %p8783_p4 }
  0xff   : > { %8793 = shalt.err (!%p8790_p10)
}
 0x100   : > { %s10551_s7 = smov 128   ;;  %s10553_s1 = smov 8  }
 0x101   : > { %8407 = dma.hbm_to_vmem [thread:$0]  (!%p9770_p5), %s10607_s12, 2048, %s1192_s28, [#allocation23], %s10551_s7, %s10551_s7, %s10553_s1  }
 0x102   : > { %s8794_s16 = scalar_lea.hbm %s9615_s27, 16 }
 0x103   : > { %p8795_p11 = scmp.ne.s32.totalorder %s9615_s27, %s8794_s16  ;;  %p8801_p13 = scmp.lt.u32.totalorder %s8794_s16, %s9615_s27 }
 0x105   : > { %p8797_p12 = pnand %p8795_p11, %p9782_p7 }
 0x107   : > { %p8798_p2 = pneg %p8797_p12 }
 0x109   : > { %p8803_p0 = pnand %p8801_p13, %p8798_p2 }
 0x10b   : > { %8806 = shalt.err (!%p8803_p0)
}
 0x10c   : > { %s8807_s26 = scalar_lea.vmem %s1217_s11, 16  ;;  %s8814_s10 = scalar_lea.vmem %s1217_s11, 32 }
 0x10d   : > { %p8808_p3 = scmp.ne.s32.totalorder %s1217_s11, %s8807_s26  ;;  %p8815_p6 = scmp.lt.s32.totalorder %s1217_s11, %s1217_s11 }
 0x10e   : > { %p8816_p8 = scmp.lt.s32.totalorder %s8814_s10, %s8807_s26 }
 0x10f   : > { %p8810_p1 = pnand %p8808_p3, %p9782_p7 }
 0x110   : > { %p8817_p9 = por %p8816_p8, %p8815_p6 }
 0x111   : > { %p8811_p4 = pneg %p8810_p1 }
 0x113   : > { %p8818_p10 = pnand %p8817_p9, %p8811_p4 }
 0x115   : > { %8821 = shalt.err (!%p8818_p10)
}
 0x116   : > { %8413 = dma.hbm_to_vmem [thread:$0]  (!%p9770_p5), %s9615_s27, 16, %s1217_s11, [#allocation26]  }
 0x117   : > { %s9502_s28 = smov [#allocation28]   ;;  %s9503_s16 = smov [#allocation31]  }
 0x118   : > { %s1240_s23 = sshll.u32 %s9502_s28, 4  ;;  %s1262_s7 = sshll.u32 %s9503_s16, 4  ;;  %s1241_s23 = int_to_ptr.vmem [resolvable:$true] %s1240_s23  ;;  %s1263_s7 = int_to_ptr.vmem [resolvable:$true] %s1262_s7 }
 0x119   : > { %s8822_s1 = scalar_lea.hbm %s10611_s5, 16 }
 0x11a   : > { %p8823_p11 = scmp.ne.s32.totalorder %s10611_s5, %s8822_s1  ;;  %p8829_p13 = scmp.lt.u32.totalorder %s8822_s1, %s10611_s5 }
 0x11c   : > { %p8825_p12 = pnand %p8823_p11, %p9782_p7 }
 0x11e   : > { %p8826_p2 = pneg %p8825_p12 }
 0x120   : > { %p8831_p0 = pnand %p8829_p13, %p8826_p2 }
 0x122   : > { %8834 = shalt.err (!%p8831_p0)
}
 0x123   : > { %s8835_s26 = scalar_lea.vmem %s1241_s23, 16  ;;  %s8842_s11 = scalar_lea.vmem %s1241_s23, 32 }
 0x124   : > { %p8836_p3 = scmp.ne.s32.totalorder %s1241_s23, %s8835_s26  ;;  %p8843_p6 = scmp.lt.s32.totalorder %s1241_s23, %s1241_s23 }
 0x125   : > { %p8844_p8 = scmp.lt.s32.totalorder %s8842_s11, %s8835_s26 }
 0x126   : > { %p8838_p1 = pnand %p8836_p3, %p9782_p7 }
 0x127   : > { %p8845_p9 = por %p8844_p8, %p8843_p6 }
 0x128   : > { %p8839_p4 = pneg %p8838_p1 }
 0x12a   : > { %p8846_p10 = pnand %p8845_p9, %p8839_p4 }
 0x12c   : > { %8849 = shalt.err (!%p8846_p10)
}
 0x12d   : > { %8419 = dma.hbm_to_vmem [thread:$0]  (!%p9770_p5), %s10611_s5, 16, %s1241_s23, [#allocation29]  }
 0x12e   : > { %s8850_s1 = scalar_lea.hbm %s10610_s6, 16 }
 0x12f   : > { %p8851_p11 = scmp.ne.s32.totalorder %s10610_s6, %s8850_s1  ;;  %p8857_p13 = scmp.lt.u32.totalorder %s8850_s1, %s10610_s6 }
 0x131   : > { %p8853_p12 = pnand %p8851_p11, %p9782_p7 }
 0x133   : > { %p8854_p2 = pneg %p8853_p12 }
 0x135   : > { %p8859_p0 = pnand %p8857_p13, %p8854_p2 }
 0x137   : > { %8862 = shalt.err (!%p8859_p0)
}
 0x138   : > { %s8863_s10 = scalar_lea.vmem %s1263_s7, 16  ;;  %s8870_s28 = scalar_lea.vmem %s1263_s7, 32 }
 0x139   : > { %p8864_p3 = scmp.ne.s32.totalorder %s1263_s7, %s8863_s10  ;;  %p8871_p6 = scmp.lt.s32.totalorder %s1263_s7, %s1263_s7 }
 0x13a   : > { %p8872_p8 = scmp.lt.s32.totalorder %s8870_s28, %s8863_s10 }
 0x13b   : > { %p8866_p1 = pnand %p8864_p3, %p9782_p7 }
 0x13c   : > { %p8873_p9 = por %p8872_p8, %p8871_p6 }
 0x13d   : > { %p8867_p4 = pneg %p8866_p1 }
 0x13f   : > { %p8874_p10 = pnand %p8873_p9, %p8867_p4 }
 0x141   : > { %8877 = shalt.err (!%p8874_p10)
}
 0x142   : > { %8425 = dma.hbm_to_vmem [thread:$0]  (!%p9770_p5), %s10610_s6, 16, %s1263_s7, [#allocation32]  }
 0x143   : > { %s9504_s23 = smov [#allocation34]   ;;  %s9505_s26 = smov [#allocation37]  }
 0x144   : > { %s1293_s16 = sshll.u32 %s9504_s23, 4  ;;  %s1320_s11 = sshll.u32 %s9505_s26, 4  ;;  %s1294_s16 = int_to_ptr.vmem [resolvable:$true] %s1293_s16  ;;  %s1321_s11 = int_to_ptr.vmem [resolvable:$true] %s1320_s11 }
 0x145   : > { %s8878_s1 = scalar_lea.hbm %s10613_s4, 16 }
 0x146   : > { %p8879_p11 = scmp.ne.s32.totalorder %s10613_s4, %s8878_s1  ;;  %p8885_p13 = scmp.lt.u32.totalorder %s8878_s1, %s10613_s4 }
 0x148   : > { %p8881_p12 = pnand %p8879_p11, %p9782_p7 }
 0x14a   : > { %p8882_p2 = pneg %p8881_p12 }
 0x14c   : > { %p8887_p0 = pnand %p8885_p13, %p8882_p2 }
 0x14e   : > { %8890 = shalt.err (!%p8887_p0)
}
 0x14f   : > { %s8891_s10 = scalar_lea.vmem %s1294_s16, 16  ;;  %s8898_s7 = scalar_lea.vmem %s1294_s16, 32 }
 0x150   : > { %p8892_p3 = scmp.ne.s32.totalorder %s1294_s16, %s8891_s10  ;;  %p8899_p6 = scmp.lt.s32.totalorder %s1294_s16, %s1294_s16 }
 0x151   : > { %p8900_p8 = scmp.lt.s32.totalorder %s8898_s7, %s8891_s10 }
 0x152   : > { %p8894_p1 = pnand %p8892_p3, %p9782_p7 }
 0x153   : > { %p8901_p9 = por %p8900_p8, %p8899_p6 }
 0x154   : > { %p8895_p4 = pneg %p8894_p1 }
 0x156   : > { %p8902_p10 = pnand %p8901_p9, %p8895_p4 }
 0x158   : > { %8905 = shalt.err (!%p8902_p10)
}
 0x159   : > { %8431 = dma.hbm_to_vmem [thread:$0]  (!%p9770_p5), %s10613_s4, 16, %s1294_s16, [#allocation35]  }
 0x15a   : > { %s8906_s28 = scalar_lea.hbm %s10612_s3, 12288 }
 0x15b   : > { %p8907_p11 = scmp.ne.s32.totalorder %s10612_s3, %s8906_s28  ;;  %p8913_p13 = scmp.lt.u32.totalorder %s8906_s28, %s10612_s3 }
 0x15d   : > { %p8909_p12 = pnand %p8907_p11, %p9782_p7 }
 0x15f   : > { %p8910_p2 = pneg %p8909_p12 }
 0x161   : > { %p8915_p0 = pnand %p8913_p13, %p8910_p2 }
 0x163   : > { %8918 = shalt.err (!%p8915_p0)
}
 0x164   : > { %s8919_s23 = scalar_lea.vmem %s1321_s11, 12288  ;;  %p8927_p6 = scmp.lt.s32.totalorder %s1321_s11, %s1321_s11 }
 0x165   : > { %p8920_p3 = scmp.ne.s32.totalorder %s1321_s11, %s8919_s23  ;;  %p8928_p8 = scmp.lt.s32.totalorder %s8919_s23, %s8919_s23 }
 0x167   : > { %p8922_p1 = pnand %p8920_p3, %p9782_p7  ;;  %p8929_p9 = por %p8928_p8, %p8927_p6 }
 0x169   : > { %p8923_p4 = pneg %p8922_p1 }
 0x16b   : > { %p8930_p10 = pnand %p8929_p9, %p8923_p4 }
 0x16d   : > { %8933 = shalt.err (!%p8930_p10)
}
 0x16e   : > { %s10556_s16 = smov 256   ;;  %s10557_s26 = smov 16  }
 0x16f   : > { %8437 = dma.hbm_to_vmem [thread:$0]  (!%p9770_p5), %s10612_s3, 12288, %s1321_s11, [#allocation38], %s10556_s16, %s10556_s16, %s10557_s26  }
 0x170   : > { %s9508_s1 = smov [#allocation40]   ;;  %s9509_s7 = smov [#allocation2]  }
 0x171   : > { %s1355_s10 = sshll.u32 %s9508_s1, 4  ;;  %s1040_s28 = sshll.u32 %s9509_s7, 4  ;;  %s1356_s10 = int_to_ptr.vmem [resolvable:$true] %s1355_s10  ;;  %s1041_s28 = int_to_ptr.vmem [resolvable:$true] %s1040_s28 }
 0x172   : > { %s8934_s23 = scalar_lea.hbm %s9705_s24, 24576 }
 0x173   : > { %p8935_p11 = scmp.ne.s32.totalorder %s9705_s24, %s8934_s23  ;;  %p8941_p13 = scmp.lt.u32.totalorder %s8934_s23, %s9705_s24 }
 0x175   : > { %p8937_p12 = pnand %p8935_p11, %p9782_p7 }
 0x177   : > { %p8938_p2 = pneg %p8937_p12 }
 0x179   : > { %p8943_p0 = pnand %p8941_p13, %p8938_p2 }
 0x17b   : > { %8946 = shalt.err (!%p8943_p0)
}
 0x17c   : > { %s8947_s4 = scalar_lea.vmem %s1356_s10, 24576  ;;  %p8955_p6 = scmp.lt.s32.totalorder %s1356_s10, %s1356_s10 }
 0x17d   : > { %p8948_p3 = scmp.ne.s32.totalorder %s1356_s10, %s8947_s4  ;;  %p8956_p8 = scmp.lt.s32.totalorder %s8947_s4, %s8947_s4 }
 0x17f   : > { %p8950_p1 = pnand %p8948_p3, %p9782_p7  ;;  %p8957_p9 = por %p8956_p8, %p8955_p6 }
 0x181   : > { %p8951_p4 = pneg %p8950_p1 }
 0x183   : > { %p8958_p10 = pnand %p8957_p9, %p8951_p4 }
 0x185   : > { %8961 = shalt.err (!%p8958_p10)
}
 0x186   : > { %8443 = dma.hbm_to_vmem [thread:$0]  (!%p9770_p5), %s9705_s24, 24576, %s1356_s10, [#allocation41], %s10556_s16, %s10556_s16, %s10557_s26  }
 0x187   : > { %s8962_s11 = scalar_lea.hbm %s10608_s9, 1024 }
 0x188   : > { %p8963_p11 = scmp.ne.s32.totalorder %s10608_s9, %s8962_s11  ;;  %p8969_p13 = scmp.lt.u32.totalorder %s8962_s11, %s10608_s9 }
 0x18a   : > { %p8965_p12 = pnand %p8963_p11, %p9782_p7 }
 0x18c   : > { %p8966_p2 = pneg %p8965_p12 }
 0x18e   : > { %p8971_p0 = pnand %p8969_p13, %p8966_p2 }
 0x190   : > { %8974 = shalt.err (!%p8971_p0)
}
 0x191   : > { %s8975_s4 = scalar_lea.vmem %s1041_s28, 1024  ;;  %p8983_p6 = scmp.lt.s32.totalorder %s1041_s28, %s1041_s28 }
 0x192   : > { %p8976_p3 = scmp.ne.s32.totalorder %s1041_s28, %s8975_s4  ;;  %p8984_p8 = scmp.lt.s32.totalorder %s8975_s4, %s8975_s4 }
 0x194   : > { %p8978_p1 = pnand %p8976_p3, %p9782_p7  ;;  %p8985_p9 = por %p8984_p8, %p8983_p6 }
 0x196   : > { %p8979_p4 = pneg %p8978_p1 }
 0x198   : > { %p8986_p10 = pnand %p8985_p9, %p8979_p4 }
 0x19a   : > { %8989 = shalt.err (!%p8986_p10)
}
 0x19b   : > { %s10617_s1 = smov 8   ;;  %s10618_s10 = smov 128  }
 0x19c   : > { %s10619_s7 = sld [smem:[#allocation63_spill]]  ;;  %s9510_s23 = smov [#allocation6]  }
 0x19d   : > { %8368 = dma.hbm_to_vmem [thread:$0]  (!%p9770_p5), %s10608_s9, 1024, %s1041_s28, [#allocation3], %s10618_s10, %s10618_s10, %s10617_s1  }
 0x19e   : > { %s1065_s11 = sshll.u32 %s9510_s23, 4  ;;  %s9511_s16 = smov [#allocation9]   ;;  %s1066_s11 = int_to_ptr.vmem [resolvable:$true] %s1065_s11 }
 0x19f   : > { %s1086_s26 = sshll.u32 %s9511_s16, 4  ;;  %s1087_s26 = int_to_ptr.vmem [resolvable:$true] %s1086_s26 }
 0x1a2   : > { %s8990_s4 = scalar_lea.hbm %s10619_s7, 16 }
 0x1a3   : > { %p8991_p11 = scmp.ne.s32.totalorder %s10619_s7, %s8990_s4  ;;  %p8997_p13 = scmp.lt.u32.totalorder %s8990_s4, %s10619_s7 }
 0x1a5   : > { %p8993_p12 = pnand %p8991_p11, %p9782_p7 }
 0x1a7   : > { %p8994_p2 = pneg %p8993_p12 }
 0x1a9   : > { %p8999_p0 = pnand %p8997_p13, %p8994_p2 }
 0x1ab   : > { %9002 = shalt.err (!%p8999_p0)
}
 0x1ac   : > { %s9003_s3 = scalar_lea.vmem %s1066_s11, 16  ;;  %s9010_s28 = scalar_lea.vmem %s1066_s11, 32 }
 0x1ad   : > { %p9004_p3 = scmp.ne.s32.totalorder %s1066_s11, %s9003_s3  ;;  %p9011_p6 = scmp.lt.s32.totalorder %s1066_s11, %s1066_s11 }
 0x1ae   : > { %p9012_p8 = scmp.lt.s32.totalorder %s9010_s28, %s9003_s3 }
 0x1af   : > { %p9006_p1 = pnand %p9004_p3, %p9782_p7 }
 0x1b0   : > { %p9013_p9 = por %p9012_p8, %p9011_p6 }
 0x1b1   : > { %p9007_p4 = pneg %p9006_p1 }
 0x1b3   : > { %p9014_p10 = pnand %p9013_p9, %p9007_p4 }
 0x1b5   : > { %9017 = shalt.err (!%p9014_p10)
}
 0x1b6   : > { %s10620_s16 = sld [smem:[#allocation64_spill]] }
 0x1b7   : > { %8374 = dma.hbm_to_vmem [thread:$0]  (!%p9770_p5), %s10619_s7, 16, %s1066_s11, [#allocation5]  }
 0x1bc   : > { %s9018_s23 = scalar_lea.hbm %s10620_s16, 6144 }
 0x1bd   : > { %p9019_p11 = scmp.ne.s32.totalorder %s10620_s16, %s9018_s23  ;;  %p9025_p13 = scmp.lt.u32.totalorder %s9018_s23, %s10620_s16 }
 0x1bf   : > { %p9021_p12 = pnand %p9019_p11, %p9782_p7 }
 0x1c1   : > { %p9022_p2 = pneg %p9021_p12 }
 0x1c3   : > { %p9027_p0 = pnand %p9025_p13, %p9022_p2 }
 0x1c5   : > { %9030 = shalt.err (!%p9027_p0)
}
 0x1c6   : > { %s9031_s3 = scalar_lea.vmem %s1087_s26, 6144  ;;  %p9039_p6 = scmp.lt.s32.totalorder %s1087_s26, %s1087_s26 }
 0x1c7   : > { %p9032_p3 = scmp.ne.s32.totalorder %s1087_s26, %s9031_s3  ;;  %p9040_p8 = scmp.lt.s32.totalorder %s9031_s3, %s9031_s3 }
 0x1c9   : > { %p9034_p1 = pnand %p9032_p3, %p9782_p7  ;;  %p9041_p9 = por %p9040_p8, %p9039_p6 }
 0x1cb   : > { %p9035_p4 = pneg %p9034_p1 }
 0x1cd   : > { %p9042_p10 = pnand %p9041_p9, %p9035_p4 }
 0x1cf   : > { %9045 = shalt.err (!%p9042_p10)
}
 0x1d0   : > { %s10621_s11 = sld [smem:[#allocation65_spill]]  ;;  %s9512_s4 = smov [#allocation12]  }
 0x1d1   : > { %8380 = dma.hbm_to_vmem [thread:$0]  (!%p9770_p5), %s10620_s16, 6144, %s1087_s26, [#allocation8], %s10618_s10, %s10618_s10, %s10617_s1  }
 0x1d2   : > { %s1111_s28 = sshll.u32 %s9512_s4, 4  ;;  %s9513_s23 = smov [#allocation15]   ;;  %s1112_s28 = int_to_ptr.vmem [resolvable:$true] %s1111_s28 }
 0x1d3   : > { %s1132_s5 = sshll.u32 %s9513_s23, 4  ;;  %s1133_s5 = int_to_ptr.vmem [resolvable:$true] %s1132_s5 }
 0x1d6   : > { %s9046_s3 = scalar_lea.hbm %s10621_s11, 16 }
 0x1d7   : > { %p9047_p11 = scmp.ne.s32.totalorder %s10621_s11, %s9046_s3  ;;  %p9053_p13 = scmp.lt.u32.totalorder %s9046_s3, %s10621_s11 }
 0x1d9   : > { %p9049_p12 = pnand %p9047_p11, %p9782_p7 }
 0x1db   : > { %p9050_p2 = pneg %p9049_p12 }
 0x1dd   : > { %p9055_p0 = pnand %p9053_p13, %p9050_p2 }
 0x1df   : > { %9058 = shalt.err (!%p9055_p0)
}
 0x1e0   : > { %s9059_s6 = scalar_lea.vmem %s1112_s28, 16  ;;  %s9066_s26 = scalar_lea.vmem %s1112_s28, 32 }
 0x1e1   : > { %p9060_p3 = scmp.ne.s32.totalorder %s1112_s28, %s9059_s6  ;;  %p9067_p6 = scmp.lt.s32.totalorder %s1112_s28, %s1112_s28 }
 0x1e2   : > { %p9068_p8 = scmp.lt.s32.totalorder %s9066_s26, %s9059_s6 }
 0x1e3   : > { %p9062_p1 = pnand %p9060_p3, %p9782_p7 }
 0x1e4   : > { %p9069_p9 = por %p9068_p8, %p9067_p6 }
 0x1e5   : > { %p9063_p4 = pneg %p9062_p1 }
 0x1e7   : > { %p9070_p10 = pnand %p9069_p9, %p9063_p4 }
 0x1e9   : > { %9073 = shalt.err (!%p9070_p10)
}
 0x1ea   : > { %s10622_s4 = sld [smem:[#allocation67_spill]] }
 0x1eb   : > { %8386 = dma.hbm_to_vmem [thread:$0]  (!%p9770_p5), %s10621_s11, 16, %s1112_s28, [#allocation11]  }
 0x1f0   : > { %s9074_s23 = scalar_lea.hbm %s10622_s4, 6144 }
 0x1f1   : > { %p9075_p11 = scmp.ne.s32.totalorder %s10622_s4, %s9074_s23  ;;  %p9081_p13 = scmp.lt.u32.totalorder %s9074_s23, %s10622_s4 }
 0x1f3   : > { %p9077_p12 = pnand %p9075_p11, %p9782_p7 }
 0x1f5   : > { %p9078_p2 = pneg %p9077_p12 }
 0x1f7   : > { %p9083_p0 = pnand %p9081_p13, %p9078_p2 }
 0x1f9   : > { %9086 = shalt.err (!%p9083_p0)
}
 0x1fa   : > { %s9087_s6 = scalar_lea.vmem %s1133_s5, 6144  ;;  %p9095_p6 = scmp.lt.s32.totalorder %s1133_s5, %s1133_s5 }
 0x1fb   : > { %p9088_p3 = scmp.ne.s32.totalorder %s1133_s5, %s9087_s6  ;;  %p9096_p8 = scmp.lt.s32.totalorder %s9087_s6, %s9087_s6 }
 0x1fd   : > { %p9090_p1 = pnand %p9088_p3, %p9782_p7  ;;  %p9097_p9 = por %p9096_p8, %p9095_p6 }
 0x1ff   : > { %p9091_p4 = pneg %p9090_p1 }
 0x201   : > { %p9098_p10 = pnand %p9097_p9, %p9091_p4 }
 0x203   : > { %9101 = shalt.err (!%p9098_p10)
}
 0x204   : > { %s10623_s28 = sld [smem:[#allocation68_spill]]  ;;  %s9514_s3 = smov [#allocation18]  }
 0x205   : > { %8392 = dma.hbm_to_vmem [thread:$0]  (!%p9770_p5), %s10622_s4, 6144, %s1133_s5, [#allocation14], %s10618_s10, %s10618_s10, %s10617_s1  }
 0x206   : > { %s1157_s26 = sshll.u32 %s9514_s3, 4  ;;  %s9515_s23 = smov [#allocation21]   ;;  %s1158_s26 = int_to_ptr.vmem [resolvable:$true] %s1157_s26 }
 0x207   : > { %s1178_s7 = sshll.u32 %s9515_s23, 4  ;;  %s1179_s7 = int_to_ptr.vmem [resolvable:$true] %s1178_s7 }
 0x20a   : > { %s9102_s6 = scalar_lea.hbm %s10623_s28, 128 }
 0x20b   : > { %p9103_p11 = scmp.ne.s32.totalorder %s10623_s28, %s9102_s6  ;;  %p9109_p13 = scmp.lt.u32.totalorder %s9102_s6, %s10623_s28 }
 0x20d   : > { %p9105_p12 = pnand %p9103_p11, %p9782_p7 }
 0x20f   : > { %p9106_p2 = pneg %p9105_p12 }
 0x211   : > { %p9111_p0 = pnand %p9109_p13, %p9106_p2 }
 0x213   : > { %9114 = shalt.err (!%p9111_p0)
}
 0x214   : > { %s9115_s8 = scalar_lea.vmem %s1158_s26, 128  ;;  %p9123_p6 = scmp.lt.s32.totalorder %s1158_s26, %s1158_s26 }
 0x215   : > { %p9116_p3 = scmp.ne.s32.totalorder %s1158_s26, %s9115_s8  ;;  %p9124_p8 = scmp.lt.s32.totalorder %s9115_s8, %s9115_s8 }
 0x217   : > { %p9118_p1 = pnand %p9116_p3, %p9782_p7  ;;  %p9125_p9 = por %p9124_p8, %p9123_p6 }
 0x219   : > { %p9119_p4 = pneg %p9118_p1 }
 0x21b   : > { %p9126_p10 = pnand %p9125_p9, %p9119_p4 }
 0x21d   : > { %9129 = shalt.err (!%p9126_p10)
}
 0x21e   : > { %s10624_s5 = sld [smem:[#allocation69_spill]] }
 0x21f   : > { %8398 = dma.hbm_to_vmem [thread:$0]  (!%p9770_p5), %s10623_s28, 128, %s1158_s26, [#allocation17]  }
 0x224   : > { %s9130_s3 = scalar_lea.hbm %s10624_s5, 2048 }
 0x225   : > { %p9131_p11 = scmp.ne.s32.totalorder %s10624_s5, %s9130_s3  ;;  %p9137_p13 = scmp.lt.u32.totalorder %s9130_s3, %s10624_s5 }
 0x227   : > { %p9133_p12 = pnand %p9131_p11, %p9782_p7 }
 0x229   : > { %p9134_p2 = pneg %p9133_p12 }
 0x22b   : > { %p9139_p0 = pnand %p9137_p13, %p9134_p2 }
 0x22d   : > { %9142 = shalt.err (!%p9139_p0)
}
 0x22e   : > { %s9143_s8 = scalar_lea.vmem %s1179_s7, 2048  ;;  %p9151_p6 = scmp.lt.s32.totalorder %s1179_s7, %s1179_s7 }
 0x22f   : > { %p9144_p3 = scmp.ne.s32.totalorder %s1179_s7, %s9143_s8  ;;  %p9152_p8 = scmp.lt.s32.totalorder %s9143_s8, %s9143_s8 }
 0x231   : > { %p9146_p1 = pnand %p9144_p3, %p9782_p7  ;;  %p9153_p9 = por %p9152_p8, %p9151_p6 }
 0x233   : > { %p9147_p4 = pneg %p9146_p1 }
 0x235   : > { %p9154_p10 = pnand %p9153_p9, %p9147_p4 }
 0x237   : > { %9157 = shalt.err (!%p9154_p10)
}
 0x238   : > { %s10625_s26 = sld [smem:[#allocation71_spill]]  ;;  %s9516_s23 = smov [#allocation24]  }
 0x239   : > { %8404 = dma.hbm_to_vmem [thread:$0]  (!%p9770_p5), %s10624_s5, 2048, %s1179_s7, [#allocation20], %s10618_s10, %s10618_s10, %s10617_s1  }
 0x23a   : > { %s1205_s6 = sshll.u32 %s9516_s23, 4  ;;  %s9517_s3 = smov [#allocation27]   ;;  %s1206_s6 = int_to_ptr.vmem [resolvable:$true] %s1205_s6 }
 0x23b   : > { %s1226_s4 = sshll.u32 %s9517_s3, 4  ;;  %s1227_s4 = int_to_ptr.vmem [resolvable:$true] %s1226_s4 }
 0x23e   : > { %s9158_s8 = scalar_lea.hbm %s10625_s26, 16 }
 0x23f   : > { %p9159_p11 = scmp.ne.s32.totalorder %s10625_s26, %s9158_s8  ;;  %p9165_p13 = scmp.lt.u32.totalorder %s9158_s8, %s10625_s26 }
 0x241   : > { %p9161_p12 = pnand %p9159_p11, %p9782_p7 }
 0x243   : > { %p9162_p2 = pneg %p9161_p12 }
 0x245   : > { %p9167_p0 = pnand %p9165_p13, %p9162_p2 }
 0x247   : > { %9170 = shalt.err (!%p9167_p0)
}
 0x248   : > { %s9171_s9 = scalar_lea.vmem %s1206_s6, 16  ;;  %s9178_s7 = scalar_lea.vmem %s1206_s6, 32 }
 0x249   : > { %p9172_p3 = scmp.ne.s32.totalorder %s1206_s6, %s9171_s9  ;;  %p9179_p6 = scmp.lt.s32.totalorder %s1206_s6, %s1206_s6 }
 0x24a   : > { %p9180_p8 = scmp.lt.s32.totalorder %s9178_s7, %s9171_s9 }
 0x24b   : > { %p9174_p1 = pnand %p9172_p3, %p9782_p7 }
 0x24c   : > { %p9181_p9 = por %p9180_p8, %p9179_p6 }
 0x24d   : > { %p9175_p4 = pneg %p9174_p1 }
 0x24f   : > { %p9182_p10 = pnand %p9181_p9, %p9175_p4 }
 0x251   : > { %9185 = shalt.err (!%p9182_p10)
}
 0x252   : > { %s10626_s23 = sld [smem:[#allocation72_spill]] }
 0x253   : > { %8410 = dma.hbm_to_vmem [thread:$0]  (!%p9770_p5), %s10625_s26, 16, %s1206_s6, [#allocation23]  }
 0x258   : > { %s9186_s3 = scalar_lea.hbm %s10626_s23, 3072 }
 0x259   : > { %p9187_p11 = scmp.ne.s32.totalorder %s10626_s23, %s9186_s3  ;;  %p9193_p13 = scmp.lt.u32.totalorder %s9186_s3, %s10626_s23 }
 0x25b   : > { %p9189_p12 = pnand %p9187_p11, %p9782_p7 }
 0x25d   : > { %p9190_p2 = pneg %p9189_p12 }
 0x25f   : > { %p9195_p0 = pnand %p9193_p13, %p9190_p2 }
 0x261   : > { %9198 = shalt.err (!%p9195_p0)
}
 0x262   : > { %s9199_s9 = scalar_lea.vmem %s1227_s4, 3072  ;;  %p9207_p6 = scmp.lt.s32.totalorder %s1227_s4, %s1227_s4 }
 0x263   : > { %p9200_p3 = scmp.ne.s32.totalorder %s1227_s4, %s9199_s9  ;;  %p9208_p8 = scmp.lt.s32.totalorder %s9199_s9, %s9199_s9 }
 0x265   : > { %p9202_p1 = pnand %p9200_p3, %p9782_p7  ;;  %p9209_p9 = por %p9208_p8, %p9207_p6 }
 0x267   : > { %p9203_p4 = pneg %p9202_p1 }
 0x269   : > { %p9210_p10 = pnand %p9209_p9, %p9203_p4 }
 0x26b   : > { %9213 = shalt.err (!%p9210_p10)
}
 0x26c   : > { %s10627_s6 = sld [smem:[#allocation74_spill]]  ;;  %s9518_s8 = smov [#allocation30]  }
 0x26d   : > { %8416 = dma.hbm_to_vmem [thread:$0]  (!%p9770_p5), %s10626_s23, 3072, %s1227_s4, [#allocation26], %s10618_s10, %s10618_s10, %s10617_s1  }
 0x26e   : > { %s1251_s7 = sshll.u32 %s9518_s8, 4  ;;  %s9519_s3 = smov [#allocation33]   ;;  %s1252_s7 = int_to_ptr.vmem [resolvable:$true] %s1251_s7 }
 0x26f   : > { %s1276_s5 = sshll.u32 %s9519_s3, 4  ;;  %s1277_s5 = int_to_ptr.vmem [resolvable:$true] %s1276_s5 }
 0x272   : > { %s9214_s9 = scalar_lea.hbm %s10627_s6, 16 }
 0x273   : > { %p9215_p11 = scmp.ne.s32.totalorder %s10627_s6, %s9214_s9  ;;  %p9221_p13 = scmp.lt.u32.totalorder %s9214_s9, %s10627_s6 }
 0x275   : > { %p9217_p12 = pnand %p9215_p11, %p9782_p7 }
 0x277   : > { %p9218_p2 = pneg %p9217_p12 }
 0x279   : > { %p9223_p0 = pnand %p9221_p13, %p9218_p2 }
 0x27b   : > { %9226 = shalt.err (!%p9223_p0)
}
 0x27c   : > { %s9227_s11 = scalar_lea.vmem %s1252_s7, 16  ;;  %s9234_s4 = scalar_lea.vmem %s1252_s7, 32 }
 0x27d   : > { %p9228_p3 = scmp.ne.s32.totalorder %s1252_s7, %s9227_s11  ;;  %p9235_p6 = scmp.lt.s32.totalorder %s1252_s7, %s1252_s7 }
 0x27e   : > { %p9236_p8 = scmp.lt.s32.totalorder %s9234_s4, %s9227_s11 }
 0x27f   : > { %p9230_p1 = pnand %p9228_p3, %p9782_p7 }
 0x280   : > { %p9237_p9 = por %p9236_p8, %p9235_p6 }
 0x281   : > { %p9231_p4 = pneg %p9230_p1 }
 0x283   : > { %p9238_p10 = pnand %p9237_p9, %p9231_p4 }
 0x285   : > { %9241 = shalt.err (!%p9238_p10)
}
 0x286   : > { %s10628_s8 = sld [smem:[#allocation77_spill]] }
 0x287   : > { %8422 = dma.hbm_to_vmem [thread:$0]  (!%p9770_p5), %s10627_s6, 16, %s1252_s7, [#allocation29]  }
 0x28c   : > { %s9242_s3 = scalar_lea.hbm %s10628_s8, 16 }
 0x28d   : > { %p9243_p11 = scmp.ne.s32.totalorder %s10628_s8, %s9242_s3  ;;  %p9249_p13 = scmp.lt.u32.totalorder %s9242_s3, %s10628_s8 }
 0x28f   : > { %p9245_p12 = pnand %p9243_p11, %p9782_p7 }
 0x291   : > { %p9246_p2 = pneg %p9245_p12 }
 0x293   : > { %p9251_p0 = pnand %p9249_p13, %p9246_p2 }
 0x295   : > { %9254 = shalt.err (!%p9251_p0)
}
 0x296   : > { %s9255_s11 = scalar_lea.vmem %s1277_s5, 16  ;;  %s9262_s9 = scalar_lea.vmem %s1277_s5, 32 }
 0x297   : > { %p9256_p3 = scmp.ne.s32.totalorder %s1277_s5, %s9255_s11  ;;  %p9263_p6 = scmp.lt.s32.totalorder %s1277_s5, %s1277_s5 }
 0x298   : > { %p9264_p8 = scmp.lt.s32.totalorder %s9262_s9, %s9255_s11 }
 0x299   : > { %p9258_p1 = pnand %p9256_p3, %p9782_p7 }
 0x29a   : > { %p9265_p9 = por %p9264_p8, %p9263_p6 }
 0x29b   : > { %p9259_p4 = pneg %p9258_p1 }
 0x29d   : > { %p9266_p10 = pnand %p9265_p9, %p9259_p4 }
 0x29f   : > { %9269 = shalt.err (!%p9266_p10)
}
 0x2a0   : > { %s10629_s7 = sld [smem:[#allocation81_spill]]  ;;  %s9520_s4 = smov [#allocation36]  }
 0x2a1   : > { %8428 = dma.hbm_to_vmem [thread:$0]  (!%p9770_p5), %s10628_s8, 16, %s1277_s5, [#allocation32]  }
 0x2a2   : > { %s1304_s3 = sshll.u32 %s9520_s4, 4  ;;  %s9521_s6 = smov [#allocation39]   ;;  %s1305_s3 = int_to_ptr.vmem [resolvable:$true] %s1304_s3 }
 0x2a3   : > { %s1333_s12 = sshll.u32 %s9521_s6, 4  ;;  %s1334_s12 = int_to_ptr.vmem [resolvable:$true] %s1333_s12 }
 0x2a6   : > { %s9270_s13 = scalar_lea.hbm %s10629_s7, 16 }
 0x2a7   : > { %p9271_p11 = scmp.ne.s32.totalorder %s10629_s7, %s9270_s13  ;;  %p9277_p13 = scmp.lt.u32.totalorder %s9270_s13, %s10629_s7 }
 0x2a9   : > { %p9273_p12 = pnand %p9271_p11, %p9782_p7 }
 0x2ab   : > { %p9274_p2 = pneg %p9273_p12 }
 0x2ad   : > { %p9279_p0 = pnand %p9277_p13, %p9274_p2 }
 0x2af   : > { %9282 = shalt.err (!%p9279_p0)
}
 0x2b0   : > { %s9283_s11 = scalar_lea.vmem %s1305_s3, 16  ;;  %s9290_s5 = scalar_lea.vmem %s1305_s3, 32 }
 0x2b1   : > { %p9284_p3 = scmp.ne.s32.totalorder %s1305_s3, %s9283_s11  ;;  %p9291_p6 = scmp.lt.s32.totalorder %s1305_s3, %s1305_s3 }
 0x2b2   : > { %p9292_p8 = scmp.lt.s32.totalorder %s9290_s5, %s9283_s11 }
 0x2b3   : > { %p9286_p1 = pnand %p9284_p3, %p9782_p7 }
 0x2b4   : > { %p9293_p9 = por %p9292_p8, %p9291_p6 }
 0x2b5   : > { %p9287_p4 = pneg %p9286_p1 }
 0x2b7   : > { %p9294_p10 = pnand %p9293_p9, %p9287_p4 }
 0x2b9   : > { %9297 = shalt.err (!%p9294_p10)
}
 0x2ba   : > { %s10630_s6 = sld [smem:[#allocation85_spill]] }
 0x2bb   : > { %8434 = dma.hbm_to_vmem [thread:$0]  (!%p9770_p5), %s10629_s7, 16, %s1305_s3, [#allocation35]  }
 0x2c0   : > { %s9298_s13 = scalar_lea.hbm %s10630_s6, 12288 }
 0x2c1   : > { %p9299_p11 = scmp.ne.s32.totalorder %s10630_s6, %s9298_s13  ;;  %p9305_p13 = scmp.lt.u32.totalorder %s9298_s13, %s10630_s6 }
 0x2c3   : > { %p9301_p12 = pnand %p9299_p11, %p9782_p7 }
 0x2c5   : > { %p9302_p2 = pneg %p9301_p12 }
 0x2c7   : > { %p9307_p0 = pnand %p9305_p13, %p9302_p2 }
 0x2c9   : > { %9310 = shalt.err (!%p9307_p0)
}
 0x2ca   : > { %s9311_s9 = scalar_lea.vmem %s1334_s12, 12288  ;;  %p9319_p6 = scmp.lt.s32.totalorder %s1334_s12, %s1334_s12 }
 0x2cb   : > { %p9312_p3 = scmp.ne.s32.totalorder %s1334_s12, %s9311_s9  ;;  %p9320_p8 = scmp.lt.s32.totalorder %s9311_s9, %s9311_s9 }
 0x2cd   : > { %p9314_p1 = pnand %p9312_p3, %p9782_p7  ;;  %p9321_p9 = por %p9320_p8, %p9319_p6 }
 0x2cf   : > { %p9315_p4 = pneg %p9314_p1 }
 0x2d1   : > { %p9322_p10 = pnand %p9321_p9, %p9315_p4 }
 0x2d3   : > { %9325 = shalt.err (!%p9322_p10)
}
 0x2d4   : > { %s10631_s4 = smov 16   ;;  %s10632_s3 = smov 256  }
 0x2d5   : > { %s10633_s11 = sld [smem:[#allocation90_spill]]  ;;  %s9522_s5 = smov [#allocation42]  }
 0x2d6   : > { %8440 = dma.hbm_to_vmem [thread:$0]  (!%p9770_p5), %s10630_s6, 12288, %s1334_s12, [#allocation38], %s10632_s3, %s10632_s3, %s10631_s4  }
 0x2d7   : > { %s1371_s13 = sshll.u32 %s9522_s5, 4  ;;  %s9523_s7 = smov [#allocation43]   ;;  %s1372_s13 = int_to_ptr.vmem [resolvable:$true] %s1371_s13 }
 0x2d8   : > { %s1384_s8 = sshll.u32 %s9523_s7, 4  ;;  %s1385_s8 = int_to_ptr.vmem [resolvable:$true] %s1384_s8 }
 0x2db   : > { %s9326_s9 = scalar_lea.hbm %s10633_s11, 4096 }
 0x2dc   : > { %p9327_p11 = scmp.ne.s32.totalorder %s10633_s11, %s9326_s9  ;;  %p9333_p13 = scmp.lt.u32.totalorder %s9326_s9, %s10633_s11 }
 0x2de   : > { %p9329_p12 = pnand %p9327_p11, %p9782_p7 }
 0x2e0   : > { %p9330_p2 = pneg %p9329_p12 }
 0x2e2   : > { %p9335_p0 = pnand %p9333_p13, %p9330_p2 }
 0x2e4   : > { %9338 = shalt.err (!%p9335_p0)
}
 0x2e5   : > { %s9339_s16 = scalar_lea.vmem %s1372_s13, 4096  ;;  %p9347_p6 = scmp.lt.s32.totalorder %s1372_s13, %s1372_s13 }
 0x2e6   : > { %p9340_p3 = scmp.ne.s32.totalorder %s1372_s13, %s9339_s16  ;;  %p9348_p8 = scmp.lt.s32.totalorder %s9339_s16, %s9339_s16 }
 0x2e8   : > { %p9342_p1 = pnand %p9340_p3, %p9782_p7  ;;  %p9349_p9 = por %p9348_p8, %p9347_p6 }
 0x2ea   : > { %p9343_p4 = pneg %p9342_p1 }
 0x2ec   : > { %p9350_p10 = pnand %p9349_p9, %p9343_p4 }
 0x2ee   : > { %9353 = shalt.err (!%p9350_p10)
}
 0x2ef   : > { %s10634_s12 = sld [smem:[#allocation91_spill]] }
 0x2f0   : > { %8446 = dma.hbm_to_vmem [thread:$0]  (!%p9770_p5), %s10633_s11, 4096, %s1372_s13, [#allocation41], %s10618_s10, %s10618_s10, %s10617_s1  }
 0x2f5   : > { %s9354_s7 = scalar_lea.hbm %s10634_s12, 4096 }
 0x2f6   : > { %p9355_p11 = scmp.ne.s32.totalorder %s10634_s12, %s9354_s7  ;;  %p9361_p13 = scmp.lt.u32.totalorder %s9354_s7, %s10634_s12 }
 0x2f8   : > { %p9357_p12 = pnand %p9355_p11, %p9782_p7 }
 0x2fa   : > { %p9358_p2 = pneg %p9357_p12 }
 0x2fc   : > { %p9363_p0 = pnand %p9361_p13, %p9358_p2 }
 0x2fe   : > { %9366 = shalt.err (!%p9363_p0)
}
 0x2ff   : > { %s9367_s16 = scalar_lea.vmem %s1385_s8, 4096  ;;  %p9375_p6 = scmp.lt.s32.totalorder %s1385_s8, %s1385_s8 }
 0x300   : > { %p9368_p3 = scmp.ne.s32.totalorder %s1385_s8, %s9367_s16  ;;  %p9376_p8 = scmp.lt.s32.totalorder %s9367_s16, %s9367_s16 }
 0x302   : > { %p9370_p1 = pnand %p9368_p3, %p9782_p7  ;;  %p9377_p9 = por %p9376_p8, %p9375_p6 }
 0x304   : > { %p9371_p4 = pneg %p9370_p1 }
 0x306   : > { %p9378_p10 = pnand %p9377_p9, %p9371_p4 }
 0x308   : > { %9381 = shalt.err (!%p9378_p10)
}
 0x309   : > { %8449 = dma.hbm_to_vmem [thread:$0]  (!%p9770_p5), %s10634_s12, 4096, %s1385_s8, [#allocation44], %s10618_s10, %s10618_s10, %s10617_s1  }
 0x30a   : > { %p10635_p11 = scmp.ne.s32.totalorder %s10614_s22, 0 }
 0x30b   : > { %p10636_p12 = scmp.eq.s32.totalorder (!%p10635_p11), %s9753_s18, 0 }
 0x30c   : > { %1420 = sbr.rel (%p10635_p11) target bundleno = 5351 (0x14e7), region = 188 }
 0x313   : > { %9387 = dma.done.wait (%p10636_p12), [#allocation3], 1024   ;;  %p10637_p7 = pmov %p10636_p12 }
 0x315   : > { %9389 = vsyncadd (%p10637_p7), [#allocation3], 4294966272  ;;  %p10638_p2 = pmov %p10637_p7 }
 0x317   : > { %9391 = dma.done.wait (%p10638_p2), [#allocation5], 32   ;;  %p10639_p13 = pmov %p10638_p2 }
 0x318   : > { %p10640_p0 = pmov %p10638_p2 }
 0x319   : > { %9393 = vsyncadd (%p10639_p13), [#allocation5], 4294967264 }
 0x31a   : > { %9395 = dma.done.wait (%p10640_p0), [#allocation8], 6160   ;;  %p10641_p5 = pmov %p10640_p0 }
 0x31b   : > { %p10642_p3 = pmov %p10640_p0 }
 0x31c   : > { %9397 = vsyncadd (%p10641_p5), [#allocation8], 4294961136 }
 0x31d   : > { %9399 = dma.done.wait (%p10642_p3), [#allocation11], 32   ;;  %p10643_p1 = pmov %p10640_p0 }
 0x31e   : > { %p10644_p4 = pmov %p10640_p0 }
 0x31f   : > { %9401 = vsyncadd (%p10643_p1), [#allocation11], 4294967264 }
 0x320   : > { %9403 = dma.done.wait (%p10644_p4), [#allocation14], 6160   ;;  %p10645_p6 = pmov %p10640_p0 }
 0x321   : > { %p10646_p8 = pmov %p10640_p0 }
 0x322   : > { %9405 = vsyncadd (%p10645_p6), [#allocation14], 4294961136 }
 0x323   : > { %9407 = dma.done.wait (%p10646_p8), [#allocation17], 144   ;;  %p10647_p9 = pmov %p10640_p0 }
 0x324   : > { %p10648_p10 = pmov %p10640_p0 }
 0x325   : > { %9409 = vsyncadd (%p10647_p9), [#allocation17], 4294967152 }
 0x326   : > { %9411 = dma.done.wait (%p10648_p10), [#allocation20], 2176   ;;  %p10649_p11 = pmov %p10640_p0 }
 0x327   : > { %p10650_p12 = pmov %p10640_p0 }
 0x328   : > { %9413 = vsyncadd (%p10649_p11), [#allocation20], 4294965120 }
 0x329   : > { %9415 = dma.done.wait (%p10650_p12), [#allocation23], 2064   ;;  %p10651_p7 = pmov %p10640_p0 }
 0x32a   : > { %p10652_p2 = pmov %p10640_p0 }
 0x32b   : > { %9417 = vsyncadd (%p10651_p7), [#allocation23], 4294965232 }
 0x32c   : > { %9419 = dma.done.wait (%p10652_p2), [#allocation26], 3088   ;;  %p10653_p13 = pmov %p10640_p0 }
 0x32e   : > { %9421 = vsyncadd (%p10653_p13), [#allocation26], 4294964208 }
 0x32f   : > { %9423 = dma.done.wait (%p10640_p0), [#allocation29], 32   ;;  %p10654_p5 = pmov %p10640_p0 }
 0x330   : > { %p10655_p3 = pmov %p10640_p0 }
 0x331   : > { %9425 = vsyncadd (%p10654_p5), [#allocation29], 4294967264 }
 0x332   : > { %9427 = dma.done.wait (%p10655_p3), [#allocation32], 32   ;;  %p10656_p1 = pmov %p10640_p0 }
 0x333   : > { %p10657_p4 = pmov %p10640_p0 }
 0x334   : > { %9429 = vsyncadd (%p10656_p1), [#allocation32], 4294967264 }
 0x335   : > { %9431 = dma.done.wait (%p10657_p4), [#allocation35], 32   ;;  %p10658_p6 = pmov %p10640_p0 }
 0x336   : > { %p10659_p8 = pmov %p10640_p0 }
 0x337   : > { %9433 = vsyncadd (%p10658_p6), [#allocation35], 4294967264 }
 0x338   : > { %9435 = dma.done.wait (%p10659_p8), [#allocation38], 24576   ;;  %p10660_p9 = pmov %p10640_p0 }
 0x339   : > { %p10661_p10 = pmov %p10640_p0 }
 0x33a   : > { %9437 = vsyncadd (%p10660_p9), [#allocation38], 4294942720 }
 0x33b   : > { %9439 = dma.done.wait (%p10661_p10), [#allocation41], 28672   ;;  %p10662_p11 = pmov %p10640_p0 }
 0x33c   : > { %p10663_p12 = pmov %p10640_p0 }
 0x33d   : > { %9441 = vsyncadd (%p10662_p11), [#allocation41], 4294938624 }
 0x33e   : > { %9443 = dma.done.wait (%p10663_p12), [#allocation44], 4096   ;;  %p10664_p7 = pmov %p10640_p0 }
 0x33f   : > { %s10665_s22 = sld [smem:[#allocation60_spill]]  ;;  %p1630_p2 = scmp.lt.s32.totalorder %s9753_s18, 1  ;;  %v1642_v0 = vld [vmem:[#allocation2] sm:$0xff]  ;;  %v1643_v1 = vld [vmem:[#allocation2 + $0x8] sm:$0xff]  ;;  %v1644_v2 = vld [vmem:[#allocation2 + $0x10] sm:$0xff]  ;;  %vm1657_vm0 = vcmask 523264  }
 0x340   : > { %9445 = vsyncadd (%p10664_p7), [#allocation44], 4294963200  ;;  %v7343_v3 = vpack.c.bf16 %v1643_v1, %v1642_v0  ;;  %v1645_v4 = vld [vmem:[#allocation2 + $0x18] sm:$0xff]  ;;  %v1646_v6 = vld [vmem:[#allocation2 + $0x20] sm:$0xff]  ;;  %s10666_s1 = sld [smem:[#allocation92_spill]]  ;;  %vm1759_vm1 = vcmask 130048  }
 0x341   : > { %s10677_s18 = smov (!%p1630_p2, %s9753_s18), 1  ;;  %v7347_v5 = vpack.c.bf16 %v1645_v4, %v1644_v2  ;;  %v1647_v7 = vld [vmem:[#allocation2 + $0x28] sm:$0xff]  ;;  %v1648_v10 = vld [vmem:[#allocation2 + $0x30] sm:$0xff]  ;;  %v1649_v11 = vld [vmem:[#allocation2 + $0x38] sm:$0xff]  ;;  %vm9525_vm2 = vmmov 0   ;;  %vm3007_vm3 = vcmask 64512  }
 0x342   : > { %s6401_s2 = sshll.u32 %s10677_s18, 4  ;;  %7344 = vmatprep.subr.bf16.mxu1 %v7343_v3  ;;  %v7351_v9 = vpack.c.bf16 %v1647_v7, %v1646_v6  ;;  %v7355_v12 = vpack.c.bf16 %v1649_v11, %v1648_v10  ;;  %v10196_v15 = vld [vmem:[%s9730_s20] sm:$0xff]  ;;  %v1859_v27 = vld [vmem:[#allocation9 + $0x88] sm:$0xff]  ;;  %v1860_v31 = vld [vmem:[#allocation9 + $0x90] sm:$0xff]  ;;  %s10667_s10 = sld [smem:[#allocation76_spill]] }
 0x343   : > { %7346 = vmatpush3.bf16.msra.mxu1 %v7343_v3  ;;  %6868 = vmatprep.mubr.msk.f32.mxu0 %vm1759_vm1, %v10196_v15  ;;  %v6315_v16 = vld [vmem:[#allocation4] ss:$0 sm:$0xff]  ;;  %v6318_v18 = vld [vmem:[#allocation6] ss:$0 sm:$0xff]  ;;  %v6319_v21 = vld [vmem:[#allocation7] ss:$0 sm:$0xff] }
 0x344   : > { %7348 = vmatprep.subr.bf16.mxu1 %v7347_v5  ;;  %v1858_v26 = vld [vmem:[#allocation9 + $0x80] sm:$0xff]  ;;  %v1861_v32 = vld [vmem:[#allocation9 + $0x98] sm:$0xff]  ;;  %v1863_v37 = vld [vmem:[#allocation9 + $0xa8] sm:$0xff]  ;;  %s10668_s8 = sld [smem:[#allocation78_spill]]  ;;  %s10669_s4 = sld [smem:[#allocation79_spill]] }
 0x345   : > { %s1634_s0 = scalar_lea.vmem %s10665_s22, %s6401_s2  ;;  %v7363_v30 = vpack.c.bf16 %v1859_v27, %v1858_v26  ;;  %v10210_v34 = vld [vmem:[%s9730_s20 + $0x8] sm:$0xff]  ;;  %v7367_v35 = vpack.c.bf16 %v1861_v32, %v1860_v31  ;;  %v1864_v39 = vld [vmem:[#allocation9 + $0xb0] sm:$0xff]  ;;  %v1865_v40 = vld [vmem:[#allocation9 + $0xb8] sm:$0xff]  ;;  %s10670_s3 = sld [smem:[#allocation82_spill]] }
 0x346   : > { %v1640_v8 = vld [vmem:[%s1634_s0] sm:$0xff]  ;;  %v1641_v13 = vld [vmem:[%s1634_s0 + $0x8] sm:$0xff]  ;;  %v7375_v41 = vpack.c.bf16 %v1865_v40, %v1864_v39  ;;  %v1868_v45 = vld [vmem:[#allocation9 + $0xd0] sm:$0xff]  ;;  %s10671_s5 = sld [smem:[#allocation83_spill]]  ;;  %s10672_s13 = sld [smem:[#allocation86_spill]] }
 0x347   : > { %6784 = vmatprep.mubr.msk.f32.mxu1 %vm1657_vm0, %v1640_v8  ;;  %7350 = vmatpush3.bf16.msra.mxu1 %v7347_v5  ;;  %v1757_v14 = vld [vmem:[%s10666_s1] sm:$0xff]  ;;  %v10207_v33 = vld [vmem:[%s10666_s1 + $0x8] sm:$0xff]  ;;  %v1872_v51 = vld [vmem:[#allocation9 + $0xf0] sm:$0xff]  ;;  %s10673_s9 = sld [smem:[#allocation87_spill]]  ;;  %s10674_s7 = sld [smem:[#allocation88_spill]] }
 0x348   : > { %7352 = vmatprep.subr.bf16.mxu1 %v7351_v9  ;;  %v1862_v36 = vld [vmem:[#allocation9 + $0xa0] sm:$0xff]  ;;  %v1867_v43 = vld [vmem:[#allocation9 + $0xc8] sm:$0xff]  ;;  %v1869_v46 = vld [vmem:[#allocation9 + $0xd8] sm:$0xff]  ;;  %s10675_s16 = sld [smem:[#allocation89_spill]]  ;;  %s1639_s22 = scalar_lea.vmem %s9745_s17, %s6401_s2 }
 0x349   : > { %v7371_v38 = vpack.c.bf16 %v1863_v37, %v1862_v36  ;;  %v1866_v42 = vld [vmem:[#allocation9 + $0xc0] sm:$0xff]  ;;  %v7383_v47 = vpack.c.bf16 %v1869_v46, %v1868_v45  ;;  %v1871_v49 = vld [vmem:[#allocation9 + $0xe8] sm:$0xff]  ;;  %v1873_v52 = vld [vmem:[#allocation9 + $0xf8] sm:$0xff] }
 0x34a   : > { %v7379_v44 = vpack.c.bf16 %v1867_v43, %v1866_v42  ;;  %v1870_v48 = vld [vmem:[#allocation9 + $0xe0] sm:$0xff]  ;;  %v7391_v53 = vpack.c.bf16 %v1873_v52, %v1872_v51  ;;  %v1842_v55 = vld [vmem:[#allocation9 + $0x8] sm:$0xff]  ;;  %v1843_v57 = vld [vmem:[#allocation9 + $0x10] sm:$0xff] }
 0x34b   : > { %7354 = vmatpush3.bf16.msra.mxu1 %v7351_v9  ;;  %v7387_v50 = vpack.c.bf16 %v1871_v49, %v1870_v48  ;;  %v1841_v54 = vld [vmem:[#allocation9] sm:$0xff]  ;;  %v1844_v58 = vld [vmem:[#allocation9 + $0x18] sm:$0xff]  ;;  %v1846_v61 = vld [vmem:[#allocation9 + $0x28] sm:$0xff] }
 0x34c   : > { %7356 = vmatprep.subr.bf16.mxu1 %v7355_v12  ;;  %v7395_v56 = vpack.c.bf16 %v1842_v55, %v1841_v54  ;;  %v7399_v59 = vpack.c.bf16 %v1844_v58, %v1843_v57  ;;  %v1845_v60 = vld [vmem:[#allocation9 + $0x20] sm:$0xff]  ;;  %v1847_v63 = vld [vmem:[#allocation9 + $0x30] sm:$0xff]  ;;  %v1848_v0 = vld [vmem:[#allocation9 + $0x38] sm:$0xff] }
 0x34d   : > { %v7403_v62 = vpack.c.bf16 %v1846_v61, %v1845_v60  ;;  %v7407_v1 = vpack.c.bf16 %v1848_v0, %v1847_v63  ;;  %v1849_v2 = vld [vmem:[#allocation9 + $0x40] sm:$0xff]  ;;  %v1850_v3 = vld [vmem:[#allocation9 + $0x48] sm:$0xff]  ;;  %v1851_v5 = vld [vmem:[#allocation9 + $0x50] sm:$0xff] }
 0x34e   : > { %v7411_v4 = vpack.c.bf16 %v1850_v3, %v1849_v2  ;;  %v1852_v6 = vld [vmem:[#allocation9 + $0x58] sm:$0xff]  ;;  %v1853_v8 = vld [vmem:[#allocation9 + $0x60] sm:$0xff]  ;;  %v1854_v9 = vld [vmem:[#allocation9 + $0x68] sm:$0xff] }
 0x34f   : > { %7358 = vmatpush3.bf16.msra.mxu1 %v7355_v12  ;;  %v7415_v7 = vpack.c.bf16 %v1852_v6, %v1851_v5  ;;  %v7419_v10 = vpack.c.bf16 %v1854_v9, %v1853_v8  ;;  %v1855_v11 = vld [vmem:[#allocation9 + $0x70] sm:$0xff]  ;;  %v1856_v12 = vld [vmem:[#allocation9 + $0x78] sm:$0xff]  ;;  %v2112_v27 = vld [vmem:[#allocation9 + $0x120] sm:$0xff] }
 0x350   : > { %v2115_v31 = vld [vmem:[#allocation9 + $0x138] sm:$0xff]  ;;  %v2117_v36 = vld [vmem:[#allocation9 + $0x148] sm:$0xff]  ;;  %v6325_v51 = vld [vmem:[#allocation12] ss:$0 sm:$0xff] }
 0x351   : > { %v2119_v39 = vld [vmem:[#allocation9 + $0x158] sm:$0xff]  ;;  %v2121_v42 = vld [vmem:[#allocation9 + $0x168] sm:$0xff]  ;;  %v6326_v54 = vld [vmem:[#allocation13] ss:$0 sm:$0xff] }
 0x352   : > { %6785 = vmatmul.mubr.msk.f32.vlgmr.msra.gmra.mrb[0].mxu1 %vm1657_vm0, %v1641_v13  ;;  %v7423_v13 = vpack.c.bf16 %v1856_v12, %v1855_v11  ;;  %v2123_v45 = vld [vmem:[#allocation9 + $0x178] sm:$0xff]  ;;  %v2323_v60 = vld [vmem:[#allocation15 + $0x88] sm:$0xff]  ;;  %v2326_v3 = vld [vmem:[#allocation15 + $0xa0] sm:$0xff] }
 0x353   : > { %6791 = vmatprep.mubr.msk.f32.mxu1 %vm1759_vm1, %v1757_v14  ;;  %v2324_v0 = vld [vmem:[#allocation15 + $0x90] sm:$0xff]  ;;  %v2330_v9 = vld [vmem:[#allocation15 + $0xc0] sm:$0xff] }
 0x354   : > { %v2328_v6 = vld [vmem:[#allocation15 + $0xb0] sm:$0xff] }
 0x355   : > { %v2332_v12 = vld [vmem:[#allocation15 + $0xd0] sm:$0xff] }
 0x425   : > { %v6786_v17 = vpop.f32.mrb[0].mxu1 }
 0x426   : > { %v10200_v19 = vadd.f32 %v6786_v17, %v6315_v16  ;;  %v1730_v20 = vpop.f32.mrb[1].mxu1 }
 0x427   : > { %v10202_v22 = vadd.f32 %v6315_v16, %v1730_v20  ;;  %v2109_v16 = vld [vmem:[#allocation9 + $0x108] sm:$0xff]  ;;  %v2111_v20 = vld [vmem:[#allocation9 + $0x118] sm:$0xff] }
 0x428   : > { %v1747_v23 = vmul.f32 %v6318_v18, %v10200_v19 }
 0x429   : > { %v1746_v24 = vmul.f32 %v6318_v18, %v10202_v22  ;;  %v2110_v18 = vld [vmem:[#allocation9 + $0x110] sm:$0xff] }
 0x42a   : > { %v1756_v25 = vadd.f32 %v6319_v21, %v1747_v23 }
 0x42b   : > { %v1755_v28 = vadd.f32 %v6319_v21, %v1746_v24 }
 0x42d   : > { %v7359_v29 = vpack.c.bf16 %v1756_v25, %v1755_v28 }
 0x42f   : > { %7360 = vmatprep.subr.bf16.mxu1 %v7359_v29  ;;  %7428 = vmatprep.subr.bf16.mxu0 %v7359_v29 }
 0x430   : > { %7362 = vmatpush3.bf16.msra.mxu1 %v7359_v29  ;;  %7430 = vmatpush3.bf16.msra.mxu0 %v7359_v29 }
 0x431   : > { %7364 = vmatprep.subr.bf16.mxu1 %v7363_v30 }
 0x433   : > { %6792 = vmatmul.mubr.msk.f32.vlgmr.msra.gmra.mrb[2].mxu1 %vm1759_vm1, %v10207_v33  ;;  %6869 = vmatmul.mubr.msk.f32.vlgmr.msra.gmra.mrb[0].mxu0 %vm1759_vm1, %v10210_v34 }
 0x434   : > { %7366 = vmatpush3.bf16.msra.mxu1 %v7363_v30  ;;  %6826 = vmatprep.mubr.f32.mxu1 %v1755_v28  ;;  %v2113_v28 = vld [vmem:[#allocation9 + $0x128] sm:$0xff]  ;;  %v2114_v30 = vld [vmem:[#allocation9 + $0x130] sm:$0xff] }
 0x435   : > { %7368 = vmatprep.subr.bf16.mxu1 %v7367_v35  ;;  %6910 = vmatprep.mubr.msk.f32.mxu0 %vm1759_vm1, %v1757_v14  ;;  %v2108_v14 = vld [vmem:[#allocation9 + $0x100] sm:$0xff]  ;;  %v7439_v29 = vpack.c.bf16 %v2113_v28, %v2112_v27  ;;  %v7443_v32 = vpack.c.bf16 %v2115_v31, %v2114_v30  ;;  %v2310_v30 = vld [vmem:[#allocation15 + $0x28] sm:$0xff] }
 0x436   : > { %v7431_v17 = vpack.c.bf16 %v2109_v16, %v2108_v14  ;;  %v2335_v16 = vld [vmem:[#allocation15 + $0xe8] sm:$0xff]  ;;  %v2308_v27 = vld [vmem:[#allocation15 + $0x18] sm:$0xff] }
 0x438   : > { %7370 = vmatpush3.bf16.msra.mxu1 %v7367_v35  ;;  %v2116_v35 = vld [vmem:[#allocation9 + $0x140] sm:$0xff] }
 0x439   : > { %7372 = vmatprep.subr.bf16.mxu1 %v7371_v38  ;;  %v7447_v37 = vpack.c.bf16 %v2117_v36, %v2116_v35  ;;  %v2312_v35 = vld [vmem:[#allocation15 + $0x38] sm:$0xff] }
 0x43c   : > { %7374 = vmatpush3.bf16.msra.mxu1 %v7371_v38  ;;  %v2118_v38 = vld [vmem:[#allocation9 + $0x150] sm:$0xff] }
 0x43d   : > { %7376 = vmatprep.subr.bf16.mxu1 %v7375_v41  ;;  %v7451_v40 = vpack.c.bf16 %v2119_v39, %v2118_v38  ;;  %v2314_v38 = vld [vmem:[#allocation15 + $0x48] sm:$0xff] }
 0x440   : > { %7378 = vmatpush3.bf16.msra.mxu1 %v7375_v41  ;;  %v2120_v41 = vld [vmem:[#allocation9 + $0x160] sm:$0xff] }
 0x441   : > { %7380 = vmatprep.subr.bf16.mxu1 %v7379_v44  ;;  %v7455_v43 = vpack.c.bf16 %v2121_v42, %v2120_v41  ;;  %v2316_v41 = vld [vmem:[#allocation15 + $0x58] sm:$0xff] }
 0x444   : > { %7382 = vmatpush3.bf16.msra.mxu1 %v7379_v44  ;;  %v2122_v44 = vld [vmem:[#allocation9 + $0x170] sm:$0xff] }
 0x445   : > { %7384 = vmatprep.subr.bf16.mxu1 %v7383_v47  ;;  %v7459_v46 = vpack.c.bf16 %v2123_v45, %v2122_v44  ;;  %v2318_v44 = vld [vmem:[#allocation15 + $0x68] sm:$0xff] }
 0x448   : > { %7386 = vmatpush3.bf16.msra.mxu1 %v7383_v47  ;;  %v6324_v47 = vld [vmem:[#allocation10] ss:$0 sm:$0xff] }
 0x449   : > { %7388 = vmatprep.subr.bf16.mxu1 %v7387_v50 }
 0x44c   : > { %7390 = vmatpush3.bf16.msra.mxu1 %v7387_v50 }
 0x44d   : > { %7392 = vmatprep.subr.bf16.mxu1 %v7391_v53 }
 0x450   : > { %7394 = vmatpush3.bf16.msra.mxu1 %v7391_v53 }
 0x451   : > { %7396 = vmatprep.subr.bf16.mxu1 %v7395_v56 }
 0x453   : > { %6827 = vmatmul.mubr.f32.vlgmr.msra.gmra.mrb[4].mxu1 %v1756_v25  ;;  %v7435_v25 = vpack.c.bf16 %v2111_v20, %v2110_v18  ;;  %v2336_v18 = vld [vmem:[#allocation15 + $0xf0] sm:$0xff]  ;;  %v2337_v20 = vld [vmem:[#allocation15 + $0xf8] sm:$0xff] }
 0x454   : > { %7398 = vmatpush3.bf16.msra.mxu1 %v7395_v56 }
 0x455   : > { %7400 = vmatprep.subr.bf16.mxu1 %v7399_v59 }
 0x458   : > { %7402 = vmatpush3.bf16.msra.mxu1 %v7399_v59  ;;  %v2322_v59 = vld [vmem:[#allocation15 + $0x80] sm:$0xff] }
 0x459   : > { %7404 = vmatprep.subr.bf16.mxu1 %v7403_v62  ;;  %v7467_v63 = vpack.c.bf16 %v2323_v60, %v2322_v59  ;;  %v2570_v60 = vld [vmem:[#allocation15 + $0x130] sm:$0xff] }
 0x45c   : > { %7406 = vmatpush3.bf16.msra.mxu1 %v7403_v62 }
 0x45d   : > { %7408 = vmatprep.subr.bf16.mxu1 %v7407_v1 }
 0x460   : > { %7410 = vmatpush3.bf16.msra.mxu1 %v7407_v1  ;;  %v2325_v1 = vld [vmem:[#allocation15 + $0x98] sm:$0xff] }
 0x461   : > { %7412 = vmatprep.subr.bf16.mxu1 %v7411_v4  ;;  %v7471_v2 = vpack.c.bf16 %v2325_v1, %v2324_v0  ;;  %v2572_v0 = vld [vmem:[#allocation15 + $0x140] sm:$0xff]  ;;  %v2574_v1 = vld [vmem:[#allocation15 + $0x150] sm:$0xff] }
 0x464   : > { %7414 = vmatpush3.bf16.msra.mxu1 %v7411_v4  ;;  %v2327_v4 = vld [vmem:[#allocation15 + $0xa8] sm:$0xff] }
 0x465   : > { %7416 = vmatprep.subr.bf16.mxu1 %v7415_v7  ;;  %v7475_v5 = vpack.c.bf16 %v2327_v4, %v2326_v3  ;;  %v2576_v4 = vld [vmem:[#allocation15 + $0x160] sm:$0xff] }
 0x468   : > { %7418 = vmatpush3.bf16.msra.mxu1 %v7415_v7  ;;  %v2329_v7 = vld [vmem:[#allocation15 + $0xb8] sm:$0xff] }
 0x469   : > { %7420 = vmatprep.subr.bf16.mxu1 %v7419_v10  ;;  %v7479_v8 = vpack.c.bf16 %v2329_v7, %v2328_v6  ;;  %v2578_v6 = vld [vmem:[#allocation15 + $0x170] sm:$0xff]  ;;  %v2579_v7 = vld [vmem:[#allocation15 + $0x178] sm:$0xff] }
 0x46c   : > { %7422 = vmatpush3.bf16.msra.mxu1 %v7419_v10  ;;  %v2331_v10 = vld [vmem:[#allocation15 + $0xc8] sm:$0xff] }
 0x46d   : > { %7424 = vmatprep.subr.bf16.mxu1 %v7423_v13  ;;  %v7483_v11 = vpack.c.bf16 %v2331_v10, %v2330_v9 }
 0x470   : > { %7426 = vmatpush3.bf16.msra.mxu1 %v7423_v13  ;;  %v2333_v13 = vld [vmem:[#allocation15 + $0xd8] sm:$0xff] }
 0x471   : > { %7432 = vmatprep.subr.bf16.mxu1 %v7431_v17  ;;  %v7487_v14 = vpack.c.bf16 %v2333_v13, %v2332_v12  ;;  %v9526_v12 = vmov 0.0   ;;  %v2903_v13 = vld [vmem:[#allocation22] sm:$0xff] }
 0x506   : > { %v6793_v21 = vpop.f32.mrb[2].mxu1  ;;  %v6870_v23 = vpop.f32.mrb[0].mxu0 }
 0x507   : > { %v1832_v24 = vpop.f32.mrb[3].mxu1  ;;  %v2098_v26 = vpop.f32.mrb[1].mxu0 }
 0x508   : > { %6861 = vmatprep.mubr.f32.mxu1 %v1832_v24  ;;  %v2306_v24 = vld [vmem:[#allocation15 + $0x8] sm:$0xff] }
 0x509   : > { %6862 = vmatmul.mubr.f32.vlgmr.msra.gmra.mrb[4].mxu1 %v6793_v21  ;;  %v7495_v21 = vpack.c.bf16 %v2337_v20, %v2336_v18  ;;  %v2907_v20 = vld [vmem:[#allocation22 + $0x20] sm:$0xff] }
 0x50a   : > { %7434 = vmatpush3.bf16.msra.mxu1 %v7431_v17  ;;  %6903 = vmatprep.mubr.f32.mxu1 %v2098_v26  ;;  %v2307_v26 = vld [vmem:[#allocation15 + $0x10] sm:$0xff] }
 0x50b   : > { %7436 = vmatprep.subr.bf16.mxu1 %v7435_v25  ;;  %v7503_v28 = vpack.c.bf16 %v2308_v27, %v2307_v26  ;;  %v2911_v27 = vld [vmem:[#allocation22 + $0x40] sm:$0xff] }
 0x50e   : > { %7438 = vmatpush3.bf16.msra.mxu1 %v7435_v25 }
 0x50f   : > { %7440 = vmatprep.subr.bf16.mxu1 %v7439_v29 }
 0x512   : > { %7442 = vmatpush3.bf16.msra.mxu1 %v7439_v29  ;;  %v2309_v29 = vld [vmem:[#allocation15 + $0x20] sm:$0xff] }
 0x513   : > { %7444 = vmatprep.subr.bf16.mxu1 %v7443_v32  ;;  %v7507_v31 = vpack.c.bf16 %v2310_v30, %v2309_v29  ;;  %v2913_v30 = vld [vmem:[#allocation22 + $0x50] sm:$0xff] }
 0x516   : > { %7446 = vmatpush3.bf16.msra.mxu1 %v7443_v32  ;;  %v2311_v32 = vld [vmem:[#allocation15 + $0x30] sm:$0xff] }
 0x517   : > { %7448 = vmatprep.subr.bf16.mxu1 %v7447_v37  ;;  %v7511_v36 = vpack.c.bf16 %v2312_v35, %v2311_v32  ;;  %v6331_v35 = vld [vmem:[#allocation16] ss:$0 sm:$0xff] }
 0x51a   : > { %7450 = vmatpush3.bf16.msra.mxu1 %v7447_v37  ;;  %v2313_v37 = vld [vmem:[#allocation15 + $0x40] sm:$0xff] }
 0x51b   : > { %7452 = vmatprep.subr.bf16.mxu1 %v7451_v40  ;;  %v7515_v39 = vpack.c.bf16 %v2314_v38, %v2313_v37 }
 0x51e   : > { %7454 = vmatpush3.bf16.msra.mxu1 %v7451_v40  ;;  %v2315_v40 = vld [vmem:[#allocation15 + $0x50] sm:$0xff] }
 0x51f   : > { %7456 = vmatprep.subr.bf16.mxu1 %v7455_v43  ;;  %v7519_v42 = vpack.c.bf16 %v2316_v41, %v2315_v40 }
 0x522   : > { %7458 = vmatpush3.bf16.msra.mxu1 %v7455_v43  ;;  %v2317_v43 = vld [vmem:[#allocation15 + $0x60] sm:$0xff] }
 0x523   : > { %7460 = vmatprep.subr.bf16.mxu1 %v7459_v46  ;;  %v7523_v45 = vpack.c.bf16 %v2318_v44, %v2317_v43  ;;  %v2668_v43 = vld [vmem:[#allocation18] sm:$0xff]  ;;  %v2817_v44 = vld [vmem:[#allocation21] sm:$0xff] }
 0x526   : > { %7462 = vmatpush3.bf16.msra.mxu1 %v7459_v46  ;;  %v2319_v46 = vld [vmem:[#allocation15 + $0x70] sm:$0xff] }
 0x529   : > { %6904 = vmatmul.mubr.f32.vlgmr.msra.gmra.mrb[4].mxu1 %v6870_v23  ;;  %v2305_v23 = vld [vmem:[#allocation15] sm:$0xff] }
 0x52a   : > { %v7499_v25 = vpack.c.bf16 %v2306_v24, %v2305_v23  ;;  %7029 = vmatprep.mubr.msk.f32.mxu1 %vm9525_vm2, %v9526_v12  ;;  %v2909_v24 = vld [vmem:[#allocation22 + $0x30] sm:$0xff] }
 0x5fc   : > { %v6905_v48 = vpop.f32.mrb[4].mxu1 }
 0x5fd   : > { %v2209_v49 = vadd.f32 %v6905_v48, %v6324_v47  ;;  %v2190_v50 = vpop.f32.mrb[5].mxu1 }
 0x5fe   : > { %v2208_v52 = vadd.f32 %v6324_v47, %v2190_v50  ;;  %v2320_v47 = vld [vmem:[#allocation15 + $0x78] sm:$0xff]  ;;  %v2565_v50 = vld [vmem:[#allocation15 + $0x108] sm:$0xff] }
 0x5ff   : > { %v2211_v53 = vmax.f32 %v2209_v49, 0.0  ;;  %v7527_v48 = vpack.c.bf16 %v2320_v47, %v2319_v46  ;;  %v2564_v49 = vld [vmem:[#allocation15 + $0x100] sm:$0xff]  ;;  %v2820_v47 = vld [vmem:[#allocation21 + $0x18] sm:$0xff] }
 0x600   : > { %v2210_v55 = vmax.f32 %v2208_v52, 0.0 }
 0x601   : > { %v2220_v56 = vmul.f32 %v6325_v51, %v2211_v53  ;;  %v7535_v53 = vpack.c.bf16 %v2565_v50, %v2564_v49  ;;  %v2821_v49 = vld [vmem:[#allocation21 + $0x20] sm:$0xff]  ;;  %v2822_v50 = vld [vmem:[#allocation21 + $0x28] sm:$0xff] }
 0x602   : > { %v2219_v57 = vmul.f32 %v6325_v51, %v2210_v55  ;;  %v2567_v55 = vld [vmem:[#allocation15 + $0x118] sm:$0xff] }
 0x603   : > { %v2229_v58 = vadd.f32 %v6326_v54, %v2220_v56 }
 0x604   : > { %v2228_v61 = vadd.f32 %v6326_v54, %v2219_v57  ;;  %v2566_v54 = vld [vmem:[#allocation15 + $0x110] sm:$0xff]  ;;  %v2568_v57 = vld [vmem:[#allocation15 + $0x120] sm:$0xff] }
 0x605   : > { %v7539_v56 = vpack.c.bf16 %v2567_v55, %v2566_v54  ;;  %v2825_v55 = vld [vmem:[#allocation21 + $0x40] sm:$0xff] }
 0x606   : > { %v10217_v62 = vpack.c.bf16 %v2229_v58, %v2228_v61 }
 0x608   : > { %7464 = vmatprep.subr.bf16.mxu0 %v10217_v62 }
 0x609   : > { %7466 = vmatpush3.bf16.msra.mxu0 %v10217_v62 }
 0x60a   : > { %7468 = vmatprep.subr.bf16.mxu0 %v7467_v63 }
 0x60c   : > { %6911 = vmatmul.mubr.msk.f32.vlgmr.msra.gmra.mrb[2].mxu0 %vm1759_vm1, %v10207_v33  ;;  %v2334_v33 = vld [vmem:[#allocation15 + $0xe0] sm:$0xff] }
 0x60d   : > { %7470 = vmatpush3.bf16.msra.mxu0 %v7467_v63  ;;  %6945 = vmatprep.mubr.f32.mxu0 %v2228_v61  ;;  %v7491_v17 = vpack.c.bf16 %v2335_v16, %v2334_v33  ;;  %v2571_v61 = vld [vmem:[#allocation15 + $0x138] sm:$0xff]  ;;  %v2905_v16 = vld [vmem:[#allocation22 + $0x10] sm:$0xff] }
 0x60e   : > { %7472 = vmatprep.subr.bf16.mxu0 %v7471_v2  ;;  %v7547_v63 = vpack.c.bf16 %v2571_v61, %v2570_v60  ;;  %v2829_v61 = vld [vmem:[#allocation21 + $0x60] sm:$0xff] }
 0x611   : > { %7474 = vmatpush3.bf16.msra.mxu0 %v7471_v2  ;;  %v2575_v2 = vld [vmem:[#allocation15 + $0x158] sm:$0xff] }
 0x612   : > { %7476 = vmatprep.subr.bf16.mxu0 %v7475_v5  ;;  %v7555_v3 = vpack.c.bf16 %v2575_v2, %v2574_v1  ;;  %v2831_v2 = vld [vmem:[#allocation21 + $0x70] sm:$0xff] }
 0x615   : > { %7478 = vmatpush3.bf16.msra.mxu0 %v7475_v5 }
 0x616   : > { %7480 = vmatprep.subr.bf16.mxu0 %v7479_v8 }
 0x619   : > { %7482 = vmatpush3.bf16.msra.mxu0 %v7479_v8  ;;  %v7563_v8 = vpack.c.bf16 %v2579_v7, %v2578_v6 }
 0x61a   : > { %7484 = vmatprep.subr.bf16.mxu0 %v7483_v11 }
 0x61d   : > { %7486 = vmatpush3.bf16.msra.mxu0 %v7483_v11  ;;  %v9524_v11 = vmov 0.0|0.0  }
 0x61e   : > { %7488 = vmatprep.subr.bf16.mxu0 %v7487_v14  ;;  %7567 = vmatprep.subr.bf16.mxu1 %v9524_v11 }
 0x621   : > { %7490 = vmatpush3.bf16.msra.mxu0 %v7487_v14  ;;  %v2904_v14 = vld [vmem:[#allocation22 + $0x8] sm:$0xff] }
 0x622   : > { %7492 = vmatprep.subr.bf16.mxu0 %v7491_v17  ;;  %v7598_v33 = vpack.c.bf16 %v2904_v14, %v2903_v13  ;;  %v3081_v14 = vld [vmem:[#allocation27] sm:$0xff] }
 0x625   : > { %7494 = vmatpush3.bf16.msra.mxu0 %v7491_v17  ;;  %v2906_v17 = vld [vmem:[#allocation22 + $0x18] sm:$0xff] }
 0x626   : > { %7496 = vmatprep.subr.bf16.mxu0 %v7495_v21  ;;  %v7601_v18 = vpack.c.bf16 %v2906_v17, %v2905_v16  ;;  %v3083_v16 = vld [vmem:[#allocation27 + $0x10] sm:$0xff] }
 0x629   : > { %7498 = vmatpush3.bf16.msra.mxu0 %v7495_v21  ;;  %v2908_v21 = vld [vmem:[#allocation22 + $0x28] sm:$0xff] }
 0x62a   : > { %7500 = vmatprep.subr.bf16.mxu0 %v7499_v25  ;;  %v7604_v23 = vpack.c.bf16 %v2908_v21, %v2907_v20  ;;  %v3085_v21 = vld [vmem:[#allocation27 + $0x20] sm:$0xff] }
 0x62c   : > { %6946 = vmatmul.mubr.f32.vlgmr.msra.gmra.mrb[4].mxu0 %v2229_v58  ;;  %v2569_v58 = vld [vmem:[#allocation15 + $0x128] sm:$0xff] }
 0x62d   : > { %7502 = vmatpush3.bf16.msra.mxu0 %v7499_v25  ;;  %v7543_v59 = vpack.c.bf16 %v2569_v58, %v2568_v57  ;;  %v2910_v25 = vld [vmem:[#allocation22 + $0x38] sm:$0xff]  ;;  %v2827_v58 = vld [vmem:[#allocation21 + $0x50] sm:$0xff] }
 0x62e   : > { %7504 = vmatprep.subr.bf16.mxu0 %v7503_v28  ;;  %v7607_v26 = vpack.c.bf16 %v2910_v25, %v2909_v24  ;;  %v3087_v25 = vld [vmem:[#allocation27 + $0x30] sm:$0xff] }
 0x631   : > { %7506 = vmatpush3.bf16.msra.mxu0 %v7503_v28  ;;  %v2912_v28 = vld [vmem:[#allocation22 + $0x48] sm:$0xff] }
 0x632   : > { %7508 = vmatprep.subr.bf16.mxu0 %v7507_v31  ;;  %v7610_v29 = vpack.c.bf16 %v2912_v28, %v2911_v27 }
 0x635   : > { %7510 = vmatpush3.bf16.msra.mxu0 %v7507_v31  ;;  %v2914_v31 = vld [vmem:[#allocation22 + $0x58] sm:$0xff] }
 0x636   : > { %7512 = vmatprep.subr.bf16.mxu0 %v7511_v36  ;;  %v7613_v32 = vpack.c.bf16 %v2914_v31, %v2913_v30  ;;  %v6334_v30 = vld [vmem:[#allocation24] ss:$0 sm:$0xff] }
 0x639   : > { %7514 = vmatpush3.bf16.msra.mxu0 %v7511_v36 }
 0x63a   : > { %7516 = vmatprep.subr.bf16.mxu0 %v7515_v39 }
 0x63d   : > { %7518 = vmatpush3.bf16.msra.mxu0 %v7515_v39 }
 0x63e   : > { %7520 = vmatprep.subr.bf16.mxu0 %v7519_v42 }
 0x641   : > { %7522 = vmatpush3.bf16.msra.mxu0 %v7519_v42 }
 0x642   : > { %7524 = vmatprep.subr.bf16.mxu0 %v7523_v45 }
 0x645   : > { %7526 = vmatpush3.bf16.msra.mxu0 %v7523_v45  ;;  %v2818_v45 = vld [vmem:[#allocation21 + $0x8] sm:$0xff] }
 0x646   : > { %7528 = vmatprep.subr.bf16.mxu0 %v7527_v48  ;;  %v7574_v46 = vpack.c.bf16 %v2818_v45, %v2817_v44  ;;  %v3092_v45 = vld [vmem:[#allocation27 + $0x50] sm:$0xff] }
 0x649   : > { %7530 = vmatpush3.bf16.msra.mxu0 %v7527_v48 }
 0x64a   : > { %7532 = vmatprep.subr.bf16.mxu0 %v10217_v62 }
 0x6df   : > { %v6912_v51 = vpop.f32.mrb[2].mxu0 }
 0x6e0   : > { %v2296_v52 = vpop.f32.mrb[3].mxu0 }
 0x6e1   : > { %6980 = vmatprep.mubr.f32.mxu0 %v2296_v52  ;;  %v2823_v52 = vld [vmem:[#allocation21 + $0x30] sm:$0xff] }
 0x6e2   : > { %6981 = vmatmul.mubr.f32.vlgmr.msra.gmra.mrb[4].mxu0 %v6912_v51  ;;  %v7580_v51 = vpack.c.bf16 %v2822_v50, %v2821_v49  ;;  %v3096_v49 = vld [vmem:[#allocation27 + $0x70] sm:$0xff]  ;;  %v3097_v50 = vld [vmem:[#allocation27 + $0x78] sm:$0xff] }
 0x6e3   : > { %7534 = vmatpush3.bf16.msra.mxu0 %v10217_v62  ;;  %6987 = vmatprep.mubr.msk.f32.mxu0 %vm1759_vm1, %v10196_v15  ;;  %v2573_v62 = vld [vmem:[#allocation15 + $0x148] sm:$0xff] }
 0x6e4   : > { %7536 = vmatprep.subr.bf16.mxu0 %v7535_v53  ;;  %v7551_v15 = vpack.c.bf16 %v2573_v62, %v2572_v0  ;;  %v2915_v0 = vld [vmem:[#allocation22 + $0x60] sm:$0xff] }
 0x6e6   : > { %6988 = vmatmul.mubr.msk.f32.vlgmr.msra.gmra.mrb[6].mxu0 %vm1759_vm1, %v10210_v34  ;;  %v2577_v34 = vld [vmem:[#allocation15 + $0x168] sm:$0xff] }
 0x6e7   : > { %7538 = vmatpush3.bf16.msra.mxu0 %v7535_v53  ;;  %v7559_v5 = vpack.c.bf16 %v2577_v34, %v2576_v4  ;;  %v2824_v53 = vld [vmem:[#allocation21 + $0x38] sm:$0xff]  ;;  %v2917_v4 = vld [vmem:[#allocation22 + $0x70] sm:$0xff] }
 0x6e8   : > { %7540 = vmatprep.subr.bf16.mxu0 %v7539_v56  ;;  %v7583_v54 = vpack.c.bf16 %v2824_v53, %v2823_v52  ;;  %v10294_v52 = vld [vmem:[%s9740_s25] sm:$0xff] }
 0x6e9   : > { %v3319_v53 = vld [vmem:[#allocation27 + $0x80] sm:$0xff] }
 0x6eb   : > { %7542 = vmatpush3.bf16.msra.mxu0 %v7539_v56  ;;  %v2826_v56 = vld [vmem:[#allocation21 + $0x48] sm:$0xff] }
 0x6ec   : > { %7544 = vmatprep.subr.bf16.mxu0 %v7543_v59  ;;  %v7586_v57 = vpack.c.bf16 %v2826_v56, %v2825_v55  ;;  %v3321_v55 = vld [vmem:[#allocation27 + $0x90] sm:$0xff] }
 0x6ef   : > { %7546 = vmatpush3.bf16.msra.mxu0 %v7543_v59  ;;  %v2828_v59 = vld [vmem:[#allocation21 + $0x58] sm:$0xff] }
 0x6f0   : > { %7548 = vmatprep.subr.bf16.mxu0 %v7547_v63  ;;  %v7589_v60 = vpack.c.bf16 %v2828_v59, %v2827_v58  ;;  %v3323_v59 = vld [vmem:[#allocation27 + $0xa0] sm:$0xff] }
 0x6f3   : > { %7550 = vmatpush3.bf16.msra.mxu0 %v7547_v63  ;;  %v2830_v63 = vld [vmem:[#allocation21 + $0x68] sm:$0xff] }
 0x6f4   : > { %7552 = vmatprep.subr.bf16.mxu0 %v7551_v15  ;;  %v7592_v62 = vpack.c.bf16 %v2830_v63, %v2829_v61  ;;  %v3325_v63 = vld [vmem:[#allocation27 + $0xb0] sm:$0xff] }
 0x6f7   : > { %7554 = vmatpush3.bf16.msra.mxu0 %v7551_v15  ;;  %v2916_v15 = vld [vmem:[#allocation22 + $0x68] sm:$0xff] }
 0x6f8   : > { %7556 = vmatprep.subr.bf16.mxu0 %v7555_v3  ;;  %v7616_v1 = vpack.c.bf16 %v2916_v15, %v2915_v0  ;;  %v3326_v0 = vld [vmem:[#allocation27 + $0xb8] sm:$0xff] }
 0x6fb   : > { %7558 = vmatpush3.bf16.msra.mxu0 %v7555_v3  ;;  %v2832_v3 = vld [vmem:[#allocation21 + $0x78] sm:$0xff] }
 0x6fc   : > { %7560 = vmatprep.subr.bf16.mxu0 %v7559_v5  ;;  %v7595_v34 = vpack.c.bf16 %v2832_v3, %v2831_v2 }
 0x6ff   : > { %7562 = vmatpush3.bf16.msra.mxu0 %v7559_v5  ;;  %v2918_v5 = vld [vmem:[#allocation22 + $0x78] sm:$0xff] }
 0x700   : > { %7564 = vmatprep.subr.bf16.mxu0 %v7563_v8  ;;  %v7619_v6 = vpack.c.bf16 %v2918_v5, %v2917_v4  ;;  %v3496_v5 = vld [vmem:[%s10667_s10] sm:$0xff] }
 0x703   : > { %7566 = vmatpush3.bf16.msra.mxu0 %v7563_v8 }
 0x704   : > { %7597 = vmatprep.subr.bf16.mxu0 %v9524_v11 }
 0x7b9   : > { %v6989_v9 = vpop.f32.mrb[6].mxu0 }
 0x7ba   : > { %v2554_v10 = vpop.f32.mrb[7].mxu0 }
 0x7bb   : > { %7022 = vmatprep.mubr.f32.mxu0 %v2554_v10 }
 0x7bc   : > { %7023 = vmatmul.mubr.f32.vlgmr.msra.gmra.mrb[4].mxu0 %v6989_v9 }
 0x7bd   : > { %7106 = vmatprep.mubr.msk.f32.mxu0 %vm9525_vm2, %v9526_v12  ;;  %7599 = vmatpush3.bf16.msra.mxu0 %v7598_v33  ;;  %v3082_v33 = vld [vmem:[#allocation27 + $0x8] sm:$0xff] }
 0x7be   : > { %7600 = vmatprep.subr.bf16.mxu0 %v9524_v11  ;;  %v7634_v17 = vpack.c.bf16 %v3082_v33, %v3081_v14  ;;  %v3501_v14 = vld [vmem:[%s10667_s10 + $0x28] sm:$0xff] }
 0x7c1   : > { %7602 = vmatpush3.bf16.msra.mxu0 %v7601_v18  ;;  %v3084_v18 = vld [vmem:[#allocation27 + $0x18] sm:$0xff] }
 0x7c2   : > { %7603 = vmatprep.subr.bf16.mxu0 %v9524_v11  ;;  %v7637_v20 = vpack.c.bf16 %v3084_v18, %v3083_v16  ;;  %v3502_v16 = vld [vmem:[%s10667_s10 + $0x30] sm:$0xff] }
 0x7c5   : > { %7605 = vmatpush3.bf16.msra.mxu0 %v7604_v23  ;;  %v3086_v23 = vld [vmem:[#allocation27 + $0x28] sm:$0xff] }
 0x7c6   : > { %7606 = vmatprep.subr.bf16.mxu0 %v9524_v11  ;;  %v7640_v24 = vpack.c.bf16 %v3086_v23, %v3085_v21  ;;  %v3505_v21 = vld [vmem:[%s10667_s10 + $0x48] sm:$0xff] }
 0x7c9   : > { %7608 = vmatpush3.bf16.msra.mxu0 %v7607_v26  ;;  %v3088_v26 = vld [vmem:[#allocation27 + $0x38] sm:$0xff] }
 0x7ca   : > { %7609 = vmatprep.subr.bf16.mxu0 %v9524_v11  ;;  %v7643_v27 = vpack.c.bf16 %v3088_v26, %v3087_v25  ;;  %v3507_v25 = vld [vmem:[%s10667_s10 + $0x58] sm:$0xff] }
 0x7cd   : > { %7611 = vmatpush3.bf16.msra.mxu0 %v7610_v29 }
 0x7ce   : > { %7612 = vmatprep.subr.bf16.mxu0 %v9524_v11 }
 0x7d1   : > { %7614 = vmatpush3.bf16.msra.mxu0 %v7613_v32 }
 0x7d2   : > { %7615 = vmatprep.subr.bf16.mxu0 %v9524_v11 }
 0x7d5   : > { %7617 = vmatpush3.bf16.msra.mxu0 %v7616_v1 }
 0x7d6   : > { %7618 = vmatprep.subr.bf16.mxu0 %v9524_v11 }
 0x7d9   : > { %7620 = vmatpush3.bf16.msra.mxu0 %v7619_v6  ;;  %v3497_v6 = vld [vmem:[%s10667_s10 + $0x8] sm:$0xff] }
 0x7da   : > { %7633 = vmatprep.subr.bf16.mxu0 %v9524_v11 }
 0x88f   : > { %v7024_v36 = vpop.f32.mrb[4].mxu0 }
 0x890   : > { %v2665_v37 = vadd.f32 %v7024_v36, %v6331_v35  ;;  %v2646_v38 = vpop.f32.mrb[5].mxu0  ;;  %v6335_v36 = vld [vmem:[#allocation25] ss:$0 sm:$0xff] }
 0x891   : > { %v2664_v39 = vadd.f32 %v6331_v35, %v2646_v38  ;;  %v3091_v38 = vld [vmem:[#allocation27 + $0x48] sm:$0xff] }
 0x892   : > { %v10242_v40 = vadd.f32 %v2665_v37, %v10200_v19  ;;  %v2742_v19 = vld [vmem:[#allocation19] sm:$0xff]  ;;  %v3090_v37 = vld [vmem:[#allocation27 + $0x40] sm:$0xff] }
 0x893   : > { %v10245_v41 = vadd.f32 %v2664_v39, %v10202_v22  ;;  %v2819_v22 = vld [vmem:[#allocation21 + $0x10] sm:$0xff]  ;;  %v7622_v44 = vpack.c.bf16 %v3091_v38, %v3090_v37 }
 0x894   : > { %v7577_v48 = vpack.c.bf16 %v2820_v47, %v2819_v22  ;;  %v3094_v22 = vld [vmem:[#allocation27 + $0x60] sm:$0xff]  ;;  %v3095_v47 = vld [vmem:[#allocation27 + $0x68] sm:$0xff] }
 0x895   : > { %v7568_v42 = vpack.c.bf16 %v10242_v40, %v10245_v41 }
 0x897   : > { %7569 = vmatpush3.bf16.msra.mxu1 %v7568_v42 }
 0x898   : > { %7570 = vmatprep.subr.bf16.mxu1 %v9524_v11 }
 0x89a   : > { %7030 = vmatmul.mubr.msk.f32.vlgmr.msra.gmra.mrb[6].mxu1 %vm1759_vm1, %v2668_v43  ;;  %v10279_v43 = vld [vmem:[%s9735_s14] sm:$0xff] }
 0x89b   : > { %7572 = vmatpush3.bf16.msra.mxu1 %v7568_v42  ;;  %7036 = vmatprep.mubr.msk.f32.mxu1 %vm9525_vm2, %v9526_v12 }
 0x89c   : > { %7573 = vmatprep.subr.bf16.mxu1 %v9524_v11 }
 0x89e   : > { %7037 = vmatmul.mubr.msk.f32.vlgmr.msra.gmra.mrb[8].mxu1 %vm1759_vm1, %v2742_v19  ;;  %v3093_v19 = vld [vmem:[#allocation27 + $0x58] sm:$0xff] }
 0x89f   : > { %7575 = vmatpush3.bf16.msra.mxu1 %v7574_v46  ;;  %7071 = vmatprep.mubr.msk.f32.mxu1 %vm9525_vm2, %v9526_v12  ;;  %v7625_v46 = vpack.c.bf16 %v3093_v19, %v3092_v45 }
 0x8a0   : > { %7576 = vmatprep.subr.bf16.mxu1 %v9524_v11 }
 0x8a3   : > { %7578 = vmatpush3.bf16.msra.mxu1 %v7577_v48  ;;  %v7628_v48 = vpack.c.bf16 %v3095_v47, %v3094_v22  ;;  %v6343_v47 = vld [vmem:[#allocation31] ss:$0 sm:$0xff] }
 0x8a4   : > { %7579 = vmatprep.subr.bf16.mxu1 %v9524_v11 }
 0x8a7   : > { %7581 = vmatpush3.bf16.msra.mxu1 %v7580_v51  ;;  %v7631_v51 = vpack.c.bf16 %v3097_v50, %v3096_v49  ;;  %v6346_v49 = vld [vmem:[%s10667_s10 + $0x88] sm:$0xff] }
 0x8a8   : > { %7582 = vmatprep.subr.bf16.mxu1 %v9524_v11 }
 0x8ab   : > { %7584 = vmatpush3.bf16.msra.mxu1 %v7583_v54  ;;  %v3320_v54 = vld [vmem:[#allocation27 + $0x88] sm:$0xff] }
 0x8ac   : > { %7585 = vmatprep.subr.bf16.mxu1 %v9524_v11  ;;  %v7646_v56 = vpack.c.bf16 %v3320_v54, %v3319_v53  ;;  %v6347_v54 = vld [vmem:[%s10667_s10 + $0x90] sm:$0xff] }
 0x8af   : > { %7587 = vmatpush3.bf16.msra.mxu1 %v7586_v57  ;;  %v3322_v57 = vld [vmem:[#allocation27 + $0x98] sm:$0xff] }
 0x8b0   : > { %7588 = vmatprep.subr.bf16.mxu1 %v9524_v11  ;;  %v7649_v58 = vpack.c.bf16 %v3322_v57, %v3321_v55  ;;  %v6348_v55 = vld [vmem:[%s10667_s10 + $0x98] sm:$0xff]  ;;  %v6349_v57 = vld [vmem:[%s10667_s10 + $0xa0] sm:$0xff] }
 0x8b3   : > { %7590 = vmatpush3.bf16.msra.mxu1 %v7589_v60  ;;  %v3324_v60 = vld [vmem:[#allocation27 + $0xa8] sm:$0xff] }
 0x8b4   : > { %7591 = vmatprep.subr.bf16.mxu1 %v9524_v11  ;;  %v7652_v61 = vpack.c.bf16 %v3324_v60, %v3323_v59  ;;  %v6352_v60 = vld [vmem:[%s10667_s10 + $0xb8] sm:$0xff] }
 0x8b7   : > { %7593 = vmatpush3.bf16.msra.mxu1 %v7592_v62  ;;  %v7655_v62 = vpack.c.bf16 %v3326_v0, %v3325_v63  ;;  %v6353_v63 = vld [vmem:[%s10667_s10 + $0xc0] sm:$0xff]  ;;  %v6354_v0 = vld [vmem:[%s10667_s10 + $0xc8] sm:$0xff] }
 0x8b8   : > { %7594 = vmatprep.subr.bf16.mxu1 %v9524_v11 }
 0x8bb   : > { %7596 = vmatpush3.bf16.msra.mxu1 %v7595_v34 }
 0x8bc   : > { %7109 = vmatprep.subr.mxu1 %v9526_v12 }
 0x96d   : > { %v2738_v7 = vpop.f32.mrb[6].mxu1 }
 0x96e   : > { %v7031_v8 = vpop.f32.mrb[7].mxu1 }
 0x96f   : > { %v7682_v8 = vpack.c.bf16 %v3497_v6, %v3496_v5  ;;  %v6359_v5 = vld [vmem:[%s10667_s10 + $0xf0] sm:$0xff]  ;;  %v6360_v6 = vld [vmem:[%s10667_s10 + $0xf8] sm:$0xff] }
 0x971   : > { %v2812_v9 = vpop.f32.mrb[8].mxu1 }
 0x972   : > { %v2816_v10 = vmax.f32 %v2738_v7, %v2812_v9  ;;  %v7038_v13 = vpop.f32.mrb[9].mxu1  ;;  %v3498_v7 = vld [vmem:[%s10667_s10 + $0x10] sm:$0xff]  ;;  %v3499_v9 = vld [vmem:[%s10667_s10 + $0x18] sm:$0xff] }
 0x973   : > { %v3500_v13 = vld [vmem:[%s10667_s10 + $0x20] sm:$0xff] }
 0x974   : > { %7072 = vmatmul.mubr.f32.vlgmr.msra.gmra.mrb[10].mxu1 %v2816_v10  ;;  %7107 = vmatmul.mubr.f32.vlgmr.msra.gmra.mrb[8].mxu0 %v2816_v10  ;;  %v7685_v10 = vpack.c.bf16 %v3499_v9, %v3498_v7  ;;  %v7688_v33 = vpack.c.bf16 %v3501_v14, %v3500_v13  ;;  %v7679_v7 = vpack.c.bf16 %v6360_v6, %v6359_v5  ;;  %v6363_v9 = vld [vmem:[%s10667_s10 + $0x108] sm:$0xff]  ;;  %v6364_v13 = vld [vmem:[%s10667_s10 + $0x110] sm:$0xff]  ;;  %v6365_v14 = vld [vmem:[%s10667_s10 + $0x118] sm:$0xff] }
 0x975   : > { %7111 = vmatprep.mubr.msk.f32.mxu1 %vm9525_vm2, %v9526_v12  ;;  %7149 = vmatprep.mubr.msk.f32.mxu0 %vm9525_vm2, %v9526_v12  ;;  %v3925_v5 = vld [vmem:[%s10669_s4 + $0x28] sm:$0xff] }
 0x976   : > { %7635 = vmatpush3.bf16.msra.mxu0 %v7634_v17  ;;  %v3503_v17 = vld [vmem:[%s10667_s10 + $0x38] sm:$0xff] }
 0x977   : > { %7636 = vmatprep.subr.bf16.mxu0 %v9524_v11  ;;  %v7691_v18 = vpack.c.bf16 %v3503_v17, %v3502_v16  ;;  %v6366_v16 = vld [vmem:[%s10667_s10 + $0x120] sm:$0xff]  ;;  %v6367_v17 = vld [vmem:[%s10667_s10 + $0x128] sm:$0xff] }
 0x97a   : > { %7638 = vmatpush3.bf16.msra.mxu0 %v7637_v20  ;;  %v3504_v20 = vld [vmem:[%s10667_s10 + $0x40] sm:$0xff] }
 0x97b   : > { %7639 = vmatprep.subr.bf16.mxu0 %v9524_v11  ;;  %v7694_v23 = vpack.c.bf16 %v3505_v21, %v3504_v20  ;;  %v6368_v20 = vld [vmem:[%s10667_s10 + $0x130] sm:$0xff]  ;;  %v6369_v21 = vld [vmem:[%s10667_s10 + $0x138] sm:$0xff] }
 0x97e   : > { %7641 = vmatpush3.bf16.msra.mxu0 %v7640_v24  ;;  %v3506_v24 = vld [vmem:[%s10667_s10 + $0x50] sm:$0xff] }
 0x97f   : > { %7642 = vmatprep.subr.bf16.mxu0 %v9524_v11  ;;  %v7697_v26 = vpack.c.bf16 %v3507_v25, %v3506_v24  ;;  %v6371_v24 = vld [vmem:[%s10667_s10 + $0x148] sm:$0xff] }
 0x982   : > { %7644 = vmatpush3.bf16.msra.mxu0 %v7643_v27  ;;  %v3508_v27 = vld [vmem:[%s10667_s10 + $0x60] sm:$0xff] }
 0x983   : > { %7176 = vmatprep.subr.mxu0 %v9526_v12 }
 0xa47   : > { %v2899_v28 = vpop.f32.mrb[10].mxu1  ;;  %v2985_v29 = vpop.f32.mrb[8].mxu0 }
 0xa48   : > { %v10275_v31 = vmax.f32 %v2899_v28, %v2985_v29  ;;  %v7073_v32 = vpop.f32.mrb[11].mxu1  ;;  %v7108_v35 = vpop.f32.mrb[9].mxu0  ;;  %v3509_v28 = vld [vmem:[%s10667_s10 + $0x68] sm:$0xff] }
 0xa49   : > { %v7700_v29 = vpack.c.bf16 %v3509_v28, %v3508_v27  ;;  %v3511_v32 = vld [vmem:[%s10667_s10 + $0x78] sm:$0xff]  ;;  %v6383_v28 = vld [vmem:[#allocation34] ss:$0 sm:$0xff] }
 0xa4a   : > { %v2997_v39 = vmul.f32 %v6334_v30, %v10275_v31  ;;  %v3510_v30 = vld [vmem:[%s10667_s10 + $0x70] sm:$0xff]  ;;  %v6373_v27 = vld [vmem:[%s10667_s10 + $0x158] sm:$0xff] }
 0xa4b   : > { %v7703_v35 = vpack.c.bf16 %v3511_v32, %v3510_v30  ;;  %v6374_v30 = vld [vmem:[%s10667_s10 + $0x160] sm:$0xff]  ;;  %v6375_v32 = vld [vmem:[%s10667_s10 + $0x168] sm:$0xff] }
 0xa4c   : > { %v3005_v42 = vadd.f32 %v6335_v36, %v2997_v39 }
 0xa4e   : > { %7110 = vmatpush3.msra.mxu1 %v3005_v42 }
 0xa4f   : > { %7112 = vmatmul.mubr.msk.f32.vlgmr.msra.gmra.mrb[12].mxu1 %vm3007_vm3, %v10279_v43  ;;  %7621 = vmatprep.subr.bf16.mxu1 %v9524_v11 }
 0xa50   : > { %7623 = vmatpush3.bf16.msra.mxu1 %v7622_v44  ;;  %7130 = vmatprep.mubr.msk.f32.mxu1 %vm9525_vm2, %v9526_v12 }
 0xa51   : > { %7624 = vmatprep.subr.bf16.mxu1 %v9524_v11 }
 0xa54   : > { %7626 = vmatpush3.bf16.msra.mxu1 %v7625_v46  ;;  %v6342_v46 = vld [vmem:[#allocation30] ss:$0 sm:$0xff] }
 0xa55   : > { %7627 = vmatprep.subr.bf16.mxu1 %v9524_v11 }
 0xa58   : > { %7629 = vmatpush3.bf16.msra.mxu1 %v7628_v48  ;;  %v6345_v48 = vld [vmem:[%s10667_s10 + $0x80] sm:$0xff] }
 0xa59   : > { %7630 = vmatprep.subr.bf16.mxu1 %v9524_v11  ;;  %v7658_v53 = vpack.c.bf16 %v6346_v49, %v6345_v48 }
 0xa5c   : > { %7632 = vmatpush3.bf16.msra.mxu1 %v7631_v51 }
 0xa5d   : > { %7152 = vmatprep.subr.mxu1 %v9526_v12 }
 0xa5f   : > { %7131 = vmatmul.mubr.msk.f32.vlgmr.msra.gmra.mrb[14].mxu1 %vm1657_vm0, %v3005_v42 }
 0xa60   : > { %7153 = vmatpush3.msra.mxu1 %v3005_v42  ;;  %7154 = vmatprep.mubr.msk.f32.mxu1 %vm9525_vm2, %v9526_v12  ;;  %v6341_v42 = vld [vmem:[#allocation28] ss:$0 sm:$0xff] }
 0xa61   : > { %7645 = vmatprep.subr.bf16.mxu1 %v9524_v11 }
 0xa63   : > { %7155 = vmatmul.mubr.msk.f32.vlgmr.msra.gmra.mrb[16].mxu1 %vm3007_vm3, %v10294_v52 }
 0xa64   : > { %7173 = vmatprep.mubr.msk.f32.mxu1 %vm9525_vm2, %v9526_v12  ;;  %7647 = vmatpush3.bf16.msra.mxu1 %v7646_v56  ;;  %v7661_v56 = vpack.c.bf16 %v6348_v55, %v6347_v54 }
 0xa65   : > { %7648 = vmatprep.subr.bf16.mxu1 %v9524_v11 }
 0xa68   : > { %7650 = vmatpush3.bf16.msra.mxu1 %v7649_v58  ;;  %v6350_v58 = vld [vmem:[%s10667_s10 + $0xa8] sm:$0xff] }
 0xa69   : > { %7651 = vmatprep.subr.bf16.mxu1 %v9524_v11  ;;  %v7664_v59 = vpack.c.bf16 %v6350_v58, %v6349_v57  ;;  %v6378_v58 = vld [vmem:[#allocation33] ss:$0 sm:$0xff] }
 0xa6c   : > { %7653 = vmatpush3.bf16.msra.mxu1 %v7652_v61 }
 0xa6d   : > { %7654 = vmatprep.subr.bf16.mxu1 %v9524_v11 }
 0xa70   : > { %7656 = vmatpush3.bf16.msra.mxu1 %v7655_v62  ;;  %v7670_v62 = vpack.c.bf16 %v6354_v0, %v6353_v63  ;;  %v3921_v63 = vld [vmem:[%s10669_s4 + $0x8] sm:$0xff] }
 0xa71   : > { %7681 = vmatprep.subr.bf16.mxu1 %v9524_v11 }
 0xb22   : > { %v3077_v15 = vpop.f32.mrb[12].mxu1 }
 0xb23   : > { %v7113_v1 = vpop.f32.mrb[13].mxu1  ;;  %7150 = vmatmul.mubr.msk.f32.vlgmr.msra.gmra.mrb[10].mxu0 %vm1657_vm0, %v3077_v15  ;;  %v6355_v15 = vld [vmem:[%s10667_s10 + $0xd0] sm:$0xff] }
 0xb24   : > { %7178 = vmatprep.mubr.msk.f32.mxu0 %vm9525_vm2, %v9526_v12  ;;  %v6356_v1 = vld [vmem:[%s10667_s10 + $0xd8] sm:$0xff] }
 0xb32   : > { %v3167_v2 = vpop.f32.mrb[14].mxu1 }
 0xb33   : > { %v7132_v3 = vpop.f32.mrb[15].mxu1 }
 0xb34   : > { %v6357_v3 = vld [vmem:[%s10667_s10 + $0xe0] sm:$0xff] }
 0xb36   : > { %v3314_v4 = vpop.f32.mrb[16].mxu1 }
 0xb37   : > { %v7156_v34 = vpop.f32.mrb[17].mxu1  ;;  %7174 = vmatmul.mubr.msk.f32.vlgmr.msra.gmra.mrb[18].mxu1 %vm1657_vm0, %v3314_v4  ;;  %v6358_v4 = vld [vmem:[%s10667_s10 + $0xe8] sm:$0xff] }
 0xb38   : > { %7248 = vmatprep.mubr.msk.f32.mxu1 %vm9525_vm2, %v9526_v12  ;;  %7683 = vmatpush3.bf16.msra.mxu1 %v7682_v8  ;;  %v7676_v34 = vpack.c.bf16 %v6358_v4, %v6357_v3  ;;  %v6362_v8 = vld [vmem:[%s10667_s10 + $0x100] sm:$0xff]  ;;  %v3838_v3 = vld [vmem:[%s10668_s8 + $0x8] sm:$0xff] }
 0xb39   : > { %7684 = vmatprep.subr.bf16.mxu1 %v9524_v11 }
 0xb3c   : > { %7686 = vmatpush3.bf16.msra.mxu1 %v7685_v10  ;;  %v7706_v10 = vpack.c.bf16 %v6363_v9, %v6362_v8  ;;  %v4136_v9 = vld [vmem:[#allocation37 + $0x108] sm:$0xff] }
 0xb3d   : > { %7687 = vmatprep.subr.bf16.mxu1 %v9524_v11 }
 0xb40   : > { %7689 = vmatpush3.bf16.msra.mxu1 %v7688_v33  ;;  %v7709_v33 = vpack.c.bf16 %v6365_v14, %v6364_v13 }
 0xb41   : > { %7690 = vmatprep.subr.bf16.mxu1 %v9524_v11 }
 0xb44   : > { %7692 = vmatpush3.bf16.msra.mxu1 %v7691_v18  ;;  %v7712_v18 = vpack.c.bf16 %v6367_v17, %v6366_v16  ;;  %v4135_v16 = vld [vmem:[#allocation37 + $0x100] sm:$0xff]  ;;  %v4137_v17 = vld [vmem:[#allocation37 + $0x110] sm:$0xff] }
 0xb45   : > { %7693 = vmatprep.subr.bf16.mxu1 %v9524_v11 }
 0xb48   : > { %7695 = vmatpush3.bf16.msra.mxu1 %v7694_v23  ;;  %v6370_v23 = vld [vmem:[%s10667_s10 + $0x140] sm:$0xff] }
 0xb49   : > { %7696 = vmatprep.subr.bf16.mxu1 %v9524_v11  ;;  %v7718_v25 = vpack.c.bf16 %v6371_v24, %v6370_v23  ;;  %v4139_v23 = vld [vmem:[#allocation37 + $0x120] sm:$0xff]  ;;  %v4141_v24 = vld [vmem:[#allocation37 + $0x130] sm:$0xff] }
 0xb4c   : > { %7698 = vmatpush3.bf16.msra.mxu1 %v7697_v26  ;;  %v6372_v26 = vld [vmem:[%s10667_s10 + $0x150] sm:$0xff] }
 0xb4d   : > { %7699 = vmatprep.subr.bf16.mxu1 %v9524_v11 }
 0xb50   : > { %7701 = vmatpush3.bf16.msra.mxu1 %v7700_v29  ;;  %v7721_v29 = vpack.c.bf16 %v6373_v27, %v6372_v26  ;;  %v4146_v26 = vld [vmem:[#allocation37 + $0x158] sm:$0xff] }
 0xb51   : > { %7702 = vmatprep.subr.bf16.mxu1 %v9524_v11  ;;  %v10436_v27 = vld [vmem:[%s10666_s1 + $0x8] sm:$0xff] }
 0xb54   : > { %7704 = vmatpush3.bf16.msra.mxu1 %v7703_v35  ;;  %v4017_v35 = vmul.f32 %v6383_v28, %v10242_v40 }
 0xbf6   : > { %v3240_v36 = vpop.f32.mrb[10].mxu0 }
 0xbf7   : > { %v3241_v37 = vadd.f32 %v3240_v36, %v3167_v2  ;;  %v7151_v38 = vpop.f32.mrb[11].mxu0  ;;  %v7673_v2 = vpack.c.bf16 %v6356_v1, %v6355_v15  ;;  %v4016_v36 = vmul.f32 %v6383_v28, %v10245_v41  ;;  %v3923_v15 = vld [vmem:[%s10669_s4 + $0x18] sm:$0xff]  ;;  %v7755_v28 = vpack.c.bf16 %v4141_v24, %v4139_v23 }
 0xbf8   : > { %v7724_v38 = vpack.c.bf16 %v6375_v32, %v6374_v30  ;;  %v4143_v30 = vld [vmem:[#allocation37 + $0x140] sm:$0xff]  ;;  %v4145_v32 = vld [vmem:[#allocation37 + $0x150] sm:$0xff] }
 0xc0a   : > { %v3396_v39 = vpop.f32.mrb[18].mxu1 }
 0xc0b   : > { %v3400_v44 = vadd.f32 %v3396_v39, %v3241_v37  ;;  %v7175_v45 = vpop.f32.mrb[19].mxu1  ;;  %v6384_v37 = vld [vmem:[#allocation36] ss:$0 sm:$0xff]  ;;  %v6376_v39 = vld [vmem:[%s10667_s10 + $0x170] sm:$0xff] }
 0xc0c   : > { %v10396_v45 = vadd.f32 %v6384_v37, %v4016_v36  ;;  %v4150_v36 = vld [vmem:[#allocation37 + $0x178] sm:$0xff] }
 0xc0d   : > { %v3408_v19 = vadd.f32 %v6341_v42, %v3400_v44  ;;  %v6377_v42 = vld [vmem:[%s10667_s10 + $0x178] sm:$0xff]  ;;  %v10394_v44 = vadd.f32 %v6384_v37, %v4017_v35  ;;  %v7759_v37 = vpack.c.bf16 %v4145_v32, %v4143_v30  ;;  %v4118_v32 = vld [vmem:[#allocation37 + $0x80] sm:$0xff] }
 0xc0e   : > { %v4148_v35 = vld [vmem:[#allocation37 + $0x168] sm:$0xff] }
 0xc0f   : > { %v3409_v22 = vmax.f32 %v3408_v19, 0.0  ;;  %v7727_v19 = vpack.c.bf16 %v6377_v42, %v6376_v39  ;;  %v10401_v40 = vpack.c.bf16 %v10394_v44, %v10396_v45  ;;  %v4147_v39 = vld [vmem:[#allocation37 + $0x160] sm:$0xff]  ;;  %v4149_v42 = vld [vmem:[#allocation37 + $0x170] sm:$0xff] }
 0xc11   : > { %v3417_v50 = vmul.f32 %v6342_v46, %v3409_v22 }
 0xc13   : > { %v3425_v51 = vadd.f32 %v6343_v47, %v3417_v50  ;;  %v10411_v50 = vld [vmem:[%s9730_s20 + $0x8] sm:$0xff] }
 0xc15   : > { %7177 = vmatpush3.msra.mxu0 %v3425_v51 }
 0xc16   : > { %7179 = vmatmul.mubr.msk.f32.vlgmr.msra.gmra.mrb[12].mxu0 %vm3007_vm3, %v10279_v43  ;;  %7657 = vmatprep.subr.bf16.mxu0 %v9524_v11  ;;  %v6351_v43 = vld [vmem:[%s10667_s10 + $0xb0] sm:$0xff] }
 0xc17   : > { %7659 = vmatpush3.bf16.msra.mxu0 %v7658_v53  ;;  %7213 = vmatprep.mubr.msk.f32.mxu0 %vm9525_vm2, %v9526_v12  ;;  %v7667_v61 = vpack.c.bf16 %v6352_v60, %v6351_v43  ;;  %v3837_v53 = vld [vmem:[%s10668_s8] sm:$0xff] }
 0xc18   : > { %7660 = vmatprep.subr.bf16.mxu0 %v9524_v11 }
 0xc1b   : > { %7662 = vmatpush3.bf16.msra.mxu0 %v7661_v56 }
 0xc1c   : > { %7663 = vmatprep.subr.bf16.mxu0 %v9524_v11 }
 0xc1f   : > { %7665 = vmatpush3.bf16.msra.mxu0 %v7664_v59 }
 0xc20   : > { %7666 = vmatprep.subr.bf16.mxu0 %v9524_v11 }
 0xc23   : > { %7668 = vmatpush3.bf16.msra.mxu0 %v7667_v61  ;;  %v3920_v61 = vld [vmem:[%s10669_s4] sm:$0xff] }
 0xc24   : > { %7669 = vmatprep.subr.bf16.mxu0 %v9524_v11 }
 0xc27   : > { %7671 = vmatpush3.bf16.msra.mxu0 %v7670_v62  ;;  %v3922_v62 = vld [vmem:[%s10669_s4 + $0x10] sm:$0xff] }
 0xc28   : > { %7672 = vmatprep.subr.bf16.mxu0 %v9524_v11  ;;  %v7733_v4 = vpack.c.bf16 %v3923_v15, %v3922_v62  ;;  %v4163_v15 = vld [vmem:[#allocation37 + $0x1e0] sm:$0xff] }
 0xc2b   : > { %7674 = vmatpush3.bf16.msra.mxu0 %v7673_v2  ;;  %v7729_v2 = vpack.c.bf16 %v3921_v63, %v3920_v61  ;;  %v4164_v61 = vld [vmem:[#allocation37 + $0x1e8] sm:$0xff]  ;;  %v4166_v63 = vld [vmem:[#allocation37 + $0x1f8] sm:$0xff] }
 0xc2c   : > { %7675 = vmatprep.subr.bf16.mxu0 %v9524_v11  ;;  %v7777_v62 = vpack.c.bf16 %v4166_v63, %v4164_v61  ;;  %v6389_v61 = vld [vmem:[%s10670_s3] ss:$0 sm:$0xff] }
 0xc2f   : > { %7677 = vmatpush3.bf16.msra.mxu0 %v7676_v34  ;;  %v3924_v34 = vld [vmem:[%s10669_s4 + $0x20] sm:$0xff] }
 0xc30   : > { %7678 = vmatprep.subr.bf16.mxu0 %v9524_v11  ;;  %v7737_v6 = vpack.c.bf16 %v3925_v5, %v3924_v34  ;;  %v4102_v5 = vld [vmem:[#allocation37] sm:$0xff] }
 0xc33   : > { %7680 = vmatpush3.bf16.msra.mxu0 %v7679_v7  ;;  %v3926_v7 = vld [vmem:[%s10669_s4 + $0x30] sm:$0xff] }
 0xc34   : > { %7251 = vmatprep.subr.mxu0 %v9526_v12 }
 0xc36   : > { %7214 = vmatmul.mubr.f32.vlgmr.msra.gmra.mrb[14].mxu0 %v3425_v51 }
 0xc37   : > { %7252 = vmatpush3.msra.mxu0 %v3425_v51  ;;  %7253 = vmatprep.mubr.msk.f32.mxu0 %vm9525_vm2, %v9526_v12  ;;  %v8593_v51 = vld [vmem:[%s10666_s1] sm:$0xff] }
 0xc38   : > { %7705 = vmatprep.subr.bf16.mxu0 %v9524_v11 }
 0xc3a   : > { %7254 = vmatmul.mubr.msk.f32.vlgmr.msra.gmra.mrb[16].mxu0 %vm3007_vm3, %v10294_v52  ;;  %v7715_v52 = vpack.c.bf16 %v6369_v21, %v6368_v20  ;;  %v4142_v20 = vld [vmem:[#allocation37 + $0x138] sm:$0xff]  ;;  %v7751_v21 = vpack.c.bf16 %v4137_v17, %v4135_v16 }
 0xc3b   : > { %7707 = vmatpush3.bf16.msra.mxu0 %v7706_v10  ;;  %7288 = vmatprep.mubr.msk.f32.mxu0 %vm9525_vm2, %v9526_v12  ;;  %v4138_v10 = vld [vmem:[#allocation37 + $0x118] sm:$0xff] }
 0xc3c   : > { %7708 = vmatprep.subr.bf16.mxu0 %v9524_v11 }
 0xc3f   : > { %7710 = vmatpush3.bf16.msra.mxu0 %v7709_v33  ;;  %v7749_v33 = vpack.c.bf16 %v4138_v10, %v4136_v9  ;;  %v4106_v10 = vld [vmem:[#allocation37 + $0x20] sm:$0xff] }
 0xc40   : > { %7711 = vmatprep.subr.bf16.mxu0 %v9524_v11 }
 0xc43   : > { %7713 = vmatpush3.bf16.msra.mxu0 %v7712_v18  ;;  %v4140_v18 = vld [vmem:[#allocation37 + $0x128] sm:$0xff] }
 0xc44   : > { %7714 = vmatprep.subr.bf16.mxu0 %v9524_v11 }
 0xc47   : > { %7716 = vmatpush3.bf16.msra.mxu0 %v7715_v52  ;;  %v7753_v52 = vpack.c.bf16 %v4142_v20, %v4140_v18  ;;  %v4110_v18 = vld [vmem:[#allocation37 + $0x40] sm:$0xff]  ;;  %v4112_v20 = vld [vmem:[#allocation37 + $0x50] sm:$0xff] }
 0xc48   : > { %7717 = vmatprep.subr.bf16.mxu0 %v9524_v11  ;;  %v7791_v23 = vpack.c.bf16 %v4112_v20, %v4110_v18  ;;  %v4405_v20 = vld [vmem:[#allocation37 + $0x240] sm:$0xff] }
 0xc4b   : > { %7719 = vmatpush3.bf16.msra.mxu0 %v7718_v25  ;;  %v4144_v25 = vld [vmem:[#allocation37 + $0x148] sm:$0xff] }
 0xc4c   : > { %7720 = vmatprep.subr.bf16.mxu0 %v9524_v11 }
 0xc4f   : > { %7722 = vmatpush3.bf16.msra.mxu0 %v7721_v29  ;;  %v7757_v29 = vpack.c.bf16 %v4146_v26, %v4144_v25  ;;  %v4114_v25 = vld [vmem:[#allocation37 + $0x60] sm:$0xff]  ;;  %v4119_v26 = vld [vmem:[#allocation37 + $0x88] sm:$0xff] }
 0xc50   : > { %7723 = vmatprep.subr.bf16.mxu0 %v9524_v11 }
 0xc53   : > { %7725 = vmatpush3.bf16.msra.mxu0 %v7724_v38  ;;  %v7761_v38 = vpack.c.bf16 %v4150_v36, %v4148_v35  ;;  %v4120_v35 = vld [vmem:[#allocation37 + $0x90] sm:$0xff]  ;;  %v4123_v36 = vld [vmem:[#allocation37 + $0xa8] sm:$0xff] }
 0xc54   : > { %7726 = vmatprep.subr.bf16.mxu0 %v9524_v11  ;;  %v10406_v11 = vld [vmem:[%s9730_s20] sm:$0xff] }
 0xc57   : > { %7728 = vmatpush3.bf16.msra.mxu0 %v7727_v19  ;;  %v4152_v19 = vld [vmem:[#allocation37 + $0x188] sm:$0xff] }
 0xc58   : > { %7814 = vmatprep.subr.bf16.mxu0 %v10401_v40 }
 0xce9   : > { %v3492_v41 = vpop.f32.mrb[12].mxu0 }
 0xcea   : > { %v7180_v46 = vpop.f32.mrb[13].mxu0  ;;  %7249 = vmatmul.mubr.f32.vlgmr.msra.gmra.mrb[20].mxu1 %v3492_v41  ;;  %v7763_v41 = vpack.c.bf16 %v4149_v42, %v4147_v39  ;;  %v4122_v39 = vld [vmem:[#allocation37 + $0xa0] sm:$0xff]  ;;  %v4124_v42 = vld [vmem:[#allocation37 + $0xb0] sm:$0xff] }
 0xceb   : > { %7293 = vmatprep.mubr.msk.f32.mxu1 %vm3007_vm3, %v3837_v53 }
 0xd09   : > { %v3595_v22 = vpop.f32.mrb[14].mxu0 }
 0xd0a   : > { %v7215_v47 = vpop.f32.mrb[15].mxu0 }
 0xd0b   : > { %v4153_v47 = vld [vmem:[#allocation37 + $0x190] sm:$0xff] }
 0xd0d   : > { %v3735_v48 = vpop.f32.mrb[16].mxu0 }
 0xd0e   : > { %v7255_v49 = vpop.f32.mrb[17].mxu0  ;;  %7289 = vmatmul.mubr.f32.vlgmr.msra.gmra.mrb[18].mxu0 %v3735_v48  ;;  %v4156_v48 = vld [vmem:[#allocation37 + $0x1a8] sm:$0xff] }
 0xd0f   : > { %7816 = vmatpush3.bf16.msra.mxu0 %v10401_v40  ;;  %7326 = vmatprep.mubr.msk.f32.mxu0 %vm1759_vm1, %v10406_v11  ;;  %v4158_v49 = vld [vmem:[#allocation37 + $0x1b8] sm:$0xff] }
 0xd10   : > { %v7769_v53 = vpack.c.bf16 %v4158_v49, %v4156_v48  ;;  %v4131_v49 = vld [vmem:[#allocation37 + $0xe8] sm:$0xff] }
 0xd12   : > { %7327 = vmatmul.mubr.msk.f32.vlgmr.msra.gmra.mrb[20].mxu0 %vm1759_vm1, %v10411_v50 }
 0xd13   : > { %7333 = vmatprep.mubr.msk.f32.mxu0 %vm1759_vm1, %v8593_v51 }
 0xdbd   : > { %v3665_v54 = vpop.f32.mrb[20].mxu1 }
 0xdbe   : > { %v3666_v55 = vadd.f32 %v3665_v54, %v3595_v22  ;;  %v7250_v56 = vpop.f32.mrb[21].mxu1  ;;  %v4151_v22 = vld [vmem:[#allocation37 + $0x180] sm:$0xff] }
 0xdbf   : > { %v4155_v54 = vld [vmem:[#allocation37 + $0x1a0] sm:$0xff]  ;;  %v4160_v56 = vld [vmem:[#allocation37 + $0x1c8] sm:$0xff] }
 0xde1   : > { %v3822_v57 = vpop.f32.mrb[18].mxu0 }
 0xde2   : > { %v3826_v59 = vadd.f32 %v3822_v57, %v3666_v55  ;;  %v7290_v43 = vpop.f32.mrb[19].mxu0  ;;  %v4157_v55 = vld [vmem:[#allocation37 + $0x1b0] sm:$0xff]  ;;  %v4162_v57 = vld [vmem:[#allocation37 + $0x1d8] sm:$0xff] }
 0xde3   : > { %v4159_v43 = vld [vmem:[#allocation37 + $0x1c0] sm:$0xff] }
 0xde4   : > { %v3834_v60 = vadd.f32 %v6378_v58, %v3826_v59  ;;  %v7771_v58 = vpack.c.bf16 %v4157_v55, %v4155_v54  ;;  %v7773_v59 = vpack.c.bf16 %v4162_v57, %v4160_v56  ;;  %v4130_v54 = vld [vmem:[#allocation37 + $0xe0] sm:$0xff]  ;;  %v4132_v55 = vld [vmem:[#allocation37 + $0xf0] sm:$0xff]  ;;  %v4398_v57 = vld [vmem:[#allocation37 + $0x208] sm:$0xff] }
 0xde5   : > { %v7811_v56 = vpack.c.bf16 %v4132_v55, %v4130_v54  ;;  %v4427_v54 = vld [vmem:[#allocation37 + $0x2f0] sm:$0xff]  ;;  %v4637_v55 = vld [vmem:[#allocation39 + $0x108] sm:$0xff] }
 0xde6   : > { %v3835_v0 = vadd.f32 %v3834_v60, %v10275_v31  ;;  %v3927_v31 = vld [vmem:[%s10669_s4 + $0x38] sm:$0xff] }
 0xde7   : > { %v7741_v8 = vpack.c.bf16 %v3927_v31, %v3926_v7  ;;  %v4161_v60 = vld [vmem:[#allocation37 + $0x1d0] sm:$0xff]  ;;  %v4107_v7 = vld [vmem:[#allocation37 + $0x28] sm:$0xff]  ;;  %v4109_v31 = vld [vmem:[#allocation37 + $0x38] sm:$0xff] }
 0xde8   : > { %v3836_v1 = vmax.f32 %v3835_v0, 0.0  ;;  %v7775_v0 = vpack.c.bf16 %v4161_v60, %v4159_v43  ;;  %v7785_v9 = vpack.c.bf16 %v4109_v31, %v4107_v7  ;;  %v10445_v43 = vpop.f32.mrb[20].mxu0 }
 0xde9   : > { %v10447_v60 = vpop.f32.mrb[21].mxu0 }
 0xdea   : > { %7291 = vmatprep.subr.mxu1 %v3836_v1 }
 0xdeb   : > { %7292 = vmatpush3.msra.mxu1 %v3836_v1  ;;  %v4165_v1 = vld [vmem:[#allocation37 + $0x1f0] sm:$0xff] }
 0xdec   : > { %7294 = vmatmul.mubr.msk.f32.vlgmr.msra.gmra.mrb[22].mxu1 %vm3007_vm3, %v3838_v3  ;;  %7730 = vmatprep.subr.bf16.mxu1 %v7729_v2  ;;  %v4105_v3 = vld [vmem:[#allocation37 + $0x18] sm:$0xff] }
 0xded   : > { %7732 = vmatpush3.bf16.msra.mxu1 %v7729_v2  ;;  %v4103_v2 = vld [vmem:[#allocation37 + $0x8] sm:$0xff] }
 0xdee   : > { %7734 = vmatprep.subr.bf16.mxu1 %v7733_v4  ;;  %v7781_v34 = vpack.c.bf16 %v4105_v3, %v4103_v2  ;;  %v4402_v3 = vld [vmem:[#allocation37 + $0x228] sm:$0xff] }
 0xdf1   : > { %7736 = vmatpush3.bf16.msra.mxu1 %v7733_v4  ;;  %v7779_v4 = vpack.c.bf16 %v4165_v1, %v4163_v15  ;;  %v4399_v15 = vld [vmem:[#allocation37 + $0x210] sm:$0xff] }
 0xdf2   : > { %7738 = vmatprep.subr.bf16.mxu1 %v7737_v6 }
 0xdf5   : > { %7740 = vmatpush3.bf16.msra.mxu1 %v7737_v6  ;;  %v4104_v6 = vld [vmem:[#allocation37 + $0x10] sm:$0xff] }
 0xdf6   : > { %7742 = vmatprep.subr.bf16.mxu1 %v7741_v8 }
 0xdf9   : > { %7744 = vmatpush3.bf16.msra.mxu1 %v7741_v8  ;;  %v7783_v8 = vpack.c.bf16 %v4104_v6, %v4102_v5 }
 0xdfa   : > { %7746 = vmatprep.subr.bf16.mxu1 %v10401_v40 }
 0xebf   : > { %v7295_v13 = vpop.f32.mrb[22].mxu1 }
 0xec0   : > { %v3911_v14 = vpop.f32.mrb[23].mxu1 }
 0xec1   : > { %7312 = vmatprep.mubr.msk.f32.mxu1 %vm1657_vm0, %v3911_v14  ;;  %v4111_v14 = vld [vmem:[#allocation37 + $0x48] sm:$0xff] }
 0xec2   : > { %7313 = vmatmul.mubr.msk.f32.vlgmr.msra.gmra.mrb[24].mxu1 %vm1657_vm0, %v7295_v13  ;;  %v4108_v13 = vld [vmem:[#allocation37 + $0x30] sm:$0xff] }
 0xec3   : > { %7748 = vmatpush3.bf16.msra.mxu1 %v10401_v40  ;;  %7319 = vmatprep.mubr.msk.f32.mxu1 %vm1759_vm1, %v8593_v51  ;;  %v4154_v40 = vld [vmem:[#allocation37 + $0x198] sm:$0xff]  ;;  %v7767_v51 = vpack.c.bf16 %v4153_v47, %v4151_v22  ;;  %v7787_v16 = vpack.c.bf16 %v4108_v13, %v4106_v10  ;;  %v4126_v22 = vld [vmem:[#allocation37 + $0xc0] sm:$0xff]  ;;  %v4128_v47 = vld [vmem:[#allocation37 + $0xd0] sm:$0xff] }
 0xec4   : > { %7750 = vmatprep.subr.bf16.mxu1 %v7749_v33  ;;  %v7765_v46 = vpack.c.bf16 %v4154_v40, %v4152_v19  ;;  %v4113_v33 = vld [vmem:[#allocation37 + $0x58] sm:$0xff]  ;;  %v4127_v19 = vld [vmem:[#allocation37 + $0xc8] sm:$0xff]  ;;  %v7807_v48 = vpack.c.bf16 %v4128_v47, %v4126_v22  ;;  %v4403_v10 = vld [vmem:[#allocation37 + $0x230] sm:$0xff] }
 0xec5   : > { %v7789_v17 = vpack.c.bf16 %v4113_v33, %v4111_v14  ;;  %v4129_v40 = vld [vmem:[#allocation37 + $0xd8] sm:$0xff]  ;;  %v4406_v14 = vld [vmem:[#allocation37 + $0x248] sm:$0xff]  ;;  %v4421_v22 = vld [vmem:[#allocation37 + $0x2c0] sm:$0xff] }
 0xec6   : > { %7320 = vmatmul.mubr.msk.f32.vlgmr.msra.gmra.mrb[26].mxu1 %vm1759_vm1, %v10436_v27  ;;  %v4408_v33 = vld [vmem:[#allocation37 + $0x258] sm:$0xff]  ;;  %v4423_v47 = vld [vmem:[#allocation37 + $0x2d0] sm:$0xff] }
 0xec7   : > { %7752 = vmatpush1.bf16.msra.mxu1 %v7751_v21  ;;  %4231 = vmatprep.mubr.f32.mxu1 %v9526_v12  ;;  %v4115_v21 = vld [vmem:[#allocation37 + $0x68] sm:$0xff]  ;;  %v7825_v18 = vpack.c.bf16 %v4408_v33, %v4406_v14  ;;  %v4648_v33 = vld [vmem:[#allocation39 + $0x160] sm:$0xff] }
 0xec8   : > { %7754 = vmatprep.subr.bf16.mxu1 %v7753_v52  ;;  %v4117_v52 = vld [vmem:[#allocation37 + $0x78] sm:$0xff] }
 0xec9   : > { %v7793_v24 = vpack.c.bf16 %v4117_v52, %v4115_v21  ;;  %v4407_v21 = vld [vmem:[#allocation37 + $0x250] sm:$0xff]  ;;  %v4410_v52 = vld [vmem:[#allocation37 + $0x268] sm:$0xff] }
 0xecb   : > { %7756 = vmatpush1.bf16.msra.mxu1 %v7755_v28  ;;  %v4121_v28 = vld [vmem:[#allocation37 + $0x98] sm:$0xff] }
 0xecc   : > { %7758 = vmatprep.subr.bf16.mxu1 %v7757_v29  ;;  %v7797_v30 = vpack.c.bf16 %v4121_v28, %v4119_v26  ;;  %v4411_v26 = vld [vmem:[#allocation37 + $0x270] sm:$0xff]  ;;  %v4414_v28 = vld [vmem:[#allocation37 + $0x288] sm:$0xff] }
 0xecf   : > { %7760 = vmatpush1.bf16.msra.mxu1 %v7759_v37  ;;  %v4125_v37 = vld [vmem:[#allocation37 + $0xb8] sm:$0xff] }
 0xed0   : > { %7762 = vmatprep.subr.bf16.mxu1 %v7761_v38  ;;  %v7801_v38 = vpack.c.bf16 %v4125_v37, %v4123_v36  ;;  %v4415_v36 = vld [vmem:[#allocation37 + $0x290] sm:$0xff]  ;;  %v4418_v37 = vld [vmem:[#allocation37 + $0x2a8] sm:$0xff] }
 0xed3   : > { %7764 = vmatpush1.bf16.msra.mxu1 %v7763_v41  ;;  %v7803_v41 = vpack.c.bf16 %v4124_v42, %v4122_v39  ;;  %v4417_v42 = vld [vmem:[#allocation37 + $0x2a0] sm:$0xff] }
 0xed4   : > { %7766 = vmatprep.subr.bf16.mxu1 %v7765_v46  ;;  %v7805_v46 = vpack.c.bf16 %v4129_v40, %v4127_v19  ;;  %v4419_v19 = vld [vmem:[#allocation37 + $0x2b0] sm:$0xff]  ;;  %v4424_v40 = vld [vmem:[#allocation37 + $0x2d8] sm:$0xff] }
 0xed7   : > { %7768 = vmatpush1.bf16.msra.mxu1 %v7767_v51  ;;  %v4133_v51 = vld [vmem:[#allocation37 + $0xf8] sm:$0xff] }
 0xed8   : > { %7770 = vmatprep.subr.bf16.mxu1 %v7769_v53  ;;  %v7809_v53 = vpack.c.bf16 %v4133_v51, %v4131_v49  ;;  %v7843_v49 = vpack.c.bf16 %v4423_v47, %v4421_v22  ;;  %v4603_v22 = vld [vmem:[#allocation39] sm:$0xff]  ;;  %v4605_v47 = vld [vmem:[#allocation39 + $0x10] sm:$0xff] }
 0xedb   : > { %7772 = vmatpush1.bf16.msra.mxu1 %v7771_v58  ;;  %v4400_v58 = vld [vmem:[#allocation37 + $0x218] sm:$0xff] }
 0xedc   : > { %7774 = vmatprep.subr.bf16.mxu1 %v7773_v59  ;;  %v7817_v59 = vpack.c.bf16 %v4400_v58, %v4398_v57 }
 0xedf   : > { %7776 = vmatpush1.bf16.msra.mxu1 %v7775_v0  ;;  %v6390_v0 = vld [vmem:[%s10671_s5] ss:$0 sm:$0xff] }
 0xee0   : > { %7778 = vmatprep.subr.bf16.mxu1 %v7777_v62  ;;  %v4397_v62 = vld [vmem:[#allocation37 + $0x200] sm:$0xff] }
 0xee1   : > { %v7819_v6 = vpack.c.bf16 %v4399_v15, %v4397_v62 }
 0xee3   : > { %7780 = vmatpush1.bf16.msra.mxu1 %v7779_v4  ;;  %v4404_v4 = vld [vmem:[#allocation37 + $0x238] sm:$0xff] }
 0xee4   : > { %7782 = vmatprep.subr.bf16.mxu1 %v7781_v34 }
 0xee6   : > { %4232 = vmatmul.mubr.f32.vlgmr.msra.gmra.mrb[28].mxu1 %v10396_v45  ;;  %v4116_v45 = vld [vmem:[#allocation37 + $0x70] sm:$0xff] }
 0xee7   : > { %4237 = vmatprep.mubr.f32.mxu1 %v9526_v12  ;;  %7784 = vmatpush1.bf16.msra.mxu1 %v7783_v8  ;;  %v7795_v29 = vpack.c.bf16 %v4116_v45, %v4114_v25  ;;  %v7821_v8 = vpack.c.bf16 %v4404_v4, %v4402_v3  ;;  %v4409_v45 = vld [vmem:[#allocation37 + $0x260] sm:$0xff]  ;;  %v4645_v3 = vld [vmem:[#allocation39 + $0x148] sm:$0xff]  ;;  %v4647_v4 = vld [vmem:[#allocation39 + $0x158] sm:$0xff] }
 0xee8   : > { %7786 = vmatprep.subr.bf16.mxu1 %v7785_v9  ;;  %v4401_v9 = vld [vmem:[#allocation37 + $0x220] sm:$0xff] }
 0xeea   : > { %4238 = vmatmul.mubr.f32.gmra.mrb[30].mxu1 %v10394_v44  ;;  %v7799_v44 = vpack.c.bf16 %v4120_v35, %v4118_v32  ;;  %v4413_v35 = vld [vmem:[#allocation37 + $0x280] sm:$0xff] }
 0xeeb   : > { %7788 = vmatpush1.bf16.msra.mxu1 %v7787_v16  ;;  %4308 = vmatprep.mubr.f32.mxu1 %v9526_v12 }
 0xeec   : > { %7790 = vmatprep.subr.bf16.mxu1 %v7789_v17  ;;  %v7823_v17 = vpack.c.bf16 %v4403_v10, %v4401_v9  ;;  %v4649_v9 = vld [vmem:[#allocation39 + $0x168] sm:$0xff]  ;;  %v4651_v10 = vld [vmem:[#allocation39 + $0x178] sm:$0xff] }
 0xeed   : > { %v7865_v14 = vpack.c.bf16 %v4651_v10, %v4649_v9  ;;  %v4626_v9 = vld [vmem:[#allocation39 + $0xb8] sm:$0xff] }
 0xeef   : > { %7792 = vmatpush1.bf16.msra.mxu1 %v7791_v23  ;;  %v4412_v23 = vld [vmem:[#allocation37 + $0x278] sm:$0xff] }
 0xef0   : > { %7794 = vmatprep.subr.bf16.mxu1 %v7793_v24  ;;  %v7827_v24 = vpack.c.bf16 %v4407_v21, %v4405_v20  ;;  %v7829_v25 = vpack.c.bf16 %v4412_v23, %v4410_v52  ;;  %v4652_v21 = vld [vmem:[#allocation39 + $0x180] sm:$0xff]  ;;  %v4654_v52 = vld [vmem:[#allocation39 + $0x190] sm:$0xff]  ;;  %v4657_v23 = vld [vmem:[#allocation39 + $0x1a8] sm:$0xff] }
 0xef3   : > { %7796 = vmatpush1.bf16.msra.mxu1 %v7795_v29  ;;  %v4416_v29 = vld [vmem:[#allocation37 + $0x298] sm:$0xff] }
 0xef4   : > { %7798 = vmatprep.subr.bf16.mxu1 %v7797_v30  ;;  %v7831_v30 = vpack.c.bf16 %v4411_v26, %v4409_v45  ;;  %v7833_v32 = vpack.c.bf16 %v4416_v29, %v4414_v28  ;;  %v4656_v45 = vld [vmem:[#allocation39 + $0x1a0] sm:$0xff]  ;;  %v4658_v26 = vld [vmem:[#allocation39 + $0x1b0] sm:$0xff]  ;;  %v4661_v28 = vld [vmem:[#allocation39 + $0x1c8] sm:$0xff] }
 0xef5   : > { %v4663_v29 = vld [vmem:[#allocation39 + $0x1d8] sm:$0xff] }
 0xef7   : > { %7800 = vmatpush1.bf16.msra.mxu1 %v7799_v44  ;;  %v4420_v44 = vld [vmem:[#allocation37 + $0x2b8] sm:$0xff] }
 0xef8   : > { %7802 = vmatprep.subr.bf16.mxu1 %v7801_v38  ;;  %v7835_v38 = vpack.c.bf16 %v4415_v36, %v4413_v35  ;;  %v7837_v39 = vpack.c.bf16 %v4420_v44, %v4418_v37  ;;  %v4660_v35 = vld [vmem:[#allocation39 + $0x1c0] sm:$0xff]  ;;  %v4662_v36 = vld [vmem:[#allocation39 + $0x1d0] sm:$0xff]  ;;  %v4665_v37 = vld [vmem:[#allocation39 + $0x1e8] sm:$0xff] }
 0xef9   : > { %v4667_v44 = vld [vmem:[#allocation39 + $0x1f8] sm:$0xff] }
 0xefb   : > { %7804 = vmatpush1.bf16.msra.mxu1 %v7803_v41  ;;  %v7839_v41 = vpack.c.bf16 %v4419_v19, %v4417_v42  ;;  %v4664_v42 = vld [vmem:[#allocation39 + $0x1e0] sm:$0xff]  ;;  %v4666_v19 = vld [vmem:[#allocation39 + $0x1f0] sm:$0xff] }
 0xefc   : > { %7806 = vmatprep.subr.bf16.mxu1 %v7805_v46 }
 0xeff   : > { %7808 = vmatpush1.bf16.msra.mxu1 %v7807_v48  ;;  %v4426_v48 = vld [vmem:[#allocation37 + $0x2e8] sm:$0xff] }
 0xf00   : > { %7810 = vmatprep.subr.bf16.mxu1 %v7809_v53  ;;  %v4425_v53 = vld [vmem:[#allocation37 + $0x2e0] sm:$0xff] }
 0xf01   : > { %v7847_v57 = vpack.c.bf16 %v4427_v54, %v4425_v53  ;;  %v4607_v53 = vld [vmem:[#allocation39 + $0x20] sm:$0xff]  ;;  %v4609_v54 = vld [vmem:[#allocation39 + $0x30] sm:$0xff] }
 0xf03   : > { %7812 = vmatpush1.bf16.msra.mxu1 %v7811_v56  ;;  %v4639_v56 = vld [vmem:[#allocation39 + $0x118] sm:$0xff] }
 0xf04   : > { %7818 = vmatprep.subr.bf16.mxu1 %v7817_v59  ;;  %v7853_v58 = vpack.c.bf16 %v4639_v56, %v4637_v55  ;;  %v4636_v59 = vld [vmem:[#allocation39 + $0x100] sm:$0xff]  ;;  %v4612_v55 = vld [vmem:[#allocation39 + $0x48] sm:$0xff]  ;;  %v4614_v56 = vld [vmem:[#allocation39 + $0x58] sm:$0xff] }
 0xf95   : > { %v7314_v63 = vpop.f32.mrb[24].mxu1 }
 0xf96   : > { %v4518_v1 = vmul.f32 %v7314_v63, %v6389_v61  ;;  %v4000_v2 = vpop.f32.mrb[25].mxu1  ;;  %v4641_v63 = vld [vmem:[#allocation39 + $0x128] sm:$0xff] }
 0xf97   : > { %v4517_v34 = vmul.f32 %v6389_v61, %v4000_v2  ;;  %v4638_v61 = vld [vmem:[#allocation39 + $0x110] sm:$0xff] }
 0xf98   : > { %v10451_v5 = vadd.f32 %v6390_v0, %v4518_v1  ;;  %v7855_v62 = vpack.c.bf16 %v4638_v61, %v4636_v59  ;;  %v4640_v1 = vld [vmem:[#allocation39 + $0x120] sm:$0xff]  ;;  %v4642_v2 = vld [vmem:[#allocation39 + $0x130] sm:$0xff] }
 0xf99   : > { %v10453_v7 = vadd.f32 %v6390_v0, %v4517_v34  ;;  %v7321_v31 = vpop.f32.mrb[26].mxu1  ;;  %v4643_v0 = vld [vmem:[#allocation39 + $0x138] sm:$0xff]  ;;  %v7859_v34 = vpack.c.bf16 %v4642_v2, %v4640_v1  ;;  %v4611_v59 = vld [vmem:[#allocation39 + $0x40] sm:$0xff]  ;;  %v4613_v61 = vld [vmem:[#allocation39 + $0x50] sm:$0xff] }
 0xf9a   : > { %v4093_v13 = vpop.f32.mrb[27].mxu1  ;;  %v7857_v15 = vpack.c.bf16 %v4643_v0, %v4641_v63  ;;  %v4616_v63 = vld [vmem:[#allocation39 + $0x68] sm:$0xff]  ;;  %v4618_v0 = vld [vmem:[#allocation39 + $0x78] sm:$0xff]  ;;  %v4615_v1 = vld [vmem:[#allocation39 + $0x60] sm:$0xff] }
 0xf9b   : > { %v7849_v16 = vpack.c.bf16 %v10451_v5, %v10453_v7  ;;  %4309 = vmatmul.mubr.f32.vlgmr.msra.gmra.mrb[28].mxu1 %v4093_v13  ;;  %v4620_v2 = vld [vmem:[#allocation39 + $0x88] sm:$0xff] }
 0xf9c   : > { %7820 = vmatpush1.bf16.msra.mxu1 %v7819_v6  ;;  %4314 = vmatprep.mubr.f32.mxu1 %v9526_v12  ;;  %v7861_v6 = vpack.c.bf16 %v4647_v4, %v4645_v3  ;;  %v4622_v3 = vld [vmem:[#allocation39 + $0x98] sm:$0xff] }
 0xf9d   : > { %7850 = vmatprep.subr.bf16.mxu0 %v7849_v16  ;;  %7822 = vmatprep.subr.bf16.mxu1 %v7821_v8  ;;  %v4646_v8 = vld [vmem:[#allocation39 + $0x150] sm:$0xff] }
 0xf9e   : > { %7852 = vmatpush3.bf16.msra.mxu0 %v7849_v16 }
 0xf9f   : > { %7918 = vmatprep.subr.bf16.mxu0 %v7849_v16  ;;  %4315 = vmatmul.mubr.f32.gmra.mrb[30].mxu1 %v7321_v31  ;;  %v4644_v31 = vld [vmem:[#allocation39 + $0x140] sm:$0xff] }
 0xfa0   : > { %7824 = vmatpush1.bf16.msra.mxu1 %v7823_v17  ;;  %4493 = vmatprep.mubr.f32.mxu1 %v9526_v12  ;;  %v7863_v13 = vpack.c.bf16 %v4646_v8, %v4644_v31  ;;  %v4655_v17 = vld [vmem:[#allocation39 + $0x198] sm:$0xff]  ;;  %v4621_v31 = vld [vmem:[#allocation39 + $0x90] sm:$0xff]  ;;  %v4624_v8 = vld [vmem:[#allocation39 + $0xa8] sm:$0xff] }
 0xfa1   : > { %7334 = vmatmul.mubr.msk.f32.vlgmr.msra.gmra.mrb[22].mxu0 %vm1759_vm1, %v10436_v27  ;;  %7826 = vmatprep.subr.bf16.mxu1 %v7825_v18  ;;  %v7905_v10 = vpack.c.bf16 %v4626_v9, %v4624_v8  ;;  %v4922_v8 = vld [vmem:[#allocation39 + $0x2c0] sm:$0xff]  ;;  %v4924_v9 = vld [vmem:[#allocation39 + $0x2d0] sm:$0xff] }
 0xfa2   : > { %7920 = vmatpush3.bf16.msra.mxu0 %v7849_v16  ;;  %7340 = vmatprep.mubr.msk.f32.mxu0 %vm1759_vm1, %v10406_v11  ;;  %v4422_v11 = vld [vmem:[#allocation37 + $0x2c8] sm:$0xff] }
 0xfa3   : > { %v7841_v46 = vpack.c.bf16 %v4424_v40, %v4422_v11  ;;  %v4653_v16 = vld [vmem:[#allocation39 + $0x188] sm:$0xff]  ;;  %v4606_v40 = vld [vmem:[#allocation39 + $0x18] sm:$0xff] }
 0xfa4   : > { %7828 = vmatpush1.bf16.msra.mxu1 %v7827_v24  ;;  %v7869_v20 = vpack.c.bf16 %v4655_v17, %v4653_v16  ;;  %v4659_v24 = vld [vmem:[#allocation39 + $0x1b8] sm:$0xff]  ;;  %v4604_v11 = vld [vmem:[#allocation39 + $0x8] sm:$0xff] }
 0xfa5   : > { %7830 = vmatprep.subr.bf16.mxu1 %v7829_v25  ;;  %7341 = vmatmul.mubr.msk.f32.vlgmr.msra.gmra.mrb[24].mxu0 %vm1759_vm1, %v10411_v50  ;;  %v4428_v50 = vld [vmem:[#allocation37 + $0x2f8] sm:$0xff]  ;;  %v7873_v25 = vpack.c.bf16 %v4659_v24, %v4657_v23 }
 0xfa6   : > { %5131 = vmatprep.mubr.f32.mxu0 %v9526_v12  ;;  %v7845_v51 = vpack.c.bf16 %v4428_v50, %v4426_v48  ;;  %v4608_v48 = vld [vmem:[#allocation39 + $0x28] sm:$0xff]  ;;  %v4610_v50 = vld [vmem:[#allocation39 + $0x38] sm:$0xff] }
 0xfa8   : > { %7832 = vmatpush1.bf16.msra.mxu1 %v7831_v30  ;;  %v7875_v30 = vpack.c.bf16 %v4658_v26, %v4656_v45  ;;  %v4899_v45 = vld [vmem:[#allocation39 + $0x208] sm:$0xff]  ;;  %v4901_v26 = vld [vmem:[#allocation39 + $0x218] sm:$0xff] }
 0xfa9   : > { %7834 = vmatprep.subr.bf16.mxu1 %v7833_v32  ;;  %v7877_v32 = vpack.c.bf16 %v4663_v29, %v4661_v28  ;;  %v7921_v29 = vpack.c.bf16 %v4901_v26, %v4899_v45  ;;  %v5035_v45 = vld [vmem:[%s10673_s9] sm:$0x3] }
 0xfac   : > { %7836 = vmatpush1.bf16.msra.mxu1 %v7835_v38  ;;  %v7879_v38 = vpack.c.bf16 %v4662_v36, %v4660_v35  ;;  %v4903_v35 = vld [vmem:[#allocation39 + $0x228] sm:$0xff]  ;;  %v4905_v36 = vld [vmem:[#allocation39 + $0x238] sm:$0xff] }
 0xfad   : > { %7838 = vmatprep.subr.bf16.mxu1 %v7837_v39  ;;  %v7881_v39 = vpack.c.bf16 %v4667_v44, %v4665_v37 }
 0xfb0   : > { %7840 = vmatpush1.bf16.msra.mxu1 %v7839_v41  ;;  %v7883_v41 = vpack.c.bf16 %v4666_v19, %v4664_v42  ;;  %v4904_v42 = vld [vmem:[#allocation39 + $0x230] sm:$0xff] }
 0xfb1   : > { %7842 = vmatprep.subr.bf16.mxu1 %v7841_v46  ;;  %v7885_v46 = vpack.c.bf16 %v4606_v40, %v4604_v11  ;;  %v4907_v11 = vld [vmem:[#allocation39 + $0x248] sm:$0xff]  ;;  %v4909_v40 = vld [vmem:[#allocation39 + $0x258] sm:$0xff] }
 0xfb4   : > { %7844 = vmatpush1.bf16.msra.mxu1 %v7843_v49  ;;  %v7887_v49 = vpack.c.bf16 %v4605_v47, %v4603_v22  ;;  %v4906_v22 = vld [vmem:[#allocation39 + $0x240] sm:$0xff]  ;;  %v4908_v47 = vld [vmem:[#allocation39 + $0x250] sm:$0xff] }
 0xfb5   : > { %7846 = vmatprep.subr.bf16.mxu1 %v7845_v51  ;;  %v7889_v51 = vpack.c.bf16 %v4610_v50, %v4608_v48  ;;  %v4911_v50 = vld [vmem:[#allocation39 + $0x268] sm:$0xff] }
 0xfb8   : > { %7848 = vmatpush1.bf16.msra.mxu1 %v7847_v57  ;;  %v7891_v57 = vpack.c.bf16 %v4609_v54, %v4607_v53  ;;  %v7931_v53 = vpack.c.bf16 %v4908_v47, %v4906_v22 }
 0xfb9   : > { %7854 = vmatprep.subr.bf16.mxu1 %v7853_v58  ;;  %v7893_v58 = vpack.c.bf16 %v4614_v56, %v4612_v55  ;;  %v4910_v55 = vld [vmem:[#allocation39 + $0x260] sm:$0xff]  ;;  %v4912_v56 = vld [vmem:[#allocation39 + $0x270] sm:$0xff] }
 0xfbb   : > { %4494 = vmatmul.mubr.f32.vlgmr.msra.gmra.mrb[28].mxu1 %v10447_v60  ;;  %v4650_v60 = vld [vmem:[#allocation39 + $0x170] sm:$0xff] }
 0xfbc   : > { %7856 = vmatpush1.bf16.msra.mxu1 %v7855_v62  ;;  %4499 = vmatprep.mubr.f32.mxu1 %v9526_v12  ;;  %v7867_v18 = vpack.c.bf16 %v4650_v60, %v4648_v33  ;;  %v7895_v62 = vpack.c.bf16 %v4613_v61, %v4611_v59  ;;  %v4628_v33 = vld [vmem:[#allocation39 + $0xc8] sm:$0xff]  ;;  %v4630_v60 = vld [vmem:[#allocation39 + $0xd8] sm:$0xff]  ;;  %v7935_v59 = vpack.c.bf16 %v4912_v56, %v4910_v55 }
 0xfbd   : > { %7858 = vmatprep.subr.bf16.mxu1 %v7857_v15  ;;  %v7897_v15 = vpack.c.bf16 %v4618_v0, %v4616_v63  ;;  %v7909_v17 = vpack.c.bf16 %v4630_v60, %v4628_v33  ;;  %v4914_v63 = vld [vmem:[#allocation39 + $0x280] sm:$0xff]  ;;  %v4916_v0 = vld [vmem:[#allocation39 + $0x290] sm:$0xff] }
 0xfbe   : > { %v4926_v33 = vld [vmem:[#allocation39 + $0x2e0] sm:$0xff]  ;;  %v4928_v60 = vld [vmem:[#allocation39 + $0x2f0] sm:$0xff] }
 0xfbf   : > { %4500 = vmatmul.mubr.f32.gmra.mrb[30].mxu1 %v10445_v43  ;;  %v7871_v43 = vpack.c.bf16 %v4654_v52, %v4652_v21  ;;  %v4632_v21 = vld [vmem:[#allocation39 + $0xe8] sm:$0xff]  ;;  %v4634_v52 = vld [vmem:[#allocation39 + $0xf8] sm:$0xff] }
 0xfc0   : > { %7860 = vmatpush1.bf16.msra.mxu1 %v7859_v34  ;;  %4732 = vmatprep.mubr.f32.mxu1 %v9526_v12  ;;  %v7901_v34 = vpack.c.bf16 %v4622_v3, %v4620_v2  ;;  %v7913_v24 = vpack.c.bf16 %v4634_v52, %v4632_v21  ;;  %v4918_v2 = vld [vmem:[#allocation39 + $0x2a0] sm:$0xff]  ;;  %v4920_v3 = vld [vmem:[#allocation39 + $0x2b0] sm:$0xff] }
 0xfc1   : > { %7862 = vmatprep.subr.bf16.mxu1 %v7861_v6  ;;  %v4619_v6 = vld [vmem:[#allocation39 + $0x80] sm:$0xff]  ;;  %v5015_v21 = vld [vmem:[%s10672_s13] sm:$0x3] }
 0xfc4   : > { %7864 = vmatpush1.bf16.msra.mxu1 %v7863_v13  ;;  %v4623_v13 = vld [vmem:[#allocation39 + $0xa0] sm:$0xff] }
 0xfc5   : > { %7866 = vmatprep.subr.bf16.mxu1 %v7865_v14  ;;  %v4625_v14 = vld [vmem:[#allocation39 + $0xb0] sm:$0xff] }
 0xfc6   : > { %v7907_v16 = vpack.c.bf16 %v4625_v14, %v4623_v13  ;;  %v7947_v13 = vpack.c.bf16 %v4924_v9, %v4922_v8  ;;  %v5222_v8 = vld [vmem:[#allocation40 + $0x268] sm:$0xff]  ;;  %v5224_v9 = vld [vmem:[#allocation40 + $0x278] sm:$0xff] }
 0xfc8   : > { %7868 = vmatpush1.bf16.msra.mxu1 %v7867_v18  ;;  %v4627_v18 = vld [vmem:[#allocation39 + $0xc0] sm:$0xff] }
 0xfc9   : > { %7870 = vmatprep.subr.bf16.mxu1 %v7869_v20  ;;  %v4629_v20 = vld [vmem:[#allocation39 + $0xd0] sm:$0xff] }
 0xfca   : > { %v7911_v23 = vpack.c.bf16 %v4629_v20, %v4627_v18 }
 0xfcc   : > { %7872 = vmatpush1.bf16.msra.mxu1 %v7871_v43  ;;  %v4631_v43 = vld [vmem:[#allocation39 + $0xe0] sm:$0xff] }
 0xfcd   : > { %7874 = vmatprep.subr.bf16.mxu1 %v7873_v25  ;;  %v4633_v25 = vld [vmem:[#allocation39 + $0xf0] sm:$0xff] }
 0xfce   : > { %v7915_v28 = vpack.c.bf16 %v4633_v25, %v4631_v43 }
 0xfd0   : > { %7876 = vmatpush1.bf16.msra.mxu1 %v7875_v30  ;;  %v4898_v30 = vld [vmem:[#allocation39 + $0x200] sm:$0xff] }
 0xfd1   : > { %7878 = vmatprep.subr.bf16.mxu1 %v7877_v32  ;;  %v4900_v32 = vld [vmem:[#allocation39 + $0x210] sm:$0xff] }
 0xfd2   : > { %v7923_v37 = vpack.c.bf16 %v4900_v32, %v4898_v30 }
 0xfd4   : > { %7880 = vmatpush1.bf16.msra.mxu1 %v7879_v38  ;;  %v7925_v38 = vpack.c.bf16 %v4905_v36, %v4903_v35 }
 0xfd5   : > { %7882 = vmatprep.subr.bf16.mxu1 %v7881_v39  ;;  %v4902_v39 = vld [vmem:[#allocation39 + $0x220] sm:$0xff] }
 0xfd8   : > { %7884 = vmatpush1.bf16.msra.mxu1 %v7883_v41  ;;  %v7927_v41 = vpack.c.bf16 %v4904_v42, %v4902_v39 }
 0xfd9   : > { %7886 = vmatprep.subr.bf16.mxu1 %v7885_v46  ;;  %v7929_v46 = vpack.c.bf16 %v4909_v40, %v4907_v11 }
 0xfdb   : > { %4733 = vmatmul.mubr.f32.vlgmr.msra.gmra.mrb[28].mxu1 %v10453_v7  ;;  %v4617_v7 = vld [vmem:[#allocation39 + $0x70] sm:$0xff] }
 0xfdc   : > { %4738 = vmatprep.mubr.f32.mxu1 %v9526_v12  ;;  %7888 = vmatpush1.bf16.msra.mxu1 %v7887_v49  ;;  %v7899_v4 = vpack.c.bf16 %v4617_v7, %v4615_v1  ;;  %v4913_v49 = vld [vmem:[#allocation39 + $0x278] sm:$0xff]  ;;  %v7939_v1 = vpack.c.bf16 %v4916_v0, %v4914_v63 }
 0xfdd   : > { %7890 = vmatprep.subr.bf16.mxu1 %v7889_v51  ;;  %v7933_v54 = vpack.c.bf16 %v4913_v49, %v4911_v50  ;;  %v5210_v50 = vld [vmem:[#allocation40 + $0x208] sm:$0xff]  ;;  %v5212_v49 = vld [vmem:[#allocation40 + $0x218] sm:$0xff] }
 0xfde   : > { %v7957_v56 = vpack.c.bf16 %v5212_v49, %v5210_v50  ;;  %v5216_v63 = vld [vmem:[#allocation40 + $0x238] sm:$0xff] }
 0xfdf   : > { %4739 = vmatmul.mubr.f32.gmra.mrb[30].mxu1 %v10451_v5  ;;  %v7903_v5 = vpack.c.bf16 %v4621_v31, %v4619_v6  ;;  %v7943_v6 = vpack.c.bf16 %v4920_v3, %v4918_v2  ;;  %v5220_v2 = vld [vmem:[#allocation40 + $0x258] sm:$0xff] }
 0xfe0   : > { %7892 = vmatpush1.bf16.msra.mxu1 %v7891_v57  ;;  %4809 = vmatprep.mubr.f32.mxu1 %v9526_v12  ;;  %v4915_v57 = vld [vmem:[#allocation39 + $0x288] sm:$0xff]  ;;  %v8595_v3 = vld [vmem:[%s10666_s1] sm:$0xff] }
 0xfe1   : > { %7894 = vmatprep.subr.bf16.mxu1 %v7893_v58  ;;  %v4917_v58 = vld [vmem:[#allocation39 + $0x298] sm:$0xff] }
 0xfe2   : > { %v7937_v61 = vpack.c.bf16 %v4917_v58, %v4915_v57  ;;  %v5209_v57 = vld [vmem:[#allocation40 + $0x200] sm:$0xff]  ;;  %v5211_v58 = vld [vmem:[#allocation40 + $0x210] sm:$0xff]  ;;  %v5248_v50 = vld [vmem:[#allocation40 + $0x338] sm:$0xff] }
 0xfe3   : > { %v7959_v0 = vpack.c.bf16 %v5211_v58, %v5209_v57  ;;  %v5247_v57 = vld [vmem:[#allocation40 + $0x330] sm:$0xff]  ;;  %v5250_v58 = vld [vmem:[#allocation40 + $0x348] sm:$0xff] }
 0xfe4   : > { %7896 = vmatpush1.bf16.msra.mxu1 %v7895_v62  ;;  %v4919_v62 = vld [vmem:[#allocation39 + $0x2a8] sm:$0xff] }
 0xfe5   : > { %7898 = vmatprep.subr.bf16.mxu1 %v7897_v15  ;;  %v4921_v15 = vld [vmem:[#allocation39 + $0x2b8] sm:$0xff] }
 0xfe6   : > { %v7941_v7 = vpack.c.bf16 %v4921_v15, %v4919_v62  ;;  %v5213_v15 = vld [vmem:[#allocation40 + $0x220] sm:$0xff] }
 0xfe8   : > { %7900 = vmatpush1.bf16.msra.mxu1 %v7899_v4  ;;  %v4923_v4 = vld [vmem:[#allocation39 + $0x2c8] sm:$0xff] }
 0xfe9   : > { %7902 = vmatprep.subr.bf16.mxu1 %v7901_v34  ;;  %v4925_v34 = vld [vmem:[#allocation39 + $0x2d8] sm:$0xff] }
 0xfea   : > { %v7945_v31 = vpack.c.bf16 %v4925_v34, %v4923_v4 }
 0xfec   : > { %7904 = vmatpush1.bf16.msra.mxu1 %v7903_v5  ;;  %v4927_v5 = vld [vmem:[#allocation39 + $0x2e8] sm:$0xff] }
 0xfed   : > { %7906 = vmatprep.subr.bf16.mxu1 %v7905_v10  ;;  %v4929_v10 = vld [vmem:[#allocation39 + $0x2f8] sm:$0xff] }
 0xfee   : > { %v7949_v14 = vpack.c.bf16 %v4929_v10, %v4927_v5  ;;  %v7969_v10 = vpack.c.bf16 %v5224_v9, %v5222_v8 }
 0xff0   : > { %7908 = vmatpush1.bf16.msra.mxu1 %v7907_v16  ;;  %v7951_v16 = vpack.c.bf16 %v4928_v60, %v4926_v33  ;;  %v5226_v33 = vld [vmem:[#allocation40 + $0x288] sm:$0xff]  ;;  %v5228_v60 = vld [vmem:[#allocation40 + $0x298] sm:$0xff] }
 0xff1   : > { %7910 = vmatprep.subr.bf16.mxu1 %v7909_v17  ;;  %v5017_v17 = vlaneseq }
 0xff3   : > { %v5018_v18 = vshrl.u32 %v5017_v17, 7  ;;  %v7973_v17 = vpack.c.bf16 %v5228_v60, %v5226_v33 }
 0xff4   : > { %7912 = vmatpush1.bf16.msra.mxu1 %v7911_v23 }
 0xff5   : > { %7914 = vmatprep.subr.bf16.mxu1 %v7913_v24  ;;  %v10477_v20 = vsub.s32 0, %v5018_v18  ;;  %v10480_v52 = vsub.s32 1, %v5018_v18  ;;  %v5225_v18 = vld [vmem:[#allocation40 + $0x280] sm:$0xff] }
 0xff7   : > { %v5020_v23 = vrot.slane %v5015_v21, %v10477_v20  ;;  %v5024_v24 = vrot.slane %v5015_v21, %v10480_v52  ;;  %v5044_v30 = vrot.slane %v5035_v45, %v10480_v52  ;;  %v5040_v36 = vrot.slane %v5035_v45, %v10477_v20  ;;  %v5227_v21 = vld [vmem:[#allocation40 + $0x290] sm:$0xff] }
 0xff8   : > { %7916 = vmatpush1.bf16.msra.mxu1 %v7915_v28  ;;  %v5231_v45 = vld [vmem:[#allocation40 + $0x2b0] sm:$0xff] }
 0xff9   : > { %7922 = vmatprep.subr.bf16.mxu1 %v7921_v29 }
0x1074   : > { %v7335_v44 = vpop.f32.mrb[22].mxu0 }
0x1075   : > { %v4594_v19 = vpop.f32.mrb[23].mxu0 }
0x1076   : > { %4810 = vmatmul.mubr.f32.vlgmr.msra.gmra.mrb[28].mxu1 %v4594_v19 }
0x1077   : > { %7924 = vmatpush1.bf16.msra.mxu1 %v7923_v37  ;;  %4815 = vmatprep.mubr.f32.mxu1 %v9526_v12  ;;  %v5051_v37 = vld [vmem:[%s10674_s7] sm:$0x3] }
0x1078   : > { %7926 = vmatprep.subr.bf16.mxu1 %v7925_v38  ;;  %v7342_v48 = vpop.f32.mrb[24].mxu0  ;;  %v5060_v11 = vrot.slane %v5051_v37, %v10480_v52 }
0x1079   : > { %v4888_v51 = vpop.f32.mrb[25].mxu0 }
0x107a   : > { %4816 = vmatmul.mubr.f32.gmra.mrb[30].mxu1 %v7335_v44 }
0x107b   : > { %7928 = vmatpush1.bf16.msra.mxu1 %v7927_v41  ;;  %4994 = vmatprep.mubr.f32.mxu1 %v9526_v12 }
0x107c   : > { %7930 = vmatprep.subr.bf16.mxu1 %v7929_v46  ;;  %v5056_v46 = vrot.slane %v5051_v37, %v10477_v20  ;;  %v5240_v37 = vld [vmem:[#allocation40 + $0x2f8] sm:$0xff] }
0x107f   : > { %7932 = vmatpush1.bf16.msra.mxu1 %v7931_v53 }
0x1080   : > { %7934 = vmatprep.subr.bf16.mxu1 %v7933_v54 }
0x1083   : > { %7936 = vmatpush1.bf16.msra.mxu1 %v7935_v59 }
0x1084   : > { %7938 = vmatprep.subr.bf16.mxu1 %v7937_v61  ;;  %v5214_v61 = vld [vmem:[#allocation40 + $0x228] sm:$0xff] }
0x1085   : > { %v7961_v62 = vpack.c.bf16 %v5216_v63, %v5214_v61  ;;  %v5252_v61 = vld [vmem:[#allocation40 + $0x358] sm:$0xff] }
0x1087   : > { %7940 = vmatpush1.bf16.msra.mxu1 %v7939_v1  ;;  %v5215_v1 = vld [vmem:[#allocation40 + $0x230] sm:$0xff] }
0x1088   : > { %7942 = vmatprep.subr.bf16.mxu1 %v7941_v7  ;;  %v5218_v7 = vld [vmem:[#allocation40 + $0x248] sm:$0xff]  ;;  %v7963_v4 = vpack.c.bf16 %v5215_v1, %v5213_v15  ;;  %v5251_v15 = vld [vmem:[#allocation40 + $0x350] sm:$0xff] }
0x1089   : > { %v7965_v34 = vpack.c.bf16 %v5220_v2, %v5218_v7  ;;  %v5254_v1 = vld [vmem:[#allocation40 + $0x368] sm:$0xff]  ;;  %v5256_v7 = vld [vmem:[#allocation40 + $0x378] sm:$0xff] }
0x108b   : > { %7944 = vmatpush1.bf16.msra.mxu1 %v7943_v6  ;;  %v5217_v6 = vld [vmem:[#allocation40 + $0x240] sm:$0xff] }
0x108c   : > { %7946 = vmatprep.subr.bf16.mxu1 %v7945_v31  ;;  %v5219_v31 = vld [vmem:[#allocation40 + $0x250] sm:$0xff] }
0x108d   : > { %v7967_v5 = vpack.c.bf16 %v5219_v31, %v5217_v6  ;;  %v5258_v6 = vld [vmem:[#allocation40 + $0x388] sm:$0xff]  ;;  %v5260_v31 = vld [vmem:[#allocation40 + $0x398] sm:$0xff] }
0x108e   : > { %v8005_v9 = vpack.c.bf16 %v5260_v31, %v5258_v6  ;;  %v5166_v6 = vld [vmem:[#allocation40 + $0xb0] sm:$0xff]  ;;  %v5169_v31 = vld [vmem:[#allocation40 + $0xc8] sm:$0xff] }
0x108f   : > { %7948 = vmatpush1.bf16.msra.mxu1 %v7947_v13  ;;  %v5221_v13 = vld [vmem:[#allocation40 + $0x260] sm:$0xff] }
0x1090   : > { %7950 = vmatprep.subr.bf16.mxu1 %v7949_v14  ;;  %v5223_v14 = vld [vmem:[#allocation40 + $0x270] sm:$0xff] }
0x1093   : > { %7952 = vmatpush1.bf16.msra.mxu1 %v7951_v16  ;;  %v7971_v16 = vpack.c.bf16 %v5223_v14, %v5221_v13  ;;  %v5262_v13 = vld [vmem:[#allocation40 + $0x3a8] sm:$0xff]  ;;  %v5264_v14 = vld [vmem:[#allocation40 + $0x3b8] sm:$0xff] }
0x1094   : > { %v8009_v60 = vpack.c.bf16 %v5264_v14, %v5262_v13  ;;  %v5170_v13 = vld [vmem:[#allocation40 + $0xd0] sm:$0xff]  ;;  %v5173_v14 = vld [vmem:[#allocation40 + $0xe8] sm:$0xff] }
0x1096   : > { %4995 = vmatmul.mubr.f32.vlgmr.msra.gmra.mrb[28].mxu1 %v4888_v51 }
0x1097   : > { %5000 = vmatprep.mubr.f32.mxu1 %v9526_v12 }
0x109a   : > { %5001 = vmatmul.mubr.f32.gmra.mrb[30].mxu1 %v7342_v48 }
0x1169   : > { %v4996_v43 = vpop.f32.mrb[28].mxu1 }
0x116a   : > { %v5027_v25 = vadd.f32 %v5020_v23, %v4996_v43  ;;  %v4998_v26 = vpop.f32.mrb[29].mxu1  ;;  %v7975_v43 = vpack.c.bf16 %v5227_v21, %v5225_v18  ;;  %v5266_v18 = vld [vmem:[#allocation40 + $0x3c8] sm:$0xff]  ;;  %v5268_v21 = vld [vmem:[#allocation40 + $0x3d8] sm:$0xff] }
0x116b   : > { %v5028_v28 = vadd.f32 %v5024_v24, %v4998_v26  ;;  %v5234_v26 = vld [vmem:[#allocation40 + $0x2c8] sm:$0xff] }
0x116c   : > { %v5031_v35 = vmax.f32 %v5027_v25, 0.0  ;;  %v5229_v25 = vld [vmem:[#allocation40 + $0x2a0] sm:$0xff] }
0x116d   : > { %v5032_v29 = vmax.f32 %v5028_v28, 0.0  ;;  %v5002_v32 = vpop.f32.mrb[30].mxu1  ;;  %v5236_v28 = vld [vmem:[#allocation40 + $0x2d8] sm:$0xff] }
0x116e   : > { %v5029_v44 = vadd.f32 %v5020_v23, %v5002_v32  ;;  %v5004_v38 = vpop.f32.mrb[31].mxu1  ;;  %v5047_v41 = vmul.f32 %v5040_v36, %v5031_v35  ;;  %v5230_v23 = vld [vmem:[#allocation40 + $0x2a8] sm:$0xff]  ;;  %v5233_v32 = vld [vmem:[#allocation40 + $0x2c0] sm:$0xff]  ;;  %v5235_v35 = vld [vmem:[#allocation40 + $0x2d0] sm:$0xff] }
0x116f   : > { %v5030_v39 = vadd.f32 %v5024_v24, %v5004_v38  ;;  %v5048_v19 = vmul.f32 %v5044_v30, %v5032_v29  ;;  %v5232_v24 = vld [vmem:[#allocation40 + $0x2b8] sm:$0xff]  ;;  %v7979_v29 = vpack.c.bf16 %v5231_v45, %v5229_v25  ;;  %v5270_v25 = vld [vmem:[#allocation40 + $0x3e8] sm:$0xff] }
0x1170   : > { %v5033_v42 = vmax.f32 %v5029_v44, 0.0  ;;  %v10494_v54 = vadd.f32 %v5056_v46, %v5047_v41  ;;  %v7983_v44 = vpack.c.bf16 %v5235_v35, %v5233_v32  ;;  %v5272_v45 = vld [vmem:[#allocation40 + $0x3f8] sm:$0xff]  ;;  %v5145_v32 = vld [vmem:[#allocation40 + $0x8] sm:$0xff] }
0x1171   : > { %v5034_v40 = vmax.f32 %v5030_v39, 0.0  ;;  %v5064_v51 = vadd.f32 %v5060_v11, %v5048_v19  ;;  %v5237_v39 = vld [vmem:[#allocation40 + $0x2e0] sm:$0xff]  ;;  %v5242_v19 = vld [vmem:[#allocation40 + $0x308] sm:$0xff]  ;;  %v5147_v35 = vld [vmem:[#allocation40 + $0x18] sm:$0xff] }
0x1172   : > { %v5049_v22 = vmul.f32 %v5040_v36, %v5033_v42  ;;  %v5238_v36 = vld [vmem:[#allocation40 + $0x2e8] sm:$0xff]  ;;  %v5239_v42 = vld [vmem:[#allocation40 + $0x2f0] sm:$0xff] }
0x1173   : > { %v5050_v47 = vmul.f32 %v5044_v30, %v5034_v40  ;;  %v7981_v30 = vpack.c.bf16 %v5236_v28, %v5234_v26  ;;  %v7985_v38 = vpack.c.bf16 %v5240_v37, %v5238_v36  ;;  %v7987_v40 = vpack.c.bf16 %v5239_v42, %v5237_v39  ;;  %v5149_v39 = vld [vmem:[#allocation40 + $0x28] sm:$0xff]  ;;  %v5151_v42 = vld [vmem:[#allocation40 + $0x38] sm:$0xff] }
0x1174   : > { %v10490_v48 = vadd.f32 %v5056_v46, %v5049_v22  ;;  %v5241_v46 = vld [vmem:[#allocation40 + $0x300] sm:$0xff]  ;;  %v5243_v22 = vld [vmem:[#allocation40 + $0x310] sm:$0xff]  ;;  %v8017_v28 = vpack.c.bf16 %v5272_v45, %v5270_v25  ;;  %v8021_v37 = vpack.c.bf16 %v5147_v35, %v5145_v32  ;;  %v5181_v45 = vld [vmem:[#allocation40 + $0x128] sm:$0xff] }
0x1175   : > { %v10492_v53 = vadd.f32 %v5060_v11, %v5050_v47  ;;  %v5244_v11 = vld [vmem:[#allocation40 + $0x318] sm:$0xff]  ;;  %v5246_v47 = vld [vmem:[#allocation40 + $0x328] sm:$0xff]  ;;  %v7991_v49 = vpack.c.bf16 %v5243_v22, %v5241_v46  ;;  %v5178_v25 = vld [vmem:[#allocation40 + $0x110] sm:$0xff] }
0x1176   : > { %v10501_v59 = vpack.c.bf16 %v10490_v48, %v10494_v54  ;;  %v7989_v41 = vpack.c.bf16 %v5244_v11, %v5242_v19  ;;  %v8025_v11 = vpack.c.bf16 %v5151_v42, %v5149_v39  ;;  %v5153_v46 = vld [vmem:[#allocation40 + $0x48] sm:$0xff]  ;;  %v5155_v22 = vld [vmem:[#allocation40 + $0x58] sm:$0xff]  ;;  %v5182_v32 = vld [vmem:[#allocation40 + $0x130] sm:$0xff] }
0x1177   : > { %v10497_v55 = vpack.c.bf16 %v10492_v53, %v5064_v51  ;;  %v5185_v35 = vld [vmem:[#allocation40 + $0x148] sm:$0xff]  ;;  %v5186_v39 = vld [vmem:[#allocation40 + $0x150] sm:$0xff] }
0x1178   : > { %v5189_v42 = vld [vmem:[#allocation40 + $0x168] sm:$0xff] }
0x1179   : > { %7954 = vmatprep.subr.bf16.mxu0 %v10497_v55 }
0x117a   : > { %7956 = vmatpush1.bf16.msra.mxu0 %v10501_v59 }
0x117b   : > { %7958 = vmatprep.subr.bf16.mxu0 %v7957_v56  ;;  %v5245_v56 = vld [vmem:[#allocation40 + $0x320] sm:$0xff] }
0x117c   : > { %v7995_v63 = vpack.c.bf16 %v5247_v57, %v5245_v56  ;;  %v5157_v56 = vld [vmem:[#allocation40 + $0x68] sm:$0xff]  ;;  %v5159_v57 = vld [vmem:[#allocation40 + $0x78] sm:$0xff] }
0x117d   : > { %6395 = vmatmul.mubr.msk.f32.vlgmr.msra.gmra.mrb[26].mxu0 %vm1759_vm1, %v8595_v3  ;;  %v8001_v3 = vpack.c.bf16 %v5256_v7, %v5254_v1  ;;  %v5160_v1 = vld [vmem:[#allocation40 + $0x80] sm:$0xff]  ;;  %v5162_v7 = vld [vmem:[#allocation40 + $0x90] sm:$0xff] }
0x117e   : > { %7960 = vmatpush1.bf16.msra.mxu0 %v7959_v0  ;;  %5137 = vmatprep.mubr.f32.mxu0 %v9526_v12  ;;  %v7997_v0 = vpack.c.bf16 %v5252_v61, %v5250_v58  ;;  %v8033_v61 = vpack.c.bf16 %v5159_v57, %v5157_v56  ;;  %v5194_v56 = vld [vmem:[#allocation40 + $0x190] sm:$0xff]  ;;  %v5197_v57 = vld [vmem:[#allocation40 + $0x1a8] sm:$0xff] }
0x117f   : > { %7962 = vmatprep.subr.bf16.mxu0 %v7961_v62  ;;  %v5249_v62 = vld [vmem:[#allocation40 + $0x340] sm:$0xff] }
0x1180   : > { %v7999_v2 = vpack.c.bf16 %v5251_v15, %v5249_v62  ;;  %v5161_v62 = vld [vmem:[#allocation40 + $0x88] sm:$0xff] }
0x1181   : > { %6396 = vmatmul.mubr.msk.f32.gmra.mrb[28].mxu0 %vm1759_vm1, %v10436_v27  ;;  %v7977_v27 = vpack.c.bf16 %v5232_v24, %v5230_v23  ;;  %v8013_v24 = vpack.c.bf16 %v5268_v21, %v5266_v18  ;;  %v5174_v18 = vld [vmem:[#allocation40 + $0xf0] sm:$0xff]  ;;  %v5177_v21 = vld [vmem:[#allocation40 + $0x108] sm:$0xff] }
0x1182   : > { %7964 = vmatpush1.bf16.msra.mxu0 %v7963_v4  ;;  %5337 = vmatprep.mubr.f32.mxu0 %v5064_v51  ;;  %v7993_v51 = vpack.c.bf16 %v5248_v50, %v5246_v47  ;;  %v5253_v4 = vld [vmem:[#allocation40 + $0x360] sm:$0xff]  ;;  %v8029_v50 = vpack.c.bf16 %v5155_v22, %v5153_v46  ;;  %v5190_v46 = vld [vmem:[#allocation40 + $0x170] sm:$0xff]  ;;  %v5193_v22 = vld [vmem:[#allocation40 + $0x188] sm:$0xff] }
0x1183   : > { %7966 = vmatprep.subr.bf16.mxu0 %v7965_v34  ;;  %v5255_v34 = vld [vmem:[#allocation40 + $0x370] sm:$0xff] }
0x1184   : > { %v8003_v8 = vpack.c.bf16 %v5255_v34, %v5253_v4  ;;  %v8039_v4 = vpack.c.bf16 %v5162_v7, %v5160_v1  ;;  %v5164_v34 = vld [vmem:[#allocation40 + $0xa0] sm:$0xff] }
0x1185   : > { %v5200_v7 = vld [vmem:[#allocation40 + $0x1c0] sm:$0xff] }
0x1186   : > { %7968 = vmatpush1.bf16.msra.mxu0 %v7967_v5  ;;  %v5257_v5 = vld [vmem:[#allocation40 + $0x380] sm:$0xff] }
0x1187   : > { %7970 = vmatprep.subr.bf16.mxu0 %v7969_v10  ;;  %v5259_v10 = vld [vmem:[#allocation40 + $0x390] sm:$0xff] }
0x1188   : > { %v8007_v33 = vpack.c.bf16 %v5259_v10, %v5257_v5  ;;  %v5168_v10 = vld [vmem:[#allocation40 + $0xc0] sm:$0xff] }
0x118a   : > { %7972 = vmatpush1.bf16.msra.mxu0 %v7971_v16  ;;  %v5261_v16 = vld [vmem:[#allocation40 + $0x3a0] sm:$0xff] }
0x118b   : > { %7974 = vmatprep.subr.bf16.mxu0 %v7973_v17  ;;  %v5263_v17 = vld [vmem:[#allocation40 + $0x3b0] sm:$0xff] }
0x118c   : > { %v8011_v23 = vpack.c.bf16 %v5263_v17, %v5261_v16  ;;  %v5172_v17 = vld [vmem:[#allocation40 + $0xe0] sm:$0xff] }
0x118e   : > { %7976 = vmatpush1.bf16.msra.mxu0 %v7975_v43  ;;  %v5265_v43 = vld [vmem:[#allocation40 + $0x3c0] sm:$0xff] }
0x118f   : > { %7978 = vmatprep.subr.bf16.mxu0 %v7977_v27  ;;  %v5267_v27 = vld [vmem:[#allocation40 + $0x3d0] sm:$0xff] }
0x1190   : > { %v8015_v26 = vpack.c.bf16 %v5267_v27, %v5265_v43  ;;  %v5176_v27 = vld [vmem:[#allocation40 + $0x100] sm:$0xff] }
0x1192   : > { %7980 = vmatpush1.bf16.msra.mxu0 %v7979_v29  ;;  %v5269_v29 = vld [vmem:[#allocation40 + $0x3e0] sm:$0xff] }
0x1193   : > { %7982 = vmatprep.subr.bf16.mxu0 %v7981_v30  ;;  %v5271_v30 = vld [vmem:[#allocation40 + $0x3f0] sm:$0xff] }
0x1194   : > { %v8019_v36 = vpack.c.bf16 %v5271_v30, %v5269_v29  ;;  %v5180_v30 = vld [vmem:[#allocation40 + $0x120] sm:$0xff] }
0x1196   : > { %7984 = vmatpush1.bf16.msra.mxu0 %v7983_v44  ;;  %v5144_v44 = vld [vmem:[#allocation40] sm:$0xff] }
0x1197   : > { %7986 = vmatprep.subr.bf16.mxu0 %v7985_v38  ;;  %v5146_v38 = vld [vmem:[#allocation40 + $0x10] sm:$0xff] }
0x1198   : > { %v8023_v19 = vpack.c.bf16 %v5146_v38, %v5144_v44  ;;  %v5184_v38 = vld [vmem:[#allocation40 + $0x140] sm:$0xff] }
0x119a   : > { %7988 = vmatpush1.bf16.msra.mxu0 %v7987_v40  ;;  %v5148_v40 = vld [vmem:[#allocation40 + $0x20] sm:$0xff] }
0x119b   : > { %7990 = vmatprep.subr.bf16.mxu0 %v7989_v41  ;;  %v5150_v41 = vld [vmem:[#allocation40 + $0x30] sm:$0xff] }
0x119c   : > { %v8027_v47 = vpack.c.bf16 %v5150_v41, %v5148_v40  ;;  %v5188_v41 = vld [vmem:[#allocation40 + $0x160] sm:$0xff] }
0x119e   : > { %7992 = vmatpush1.bf16.msra.mxu0 %v7991_v49  ;;  %v5152_v49 = vld [vmem:[#allocation40 + $0x40] sm:$0xff] }
0x119f   : > { %7994 = vmatprep.subr.bf16.mxu0 %v7993_v51  ;;  %v5154_v51 = vld [vmem:[#allocation40 + $0x50] sm:$0xff] }
0x11a0   : > { %v8031_v58 = vpack.c.bf16 %v5154_v51, %v5152_v49  ;;  %v5192_v51 = vld [vmem:[#allocation40 + $0x180] sm:$0xff] }
0x11a2   : > { %7996 = vmatpush1.bf16.msra.mxu0 %v7995_v63  ;;  %v5156_v63 = vld [vmem:[#allocation40 + $0x60] sm:$0xff] }
0x11a3   : > { %7998 = vmatprep.subr.bf16.mxu0 %v7997_v0  ;;  %v5158_v0 = vld [vmem:[#allocation40 + $0x70] sm:$0xff] }
0x11a6   : > { %8000 = vmatpush1.bf16.msra.mxu0 %v7999_v2  ;;  %v5165_v2 = vld [vmem:[#allocation40 + $0xa8] sm:$0xff] }
0x11a7   : > { %8002 = vmatprep.subr.bf16.mxu0 %v8001_v3  ;;  %v5167_v3 = vld [vmem:[#allocation40 + $0xb8] sm:$0xff] }
0x11aa   : > { %8004 = vmatpush1.bf16.msra.mxu0 %v8003_v8  ;;  %v5171_v8 = vld [vmem:[#allocation40 + $0xd8] sm:$0xff] }
0x11ab   : > { %8006 = vmatprep.subr.bf16.mxu0 %v8005_v9  ;;  %v8043_v9 = vpack.c.bf16 %v5166_v6, %v5164_v34  ;;  %v8045_v5 = vpack.c.bf16 %v5171_v8, %v5169_v31  ;;  %v5204_v6 = vld [vmem:[#allocation40 + $0x1e0] sm:$0xff]  ;;  %v5206_v31 = vld [vmem:[#allocation40 + $0x1f0] sm:$0xff] }
0x11ac   : > { %v8083_v8 = vpack.c.bf16 %v5206_v31, %v5204_v6  ;;  %v5542_v6 = vld [vmem:[#allocation40 + $0x528] sm:$0xff]  ;;  %v5544_v31 = vld [vmem:[#allocation40 + $0x538] sm:$0xff] }
0x11ae   : > { %8008 = vmatpush1.bf16.msra.mxu0 %v8007_v33  ;;  %v5175_v33 = vld [vmem:[#allocation40 + $0xf8] sm:$0xff] }
0x11af   : > { %8010 = vmatprep.subr.bf16.mxu0 %v8009_v60  ;;  %v8047_v60 = vpack.c.bf16 %v5170_v13, %v5168_v10  ;;  %v8049_v16 = vpack.c.bf16 %v5175_v33, %v5173_v14 }
0x11b2   : > { %8012 = vmatpush1.bf16.msra.mxu0 %v8011_v23  ;;  %v5179_v23 = vld [vmem:[#allocation40 + $0x118] sm:$0xff] }
0x11b3   : > { %8014 = vmatprep.subr.bf16.mxu0 %v8013_v24  ;;  %v8051_v24 = vpack.c.bf16 %v5174_v18, %v5172_v17  ;;  %v8053_v43 = vpack.c.bf16 %v5179_v23, %v5177_v21  ;;  %v5507_v17 = vld [vmem:[#allocation40 + $0x410] sm:$0xff]  ;;  %v5510_v18 = vld [vmem:[#allocation40 + $0x428] sm:$0xff]  ;;  %v5512_v21 = vld [vmem:[#allocation40 + $0x438] sm:$0xff] }
0x11b4   : > { %v8093_v23 = vpack.c.bf16 %v5512_v21, %v5510_v18  ;;  %v5550_v18 = vld [vmem:[#allocation40 + $0x568] sm:$0xff]  ;;  %v5552_v21 = vld [vmem:[#allocation40 + $0x578] sm:$0xff] }
0x11b6   : > { %8016 = vmatpush1.bf16.msra.mxu0 %v8015_v26  ;;  %v5183_v26 = vld [vmem:[#allocation40 + $0x138] sm:$0xff] }
0x11b7   : > { %8018 = vmatprep.subr.bf16.mxu0 %v8017_v28  ;;  %v8055_v28 = vpack.c.bf16 %v5178_v25, %v5176_v27  ;;  %v8057_v29 = vpack.c.bf16 %v5183_v26, %v5181_v45  ;;  %v5514_v27 = vld [vmem:[#allocation40 + $0x448] sm:$0xff]  ;;  %v5516_v25 = vld [vmem:[#allocation40 + $0x458] sm:$0xff] }
0x11b8   : > { %v8097_v26 = vpack.c.bf16 %v5516_v25, %v5514_v27  ;;  %v5554_v27 = vld [vmem:[#allocation40 + $0x588] sm:$0xff]  ;;  %v5556_v25 = vld [vmem:[#allocation40 + $0x598] sm:$0xff] }
0x11ba   : > { %8020 = vmatpush1.bf16.msra.mxu0 %v8019_v36  ;;  %v5187_v36 = vld [vmem:[#allocation40 + $0x158] sm:$0xff] }
0x11bb   : > { %8022 = vmatprep.subr.bf16.mxu0 %v8021_v37  ;;  %v8059_v37 = vpack.c.bf16 %v5182_v32, %v5180_v30  ;;  %v8061_v44 = vpack.c.bf16 %v5187_v36, %v5185_v35  ;;  %v5518_v30 = vld [vmem:[#allocation40 + $0x468] sm:$0xff]  ;;  %v5520_v32 = vld [vmem:[#allocation40 + $0x478] sm:$0xff] }
0x11bc   : > { %v8597_v35 = vld [vmem:[%s9730_s20 + $0x8] sm:$0xff] }
0x11bd   : > { %5338 = vmatmul.mubr.f32.vlgmr.msra.gmra.mrb[30].mxu0 %v10494_v54  ;;  %v5163_v54 = vld [vmem:[#allocation40 + $0x98] sm:$0xff] }
0x11be   : > { %5343 = vmatprep.mubr.f32.mxu0 %v10492_v53  ;;  %8024 = vmatpush1.bf16.msra.mxu0 %v8023_v19  ;;  %v8035_v53 = vpack.c.bf16 %v5158_v0, %v5156_v63  ;;  %v8037_v15 = vpack.c.bf16 %v5163_v54, %v5161_v62  ;;  %v5191_v19 = vld [vmem:[#allocation40 + $0x178] sm:$0xff]  ;;  %v5196_v0 = vld [vmem:[#allocation40 + $0x1a0] sm:$0xff]  ;;  %v5198_v62 = vld [vmem:[#allocation40 + $0x1b0] sm:$0xff] }
0x11bf   : > { %8026 = vmatprep.subr.bf16.mxu0 %v8025_v11  ;;  %v8063_v11 = vpack.c.bf16 %v5186_v39, %v5184_v38  ;;  %v8065_v40 = vpack.c.bf16 %v5191_v19, %v5189_v42  ;;  %v5201_v54 = vld [vmem:[#allocation40 + $0x1c8] sm:$0xff]  ;;  %v5519_v38 = vld [vmem:[#allocation40 + $0x470] sm:$0xff]  ;;  %v5524_v42 = vld [vmem:[#allocation40 + $0x498] sm:$0xff] }
0x11c0   : > { %v5522_v39 = vld [vmem:[#allocation40 + $0x488] sm:$0xff] }
0x11c1   : > { %5344 = vmatmul.mubr.f32.gmra.mrb[32].mxu0 %v10490_v48  ;;  %v8041_v48 = vpack.c.bf16 %v5167_v3, %v5165_v2  ;;  %v5202_v2 = vld [vmem:[#allocation40 + $0x1d0] sm:$0xff]  ;;  %v5205_v3 = vld [vmem:[#allocation40 + $0x1e8] sm:$0xff]  ;;  %v8105_v19 = vpack.c.bf16 %v5524_v42, %v5522_v39 }
0x11c2   : > { %8028 = vmatpush1.bf16.msra.mxu0 %v8027_v47  ;;  %v5195_v47 = vld [vmem:[#allocation40 + $0x198] sm:$0xff] }
0x11c3   : > { %8030 = vmatprep.subr.bf16.mxu0 %v8029_v50  ;;  %v8067_v50 = vpack.c.bf16 %v5190_v46, %v5188_v41  ;;  %v8069_v49 = vpack.c.bf16 %v5195_v47, %v5193_v22  ;;  %v5526_v41 = vld [vmem:[#allocation40 + $0x4a8] sm:$0xff]  ;;  %v5528_v46 = vld [vmem:[#allocation40 + $0x4b8] sm:$0xff] }
0x11c4   : > { %v8109_v47 = vpack.c.bf16 %v5528_v46, %v5526_v41 }
0x11c6   : > { %8032 = vmatpush1.bf16.msra.mxu0 %v8031_v58  ;;  %v5199_v58 = vld [vmem:[#allocation40 + $0x1b8] sm:$0xff] }
0x11c7   : > { %8034 = vmatprep.subr.bf16.mxu0 %v8033_v61  ;;  %v8071_v61 = vpack.c.bf16 %v5194_v56, %v5192_v51  ;;  %v8073_v63 = vpack.c.bf16 %v5199_v58, %v5197_v57  ;;  %v5530_v51 = vld [vmem:[#allocation40 + $0x4c8] sm:$0xff]  ;;  %v5532_v56 = vld [vmem:[#allocation40 + $0x4d8] sm:$0xff] }
0x11c8   : > { %v8113_v58 = vpack.c.bf16 %v5532_v56, %v5530_v51  ;;  %v5683_v51 = vld [vmem:[#allocation42 + $0x88] sm:$0xff]  ;;  %v5789_v56 = vld [vmem:[#allocation43 + $0x80] sm:$0xff] }
0x11ca   : > { %8036 = vmatpush1.bf16.msra.mxu0 %v8035_v53  ;;  %v5203_v53 = vld [vmem:[#allocation40 + $0x1d8] sm:$0xff] }
0x11cb   : > { %8038 = vmatprep.subr.bf16.mxu0 %v8037_v15  ;;  %v8075_v15 = vpack.c.bf16 %v5198_v62, %v5196_v0  ;;  %v8077_v1 = vpack.c.bf16 %v5203_v53, %v5201_v54  ;;  %v5534_v0 = vld [vmem:[#allocation40 + $0x4e8] sm:$0xff]  ;;  %v5536_v62 = vld [vmem:[#allocation40 + $0x4f8] sm:$0xff] }
0x11cc   : > { %v8117_v53 = vpack.c.bf16 %v5536_v62, %v5534_v0 }
0x11ce   : > { %8040 = vmatpush1.bf16.msra.mxu0 %v8039_v4  ;;  %v5207_v4 = vld [vmem:[#allocation40 + $0x1f8] sm:$0xff] }
0x11cf   : > { %8042 = vmatprep.subr.bf16.mxu0 %v8041_v48  ;;  %v8079_v48 = vpack.c.bf16 %v5202_v2, %v5200_v7  ;;  %v8081_v34 = vpack.c.bf16 %v5207_v4, %v5205_v3  ;;  %v5538_v7 = vld [vmem:[#allocation40 + $0x508] sm:$0xff]  ;;  %v5540_v2 = vld [vmem:[#allocation40 + $0x518] sm:$0xff] }
0x11d0   : > { %v8121_v4 = vpack.c.bf16 %v5540_v2, %v5538_v7  ;;  %v5669_v7 = vld [vmem:[#allocation42 + $0x18] sm:$0xff] }
0x11d2   : > { %8044 = vmatpush1.bf16.msra.mxu0 %v8043_v9  ;;  %v5506_v9 = vld [vmem:[#allocation40 + $0x408] sm:$0xff] }
0x11d3   : > { %8046 = vmatprep.subr.bf16.mxu0 %v8045_v5  ;;  %v5508_v5 = vld [vmem:[#allocation40 + $0x418] sm:$0xff] }
0x11d4   : > { %v8089_v14 = vpack.c.bf16 %v5508_v5, %v5506_v9  ;;  %v8125_v9 = vpack.c.bf16 %v5544_v31, %v5542_v6  ;;  %v5541_v5 = vld [vmem:[#allocation40 + $0x520] sm:$0xff]  ;;  %v5671_v6 = vld [vmem:[#allocation42 + $0x28] sm:$0xff] }
0x11d6   : > { %8048 = vmatpush1.bf16.msra.mxu0 %v8047_v60 }
0x11d7   : > { %8050 = vmatprep.subr.bf16.mxu0 %v8049_v16  ;;  %v5505_v16 = vld [vmem:[#allocation40 + $0x400] sm:$0xff] }
0x11da   : > { %8052 = vmatpush1.bf16.msra.mxu0 %v8051_v24  ;;  %v5509_v24 = vld [vmem:[#allocation40 + $0x420] sm:$0xff] }
0x11db   : > { %8054 = vmatprep.subr.bf16.mxu0 %v8053_v43  ;;  %v5511_v43 = vld [vmem:[#allocation40 + $0x430] sm:$0xff] }
0x11dc   : > { %v8095_v45 = vpack.c.bf16 %v5511_v43, %v5509_v24  ;;  %v5549_v24 = vld [vmem:[#allocation40 + $0x560] sm:$0xff]  ;;  %v5551_v43 = vld [vmem:[#allocation40 + $0x570] sm:$0xff] }
0x11de   : > { %8056 = vmatpush1.bf16.msra.mxu0 %v8055_v28  ;;  %v5513_v28 = vld [vmem:[#allocation40 + $0x440] sm:$0xff] }
0x11df   : > { %8058 = vmatprep.subr.bf16.mxu0 %v8057_v29  ;;  %v5515_v29 = vld [vmem:[#allocation40 + $0x450] sm:$0xff] }
0x11e0   : > { %v8099_v36 = vpack.c.bf16 %v5515_v29, %v5513_v28  ;;  %v5555_v28 = vld [vmem:[#allocation40 + $0x590] sm:$0xff]  ;;  %v5558_v29 = vld [vmem:[#allocation40 + $0x5a8] sm:$0xff] }
0x11e2   : > { %8060 = vmatpush1.bf16.msra.mxu0 %v8059_v37  ;;  %v8101_v37 = vpack.c.bf16 %v5520_v32, %v5518_v30  ;;  %v5560_v30 = vld [vmem:[#allocation40 + $0x5b8] sm:$0xff] }
0x11e3   : > { %8062 = vmatprep.subr.bf16.mxu0 %v8061_v44  ;;  %v5517_v44 = vld [vmem:[#allocation40 + $0x460] sm:$0xff] }
0x11e6   : > { %8064 = vmatpush1.bf16.msra.mxu0 %v8063_v11  ;;  %v5521_v11 = vld [vmem:[#allocation40 + $0x480] sm:$0xff] }
0x11e7   : > { %8066 = vmatprep.subr.bf16.mxu0 %v8065_v40  ;;  %v5523_v40 = vld [vmem:[#allocation40 + $0x490] sm:$0xff] }
0x11e8   : > { %v8107_v22 = vpack.c.bf16 %v5523_v40, %v5521_v11  ;;  %v5566_v11 = vld [vmem:[#allocation40 + $0x5e8] sm:$0xff]  ;;  %v5568_v40 = vld [vmem:[#allocation40 + $0x5f8] sm:$0xff] }
0x11e9   : > { %v8149_v46 = vpack.c.bf16 %v5568_v40, %v5566_v11  ;;  %v5793_v11 = vld [vmem:[#allocation43 + $0xa0] sm:$0xff]  ;;  %v5794_v40 = vld [vmem:[#allocation43 + $0xa8] sm:$0xff] }
0x11ea   : > { %8068 = vmatpush1.bf16.msra.mxu0 %v8067_v50  ;;  %v5525_v50 = vld [vmem:[#allocation40 + $0x4a0] sm:$0xff] }
0x11eb   : > { %8070 = vmatprep.subr.bf16.mxu0 %v8069_v49  ;;  %v5527_v49 = vld [vmem:[#allocation40 + $0x4b0] sm:$0xff] }
0x11ec   : > { %v8111_v57 = vpack.c.bf16 %v5527_v49, %v5525_v50  ;;  %v5682_v49 = vld [vmem:[#allocation42 + $0x80] sm:$0xff] }
0x11ee   : > { %8072 = vmatpush1.bf16.msra.mxu0 %v8071_v61  ;;  %v5529_v61 = vld [vmem:[#allocation40 + $0x4c0] sm:$0xff] }
0x11ef   : > { %8074 = vmatprep.subr.bf16.mxu0 %v8073_v63  ;;  %v5531_v63 = vld [vmem:[#allocation40 + $0x4d0] sm:$0xff] }
0x11f0   : > { %v8115_v54 = vpack.c.bf16 %v5531_v63, %v5529_v61  ;;  %v5666_v61 = vld [vmem:[#allocation42] sm:$0xff]  ;;  %v5667_v63 = vld [vmem:[#allocation42 + $0x8] sm:$0xff] }
0x11f1   : > { %v8155_v62 = vpack.c.bf16 %v5667_v63, %v5666_v61  ;;  %v5779_v61 = vld [vmem:[#allocation43 + $0x30] sm:$0xff]  ;;  %v5780_v63 = vld [vmem:[#allocation43 + $0x38] sm:$0xff] }
0x11f2   : > { %8076 = vmatpush1.bf16.msra.mxu0 %v8075_v15  ;;  %v5533_v15 = vld [vmem:[#allocation40 + $0x4e0] sm:$0xff] }
0x11f3   : > { %8078 = vmatprep.subr.bf16.mxu0 %v8077_v1  ;;  %v5535_v1 = vld [vmem:[#allocation40 + $0x4f0] sm:$0xff] }
0x11f4   : > { %v8119_v3 = vpack.c.bf16 %v5535_v1, %v5533_v15  ;;  %v5668_v1 = vld [vmem:[#allocation42 + $0x10] sm:$0xff] }
0x11f5   : > { %v8159_v2 = vpack.c.bf16 %v5669_v7, %v5668_v1  ;;  %v5782_v1 = vld [vmem:[#allocation43 + $0x48] sm:$0xff]  ;;  %v5799_v7 = vld [vmem:[#allocation43 + $0xd0] sm:$0xff] }
0x11f6   : > { %8080 = vmatpush1.bf16.msra.mxu0 %v8079_v48  ;;  %v5537_v48 = vld [vmem:[#allocation40 + $0x500] sm:$0xff] }
0x11f7   : > { %8082 = vmatprep.subr.bf16.mxu0 %v8081_v34  ;;  %v5539_v34 = vld [vmem:[#allocation40 + $0x510] sm:$0xff] }
0x11fa   : > { %8084 = vmatpush1.bf16.msra.mxu0 %v8083_v8  ;;  %v8123_v8 = vpack.c.bf16 %v5539_v34, %v5537_v48  ;;  %v5670_v34 = vld [vmem:[#allocation42 + $0x20] sm:$0xff] }
0x11fb   : > { %8086 = vmatprep.subr.bf16.mxu0 %v10497_v55  ;;  %v8091_v55 = vpack.c.bf16 %v5507_v17, %v5505_v16  ;;  %v5545_v16 = vld [vmem:[#allocation40 + $0x540] sm:$0xff]  ;;  %v5547_v17 = vld [vmem:[#allocation40 + $0x550] sm:$0xff]  ;;  %v8163_v31 = vpack.c.bf16 %v5671_v6, %v5670_v34  ;;  %v5784_v34 = vld [vmem:[#allocation43 + $0x58] sm:$0xff] }
0x11fc   : > { %v5801_v6 = vld [vmem:[#allocation43 + $0xe0] sm:$0xff] }
0x1250   : > { %v5133_v10 = vpop.f32.mrb[26].mxu0 }
0x1251   : > { %v5135_v13 = vpop.f32.mrb[27].mxu0 }
0x1252   : > { %5414 = vmatprep.mubr.f32.mxu0 %v5135_v13  ;;  %v5546_v13 = vld [vmem:[#allocation40 + $0x548] sm:$0xff] }
0x1253   : > { %5415 = vmatmul.mubr.f32.vlgmr.msra.gmra.mrb[30].mxu0 %v5133_v10  ;;  %v5543_v10 = vld [vmem:[#allocation40 + $0x530] sm:$0xff] }
0x1254   : > { %8088 = vmatpush1.bf16.msra.mxu0 %v10501_v59  ;;  %v5139_v33 = vpop.f32.mrb[28].mxu0  ;;  %v8596_v59 = vld [vmem:[%s9730_s20] sm:$0xff] }
0x1255   : > { %v5141_v60 = vpop.f32.mrb[29].mxu0  ;;  %8090 = vmatprep.subr.bf16.mxu0 %v8089_v14  ;;  %v5548_v14 = vld [vmem:[#allocation40 + $0x558] sm:$0xff] }
0x1256   : > { %5420 = vmatprep.mubr.f32.mxu0 %v5141_v60  ;;  %v8129_v60 = vpack.c.bf16 %v5548_v14, %v5546_v13  ;;  %v5673_v13 = vld [vmem:[#allocation42 + $0x38] sm:$0xff]  ;;  %v5690_v14 = vld [vmem:[#allocation42 + $0xc0] sm:$0xff] }
0x1257   : > { %5421 = vmatmul.mubr.f32.gmra.mrb[32].mxu0 %v5139_v33  ;;  %v8127_v33 = vpack.c.bf16 %v5543_v10, %v5541_v5  ;;  %v5672_v10 = vld [vmem:[#allocation42 + $0x30] sm:$0xff] }
0x1258   : > { %5491 = vmatprep.mubr.f32.mxu0 %v9526_v12 }
0x125b   : > { %6397 = vmatmul.mubr.msk.f32.vlgmr.msra.gmra.mrb[34].mxu0 %vm1759_vm1, %v8596_v59  ;;  %v8135_v59 = vpack.c.bf16 %v5551_v43, %v5549_v24  ;;  %v5676_v43 = vld [vmem:[#allocation42 + $0x50] sm:$0xff] }
0x125c   : > { %5497 = vmatprep.mubr.f32.mxu0 %v9526_v12  ;;  %8092 = vmatpush1.bf16.msra.mxu0 %v8091_v55  ;;  %v8103_v12 = vpack.c.bf16 %v5519_v38, %v5517_v44  ;;  %v8131_v55 = vpack.c.bf16 %v5547_v17, %v5545_v16  ;;  %v5562_v44 = vld [vmem:[#allocation40 + $0x5c8] sm:$0xff]  ;;  %v5564_v38 = vld [vmem:[#allocation40 + $0x5d8] sm:$0xff]  ;;  %v5674_v17 = vld [vmem:[#allocation42 + $0x40] sm:$0xff] }
0x125d   : > { %8094 = vmatprep.subr.bf16.mxu0 %v8093_v23  ;;  %v8133_v23 = vpack.c.bf16 %v5552_v21, %v5550_v18  ;;  %v8145_v42 = vpack.c.bf16 %v5564_v38, %v5562_v44  ;;  %v5675_v18 = vld [vmem:[#allocation42 + $0x48] sm:$0xff]  ;;  %v5692_v21 = vld [vmem:[#allocation42 + $0xd0] sm:$0xff] }
0x125f   : > { %6398 = vmatmul.mubr.msk.f32.gmra.mrb[36].mxu0 %vm1759_vm1, %v8597_v35  ;;  %v8141_v35 = vpack.c.bf16 %v5560_v30, %v5558_v29  ;;  %v5679_v29 = vld [vmem:[#allocation42 + $0x68] sm:$0xff] }
0x1260   : > { %8096 = vmatpush1.bf16.msra.mxu0 %v8095_v45  ;;  %v8137_v45 = vpack.c.bf16 %v5556_v25, %v5554_v27  ;;  %v5677_v27 = vld [vmem:[#allocation42 + $0x58] sm:$0xff]  ;;  %v5694_v25 = vld [vmem:[#allocation42 + $0xe0] sm:$0xff] }
0x1261   : > { %8098 = vmatprep.subr.bf16.mxu0 %v8097_v26  ;;  %v5553_v26 = vld [vmem:[#allocation40 + $0x580] sm:$0xff] }
0x1262   : > { %v8139_v32 = vpack.c.bf16 %v5555_v28, %v5553_v26  ;;  %v5678_v28 = vld [vmem:[#allocation42 + $0x60] sm:$0xff] }
0x1263   : > { %v8179_v30 = vpack.c.bf16 %v5679_v29, %v5678_v28 }
0x1264   : > { %8100 = vmatpush1.bf16.msra.mxu0 %v8099_v36  ;;  %v5557_v36 = vld [vmem:[#allocation40 + $0x5a0] sm:$0xff] }
0x1265   : > { %8102 = vmatprep.subr.bf16.mxu0 %v8101_v37  ;;  %v5559_v37 = vld [vmem:[#allocation40 + $0x5b0] sm:$0xff] }
0x1266   : > { %v8143_v39 = vpack.c.bf16 %v5559_v37, %v5557_v36  ;;  %v5791_v36 = vld [vmem:[#allocation43 + $0x90] sm:$0xff]  ;;  %v5792_v37 = vld [vmem:[#allocation43 + $0x98] sm:$0xff] }
0x1268   : > { %8104 = vmatpush1.bf16.msra.mxu0 %v8103_v12  ;;  %v5561_v12 = vld [vmem:[#allocation40 + $0x5c0] sm:$0xff] }
0x1269   : > { %8106 = vmatprep.subr.bf16.mxu0 %v8105_v19  ;;  %v5563_v19 = vld [vmem:[#allocation40 + $0x5d0] sm:$0xff] }
0x126a   : > { %v8147_v41 = vpack.c.bf16 %v5563_v19, %v5561_v12  ;;  %v5775_v12 = vld [vmem:[#allocation43 + $0x10] sm:$0xff]  ;;  %v5776_v19 = vld [vmem:[#allocation43 + $0x18] sm:$0xff] }
0x126c   : > { %8108 = vmatpush1.bf16.msra.mxu0 %v8107_v22  ;;  %v5565_v22 = vld [vmem:[#allocation40 + $0x5e0] sm:$0xff] }
0x126d   : > { %8110 = vmatprep.subr.bf16.mxu0 %v8109_v47  ;;  %v5567_v47 = vld [vmem:[#allocation40 + $0x5f0] sm:$0xff] }
0x126e   : > { %v8151_v50 = vpack.c.bf16 %v5567_v47, %v5565_v22  ;;  %v8193_v47 = vpack.c.bf16 %v5794_v40, %v5793_v11 }
0x1270   : > { %8112 = vmatpush1.bf16.msra.mxu0 %v8111_v57  ;;  %v8153_v57 = vpack.c.bf16 %v5683_v51, %v5682_v49  ;;  %v5778_v49 = vld [vmem:[#allocation43 + $0x28] sm:$0xff]  ;;  %v5795_v51 = vld [vmem:[#allocation43 + $0xb0] sm:$0xff] }
0x1271   : > { %8114 = vmatprep.subr.bf16.mxu0 %v8113_v58  ;;  %v5790_v58 = vld [vmem:[#allocation43 + $0x88] sm:$0xff] }
0x1272   : > { %v8185_v0 = vpack.c.bf16 %v5790_v58, %v5789_v56  ;;  %8154 = vmatprep.subr.bf16.mxu1 %v8153_v57  ;;  %v5796_v56 = vld [vmem:[#allocation43 + $0xb8] sm:$0xff] }
0x1273   : > { %8156 = vmatpush3.bf16.msra.mxu1 %v8155_v62  ;;  %v8197_v58 = vpack.c.bf16 %v5796_v56, %v5795_v51  ;;  %v5798_v62 = vld [vmem:[#allocation43 + $0xc8] sm:$0xff] }
0x1274   : > { %8116 = vmatpush1.bf16.msra.mxu0 %v8115_v54  ;;  %v5684_v54 = vld [vmem:[#allocation42 + $0x90] sm:$0xff] }
0x1275   : > { %8118 = vmatprep.subr.bf16.mxu0 %v8117_v53  ;;  %v5685_v53 = vld [vmem:[#allocation42 + $0x98] sm:$0xff] }
0x1276   : > { %v8157_v15 = vpack.c.bf16 %v5685_v53, %v5684_v54  ;;  %v8199_v54 = vpack.c.bf16 %v5780_v63, %v5779_v61 }
0x1278   : > { %8120 = vmatpush1.bf16.msra.mxu0 %v8119_v3  ;;  %v5686_v3 = vld [vmem:[#allocation42 + $0xa0] sm:$0xff]  ;;  %8158 = vmatprep.subr.bf16.mxu1 %v8157_v15 }
0x1279   : > { %8122 = vmatprep.subr.bf16.mxu0 %v8121_v4  ;;  %v5687_v4 = vld [vmem:[#allocation42 + $0xa8] sm:$0xff]  ;;  %8160 = vmatpush3.bf16.msra.mxu1 %v8159_v2  ;;  %v5781_v15 = vld [vmem:[#allocation43 + $0x40] sm:$0xff]  ;;  %v5800_v2 = vld [vmem:[#allocation43 + $0xd8] sm:$0xff] }
0x127a   : > { %v8161_v48 = vpack.c.bf16 %v5687_v4, %v5686_v3  ;;  %v8203_v3 = vpack.c.bf16 %v5782_v1, %v5781_v15  ;;  %v8205_v4 = vpack.c.bf16 %v5800_v2, %v5799_v7 }
0x127c   : > { %8124 = vmatpush1.bf16.msra.mxu0 %v8123_v8  ;;  %v5688_v8 = vld [vmem:[#allocation42 + $0xb0] sm:$0xff]  ;;  %8162 = vmatprep.subr.bf16.mxu1 %v8161_v48 }
0x127d   : > { %8126 = vmatprep.subr.bf16.mxu0 %v8125_v9  ;;  %v5689_v9 = vld [vmem:[#allocation42 + $0xb8] sm:$0xff]  ;;  %8164 = vmatpush3.bf16.msra.mxu1 %v8163_v31  ;;  %v5783_v48 = vld [vmem:[#allocation43 + $0x50] sm:$0xff]  ;;  %v5802_v31 = vld [vmem:[#allocation43 + $0xe8] sm:$0xff] }
0x127e   : > { %v8165_v5 = vpack.c.bf16 %v5689_v9, %v5688_v8  ;;  %v8207_v8 = vpack.c.bf16 %v5784_v34, %v5783_v48  ;;  %v8209_v9 = vpack.c.bf16 %v5802_v31, %v5801_v6 }
0x1280   : > { %8128 = vmatpush1.bf16.msra.mxu0 %v8127_v33  ;;  %v5691_v33 = vld [vmem:[#allocation42 + $0xc8] sm:$0xff]  ;;  %8166 = vmatprep.subr.bf16.mxu1 %v8165_v5  ;;  %v5785_v5 = vld [vmem:[#allocation43 + $0x60] sm:$0xff] }
0x1281   : > { %8130 = vmatprep.subr.bf16.mxu0 %v8129_v60  ;;  %v8167_v60 = vpack.c.bf16 %v5673_v13, %v5672_v10  ;;  %v8169_v16 = vpack.c.bf16 %v5691_v33, %v5690_v14  ;;  %v5786_v10 = vld [vmem:[#allocation43 + $0x68] sm:$0xff]  ;;  %v5696_v14 = vld [vmem:[#allocation42 + $0xf0] sm:$0xff]  ;;  %v5697_v33 = vld [vmem:[#allocation42 + $0xf8] sm:$0xff] }
0x1282   : > { %v8211_v13 = vpack.c.bf16 %v5786_v10, %v5785_v5 }
0x1283   : > { %8168 = vmatpush3.bf16.msra.mxu1 %v8167_v60  ;;  %v8181_v60 = vpack.c.bf16 %v5697_v33, %v5696_v14 }
0x1284   : > { %8132 = vmatpush1.bf16.msra.mxu0 %v8131_v55  ;;  %v5693_v55 = vld [vmem:[#allocation42 + $0xd8] sm:$0xff]  ;;  %8170 = vmatprep.subr.bf16.mxu1 %v8169_v16  ;;  %v5803_v16 = vld [vmem:[#allocation43 + $0xf0] sm:$0xff] }
0x1285   : > { %8134 = vmatprep.subr.bf16.mxu0 %v8133_v23  ;;  %v8171_v23 = vpack.c.bf16 %v5675_v18, %v5674_v17  ;;  %v8173_v24 = vpack.c.bf16 %v5693_v55, %v5692_v21  ;;  %v5804_v17 = vld [vmem:[#allocation43 + $0xf8] sm:$0xff]  ;;  %v5680_v18 = vld [vmem:[#allocation42 + $0x70] sm:$0xff] }
0x1286   : > { %v8213_v21 = vpack.c.bf16 %v5804_v17, %v5803_v16  ;;  %v5681_v55 = vld [vmem:[#allocation42 + $0x78] sm:$0xff] }
0x1287   : > { %8172 = vmatpush3.bf16.msra.mxu1 %v8171_v23  ;;  %v5787_v23 = vld [vmem:[#allocation43 + $0x70] sm:$0xff] }
0x1288   : > { %8136 = vmatpush1.bf16.msra.mxu0 %v8135_v59  ;;  %v5695_v59 = vld [vmem:[#allocation42 + $0xe8] sm:$0xff]  ;;  %8174 = vmatprep.subr.bf16.mxu1 %v8173_v24  ;;  %v5788_v24 = vld [vmem:[#allocation43 + $0x78] sm:$0xff] }
0x1289   : > { %8138 = vmatprep.subr.bf16.mxu0 %v8137_v45  ;;  %v8175_v45 = vpack.c.bf16 %v5677_v27, %v5676_v43  ;;  %v8177_v26 = vpack.c.bf16 %v5695_v59, %v5694_v25  ;;  %v8183_v43 = vpack.c.bf16 %v5681_v55, %v5680_v18  ;;  %v8215_v27 = vpack.c.bf16 %v5788_v24, %v5787_v23  ;;  %v5650_v25 = vld [vmem:[%s10675_s16] sm:$0x3] }
0x128a   : > { %v5659_v59 = vrot.slane %v5650_v25, %v10480_v52 }
0x128b   : > { %8176 = vmatpush3.bf16.msra.mxu1 %v8175_v45  ;;  %v5655_v45 = vrot.slane %v5650_v25, %v10477_v20 }
0x128c   : > { %8140 = vmatpush1.bf16.msra.mxu0 %v8139_v32  ;;  %8178 = vmatprep.subr.bf16.mxu1 %v8177_v26  ;;  %v5773_v32 = vld [vmem:[#allocation43] sm:$0xff] }
0x128d   : > { %8142 = vmatprep.subr.bf16.mxu0 %v8141_v35  ;;  %v5774_v35 = vld [vmem:[#allocation43 + $0x8] sm:$0xff] }
0x128e   : > { %v8187_v38 = vpack.c.bf16 %v5774_v35, %v5773_v32 }
0x128f   : > { %8180 = vmatpush3.bf16.msra.mxu1 %v8179_v30 }
0x1290   : > { %8144 = vmatpush1.bf16.msra.mxu0 %v8143_v39  ;;  %8182 = vmatprep.subr.bf16.mxu1 %v8181_v60 }
0x1291   : > { %8146 = vmatprep.subr.bf16.mxu0 %v8145_v42  ;;  %v8189_v42 = vpack.c.bf16 %v5792_v37, %v5791_v36 }
0x1293   : > { %8184 = vmatpush3.bf16.msra.mxu1 %v8183_v43 }
0x1294   : > { %8148 = vmatpush1.bf16.msra.mxu0 %v8147_v41 }
0x1295   : > { %8150 = vmatprep.subr.bf16.mxu0 %v8149_v46  ;;  %v8191_v46 = vpack.c.bf16 %v5776_v19, %v5775_v12 }
0x1298   : > { %8152 = vmatpush1.bf16.msra.mxu0 %v8151_v50  ;;  %v5777_v50 = vld [vmem:[#allocation43 + $0x20] sm:$0xff] }
0x1299   : > { %8186 = vmatprep.subr.bf16.mxu0 %v8185_v0  ;;  %v8195_v57 = vpack.c.bf16 %v5778_v49, %v5777_v50  ;;  %v5797_v0 = vld [vmem:[#allocation43 + $0xc0] sm:$0xff] }
0x129a   : > { %v8201_v53 = vpack.c.bf16 %v5798_v62, %v5797_v0 }
0x132e   : > { %v5493_v44 = vpop.f32.mrb[34].mxu0 }
0x132f   : > { %v5495_v39 = vpop.f32.mrb[35].mxu0 }
0x1330   : > { %5633 = vmatprep.mubr.f32.mxu0 %v5495_v39 }
0x1331   : > { %5634 = vmatmul.mubr.f32.vlgmr.msra.gmra.mrb[30].mxu0 %v5493_v44 }
0x1332   : > { %v5499_v41 = vpop.f32.mrb[36].mxu0  ;;  %8188 = vmatpush3.bf16.msra.mxu0 %v8187_v38 }
0x1333   : > { %v5501_v22 = vpop.f32.mrb[37].mxu0  ;;  %8190 = vmatprep.subr.bf16.mxu0 %v8189_v42 }
0x1334   : > { %5639 = vmatprep.mubr.f32.mxu0 %v5501_v22 }
0x1335   : > { %5640 = vmatmul.mubr.f32.gmra.mrb[32].mxu0 %v5499_v41 }
0x1336   : > { %8192 = vmatpush3.bf16.msra.mxu0 %v8191_v46 }
0x1337   : > { %8194 = vmatprep.subr.bf16.mxu0 %v8193_v47 }
0x133a   : > { %8196 = vmatpush3.bf16.msra.mxu0 %v8195_v57 }
0x133b   : > { %8198 = vmatprep.subr.bf16.mxu0 %v8197_v58 }
0x133e   : > { %8200 = vmatpush3.bf16.msra.mxu0 %v8199_v54 }
0x133f   : > { %8202 = vmatprep.subr.bf16.mxu0 %v8201_v53 }
0x1342   : > { %8204 = vmatpush3.bf16.msra.mxu0 %v8203_v3 }
0x1343   : > { %8206 = vmatprep.subr.bf16.mxu0 %v8205_v4 }
0x1346   : > { %8208 = vmatpush3.bf16.msra.mxu0 %v8207_v8 }
0x1347   : > { %8210 = vmatprep.subr.bf16.mxu0 %v8209_v9 }
0x134a   : > { %8212 = vmatpush3.bf16.msra.mxu0 %v8211_v13 }
0x134b   : > { %8214 = vmatprep.subr.bf16.mxu0 %v8213_v21 }
0x134e   : > { %8216 = vmatpush3.bf16.msra.mxu0 %v8215_v27 }
0x1404   : > { %v5635_v26 = vpop.f32.mrb[30].mxu0 }
0x1405   : > { %v5637_v28 = vpop.f32.mrb[31].mxu0  ;;  %v5662_v30 = vadd.f32 %v5655_v45, %v5635_v26 }
0x1406   : > { %v5663_v29 = vadd.f32 %v5659_v59, %v5637_v28 }
0x1408   : > { %v5641_v32 = vpop.f32.mrb[32].mxu0  ;;  %5762 = vmatprep.mubr.f32.mxu1 %v5663_v29  ;;  %5869 = vmatprep.mubr.f32.mxu0 %v5663_v29 }
0x1409   : > { %v5643_v35 = vpop.f32.mrb[33].mxu0  ;;  %5763 = vmatmul.mubr.f32.vlgmr.msra.gmra.mrb[32].mxu1 %v5662_v30  ;;  %5870 = vmatmul.mubr.f32.vlgmr.msra.gmra.mrb[38].mxu0 %v5662_v30  ;;  %v5664_v37 = vadd.f32 %v5655_v45, %v5641_v32 }
0x140a   : > { %v5665_v36 = vadd.f32 %v5659_v59, %v5643_v35 }
0x140c   : > { %5767 = vmatprep.mubr.f32.mxu1 %v5665_v36  ;;  %5874 = vmatprep.mubr.f32.mxu0 %v5665_v36 }
0x140d   : > { %5768 = vmatmul.mubr.f32.gmra.mrb[34].mxu1 %v5664_v37  ;;  %5875 = vmatmul.mubr.f32.gmra.mrb[40].mxu0 %v5664_v37 }
0x14dc   : > { %v6724_v52 = vpop.f32.mrb[32].mxu1  ;;  %v6762_v20 = vpop.f32.mrb[38].mxu0 }
0x14dd   : > { %v6725_v44 = vpop.f32.mrb[33].mxu1  ;;  %v6763_v38 = vpop.f32.mrb[39].mxu0 }
0x14de   : > { %v6726_v39 = vadd.f32 %v6725_v44, %v6724_v52  ;;  %v6764_v42 = vadd.f32 %v6763_v38, %v6762_v20 }
0x14e0   : > { %v5880_v12 = vmul.f32 %v6764_v42, %v6726_v39  ;;  %v6727_v19 = vpop.f32.mrb[34].mxu1  ;;  %v6765_v11 = vpop.f32.mrb[40].mxu0 }
0x14e1   : > { %v6728_v40 = vpop.f32.mrb[35].mxu1  ;;  %v6766_v41 = vpop.f32.mrb[41].mxu0 }
0x14e2   : > { %5882 = vst [vmem:[%s1639_s22] sm:$0xff] %v5880_v12  ;;  %v6729_v46 = vadd.f32 %v6728_v40, %v6727_v19  ;;  %v6767_v22 = vadd.f32 %v6766_v41, %v6765_v11 }
0x14e4   : > { %v5881_v47 = vmul.f32 %v6767_v22, %v6729_v46 }
0x14e6   : > { %5883 = vst [vmem:[%s1639_s22 + $0x8] sm:$0xff] %v5881_v47 }
0x14e7 PF: > { %s110_s15 = sadd.s32 1, %s9448_s15  }
0x14e8   : > { %p107_p13 = scmp.ge.s32.totalorder %s110_s15, 4  }
0x14ea   :  { %109 = sbr.rel (!%p107_p13) target bundleno = 92 (0x5c), region = 387 }
0x14f1   :  { %5905 = vsyncpa [#allocation3], 1 }
0x14f2   :  { %5907 = vsyncpa [#allocation3 + $0x1], 1 }
0x14f3   :  { %5908 = vsyncpa [#allocation5], 1 }
0x14f4   :  { %5909 = vsyncpa [#allocation8], 1 }
0x14f5   :  { %5910 = vsyncpa [#allocation11], 1 }
0x14f6   :  { %5911 = vsyncpa [#allocation14], 1 }
0x14f7   :  { %5912 = vsyncpa [#allocation17], 1 }
0x14f8   :  { %5913 = vsyncpa [#allocation20], 1 }
0x14f9   :  { %5914 = vsyncpa [#allocation23], 1 }
0x14fa   :  { %5915 = vsyncpa [#allocation26], 1 }
0x14fb   :  { %5916 = vsyncpa [#allocation29], 1 }
0x14fc   :  { %5917 = vsyncpa [#allocation32], 1 }
0x14fd   :  { %5918 = vsyncpa [#allocation35], 1 }
0x14fe   :  { %5919 = vsyncpa [#allocation38], 1 }
0x14ff   :  { %5920 = vsyncpa [#allocation41], 1 }
0x1500   :  { %5921 = vsyncpa [#allocation44], 1 }

</bundles_post_ra>
